<compile_context>
chip_gen: v7x
topology: tpu7x:2x2x1
jax: 0.10.0
libtpu: 0.0.40
codegen_flags: <defaults>
</compile_context>

<pallas_src>
import functools

import jax
import jax.numpy as jnp
import numpy as np
from jax.experimental import pallas as pl
from jax.experimental.pallas import tpu as pltpu


# ------------------------------------------------------------------
# helpers
# ------------------------------------------------------------------
def _round_up(x, m):
    return ((x + m - 1) // m) * m


def _pick_tile(dim, cap, mult):
    """Largest tile <= cap that divides dim and is a multiple of mult (else dim)."""
    cap = min(cap, dim)
    cap -= cap % mult
    for t in range(cap, 0, -mult):
        if dim % t == 0:
            return t
    return dim


@functools.lru_cache(maxsize=None)
def _vmem_cap_bytes():
    """Generation-aware VMEM ceiling: ~104 MiB on v5e/v6e (128 MiB phys), ~48 MiB on v7x."""
    try:
        phys = int(pltpu.get_tpu_info().vmem_capacity_bytes)
    except Exception:
        phys = 64 * 1024 * 1024          # conservative (v7x-sized) fallback
    if phys >= 100 * 1024 * 1024:
        return 104 * 1024 * 1024
    return (phys * 3) // 4


def _compiler_params(dimension_semantics, vmem_estimate_bytes):
    kwargs = dict(dimension_semantics=dimension_semantics)
    if vmem_estimate_bytes > 12 * 1024 * 1024:   # above the conservative scoped default
        kwargs["vmem_limit_bytes"] = int(min(vmem_estimate_bytes + (4 << 20),
                                             _vmem_cap_bytes()))
    return pltpu.CompilerParams(**kwargs)


# ------------------------------------------------------------------
# Kernel 1: tiled Linear  y = x @ w_t + b   (bf16 MXU operands, f32 accumulation,
# K-tiled with an f32 VMEM accumulator).  Used for image projection and vocab logits.
# ------------------------------------------------------------------
def _linear_kernel(x_ref, w_ref, b_ref, o_ref, acc_ref):
    k = pl.program_id(2)

    @pl.when(k == 0)
    def _():
        acc_ref[...] = jnp.zeros_like(acc_ref)

    acc_ref[...] += jnp.dot(x_ref[...], w_ref[...],
                            preferred_element_type=jnp.float32)

    @pl.when(k == pl.num_programs(2) - 1)
    def _():
        o_ref[...] = (acc_ref[...] + b_ref[...]).astype(o_ref.dtype)


def linear(x, w_t, b, *, out_dtype=jnp.float32, tm_cap=256, tn_cap=512, tk_cap=2048):
    """x: (M, K), w_t: (K, N), b: (N,).  M % 8 == 0 and N % 128 == 0 (pre-padded)."""
    m, k = x.shape
    n = w_t.shape[1]
    if k > tk_cap:
        kp = _round_up(k, 128)
        if kp != k:
            x = jnp.pad(x, ((0, 0), (0, kp - k)))
            w_t = jnp.pad(w_t, ((0, kp - k), (0, 0)))
        k = kp
        tk = _pick_tile(k, tk_cap, 128)
    else:
        tk = k
    tm = _pick_tile(m, tm_cap, 8)
    tn = _pick_tile(n, tn_cap, 128)

    xb = jnp.dtype(x.dtype).itemsize
    wb = jnp.dtype(w_t.dtype).itemsize
    ob = jnp.dtype(out_dtype).itemsize
    est = (2 * (tm * tk * xb + tk * tn * wb + tn * 4)
           + 2 * tm * tn * ob + tm * tn * 4)

    return pl.pallas_call(
        _linear_kernel,
        out_shape=jax.ShapeDtypeStruct((m, n), out_dtype),
        grid_spec=pltpu.PrefetchScalarGridSpec(
            num_scalar_prefetch=0,
            grid=(m // tm, n // tn, k // tk),
            in_specs=[
                pl.BlockSpec((tm, tk), lambda i, j, kk: (i, kk)),
                pl.BlockSpec((tk, tn), lambda i, j, kk: (kk, j)),
                pl.BlockSpec((1, tn), lambda i, j, kk: (0, j)),
            ],
            out_specs=pl.BlockSpec((tm, tn), lambda i, j, kk: (i, j)),
            scratch_shapes=[pltpu.VMEM((tm, tn), jnp.float32)],
        ),
        compiler_params=_compiler_params(("parallel", "parallel", "arbitrary"), est),
    )(x, w_t, b[None, :])


# ------------------------------------------------------------------
# Kernel 2: fused GRU layer.
# Grid = (batch tiles ["parallel"], time chunks ["arbitrary"]).  Per grid step:
#   one MXU matmul computes GI for the whole (tc, bn) chunk into VMEM scratch,
#   then tc unrolled recurrence steps (small h @ W_hh^T matmul + f32 gate math).
# Hidden state is carried across time chunks in a VMEM scratch; packed-sequence
# masking zeroes outputs and freezes the hidden past each row's length.
# Last layer writes its output batch-first so the vocab matmul needs no transpose.
# ------------------------------------------------------------------
def _gru_fused_kernel(lens_ref, x_ref, wih_ref, bih_ref, whh_ref, bhh_ref,
                      out_ref, h_ref, gi_ref, *, batch_first_out):
    t_chunk = pl.program_id(1)
    tc, bn, wp = x_ref.shape
    hp = whh_ref.shape[0]

    @pl.when(t_chunk == 0)
    def _():
        h_ref[...] = jnp.zeros_like(h_ref)

    # Hoisted input projection for the whole time chunk: one lane-dense bf16 matmul.
    x2 = x_ref[...].reshape(tc * bn, wp)
    gi_ref[...] = jnp.dot(x2, wih_ref[...],
                          preferred_element_type=jnp.float32) + bih_ref[...]

    lens1 = lens_ref[:, 0:1]                 # (bn, 1) int32 effective lengths
    whh = whh_ref[...]                       # (Hp, 3Hp) bf16, resident
    bhh = bhh_ref[...]                       # (1, 3Hp) f32
    t0 = t_chunk * tc
    h = h_ref[...]                           # (bn, Hp) f32 carried hidden state
    # Padded hidden lanes rely on h0 == 0 and zero-padded n-gate weights
    # (sigmoid(0)=0.5 but n=0 keeps padded lanes at 0).  Correct because the
    # initial hidden state is always zero here.
    for i in range(tc):                      # static unroll: LLO sees the whole chunk
        gi = gi_ref[i * bn:(i + 1) * bn, :]
        gh = jnp.dot(h.astype(whh.dtype), whh,
                     preferred_element_type=jnp.float32) + bhh
        r = jax.nn.sigmoid(gi[:, :hp] + gh[:, :hp])
        z = jax.nn.sigmoid(gi[:, hp:2 * hp] + gh[:, hp:2 * hp])
        nn_ = jnp.tanh(gi[:, 2 * hp:] + r * gh[:, 2 * hp:])
        h_new = nn_ + z * (h - nn_)          # == (1 - z) * n + z * h, one fewer vmul
        valid = lens1 > (t0 + i)             # (bn, 1) bool
        out_val = jnp.where(valid, h_new, 0.0).astype(out_ref.dtype)
        if batch_first_out:
            out_ref[:, i, :] = out_val       # pad_packed_sequence zeros past length
        else:
            out_ref[i] = out_val
        h = jnp.where(valid, h_new, h)       # freeze hidden past length
    h_ref[...] = h


def _gru_pick_bn(n_p, tc, wp, hp, budget_bytes):
    """Batch tile from the VMEM budget; prefer >=2 tiles so the 'parallel' axis
    can split across v7x's two TensorCores."""
    g3 = 3 * hp
    per_row = (2 * tc * wp * 2      # x chunk (bf16, double buffered)
               + 2 * tc * hp * 2    # out chunk (bf16, double buffered)
               + tc * g3 * 4        # GI scratch (f32)
               + hp * 4             # hidden scratch (f32)
               + 2 * 128 * 4)       # lens block
    fixed = 2 * ((wp + hp) * g3 * 2 + 2 * g3 * 4)   # W_ih^T, W_hh^T, biases
    avail = max(budget_bytes - fixed, 8 * per_row)
    bn_cap = max((avail // per_row) // 8 * 8, 8)
    bn_cap = min(bn_cap, 256)
    if n_p >= 16:
        bn_cap = min(bn_cap, max((n_p // 2) // 8 * 8, 8))
    return _pick_tile(n_p, int(bn_cap), 8)


def gru_layer(x_tm, lens_b, w_ih_t, b_ih, w_hh_t, b_hh, *, tc, batch_first_out):
    """x_tm: (T_pad, Np, Wp) bf16 time-major inputs (T_pad % tc == 0).
       lens_b: (Np, 128) int32 lane-broadcast effective lengths.
       Returns (Np, T_pad, Hp) bf16 if batch_first_out else (T_pad, Np, Hp) bf16;
       outputs are zero past each row's length."""
    t_pad, n_p, wp = x_tm.shape
    hp = w_hh_t.shape[0]
    g3 = 3 * hp
    budget = int(_vmem_cap_bytes() * 0.85)
    bn = _gru_pick_bn(n_p, tc, wp, hp, budget)

    if batch_first_out:
        out_shape = jax.ShapeDtypeStruct((n_p, t_pad, hp), jnp.bfloat16)
        out_spec = pl.BlockSpec((bn, tc, hp), lambda b, t: (b, t, 0))
    else:
        out_shape = jax.ShapeDtypeStruct((t_pad, n_p, hp), jnp.bfloat16)
        out_spec = pl.BlockSpec((tc, bn, hp), lambda b, t: (t, b, 0))

    est = (2 * (tc * bn * wp * 2 + bn * 128 * 4)
           + 2 * ((wp + hp) * g3 * 2 + 2 * g3 * 4)
           + 2 * bn * tc * hp * 2
           + bn * hp * 4 + tc * bn * g3 * 4)

    kernel = functools.partial(_gru_fused_kernel, batch_first_out=batch_first_out)
    return pl.pallas_call(
        kernel,
        out_shape=out_shape,
        grid_spec=pltpu.PrefetchScalarGridSpec(
            num_scalar_prefetch=0,
            grid=(n_p // bn, t_pad // tc),
            in_specs=[
                pl.BlockSpec((bn, 128), lambda b, t: (b, 0)),         # lengths
                pl.BlockSpec((tc, bn, wp), lambda b, t: (t, b, 0)),   # x time chunk
                pl.BlockSpec((wp, g3), lambda b, t: (0, 0)),          # W_ih^T
                pl.BlockSpec((1, g3), lambda b, t: (0, 0)),           # b_ih
                pl.BlockSpec((hp, g3), lambda b, t: (0, 0)),          # W_hh^T
                pl.BlockSpec((1, g3), lambda b, t: (0, 0)),           # b_hh
            ],
            out_specs=out_spec,
            scratch_shapes=[pltpu.VMEM((bn, hp), jnp.float32),        # hidden carry
                            pltpu.VMEM((tc * bn, g3), jnp.float32)],  # GI chunk
        ),
        compiler_params=_compiler_params(("parallel", "arbitrary"), est),
    )(lens_b, x_tm, w_ih_t, b_ih[None, :], w_hh_t, b_hh[None, :])


# ------------------------------------------------------------------
# Parameter preparation: PyTorch layouts -> padded, transposed, bf16 kernel layouts.
# Gate blocks [r; z; n] are padded per-gate so 128-aligned slices stay correct.
# ------------------------------------------------------------------
def _pad_gru_weight_t(w, hp, in_p):
    three_h, in_dim = w.shape
    h = three_h // 3
    w = w.reshape(3, h, in_dim)
    w = jnp.pad(w, ((0, 0), (0, hp - h), (0, in_p - in_dim)))
    return w.reshape(3 * hp, in_p).T                       # (In_p, 3*Hp)


def _pad_gru_bias(b, hp):
    h = b.shape[0] // 3
    return jnp.pad(b.reshape(3, h), ((0, 0), (0, hp - h))).reshape(3 * hp)


def prepare_params(raw):
    w = raw["w_proj"].shape[0]            # word_vec_size
    h = raw["w_hh"][0].shape[1]           # hidden / output_size
    v = raw["w_vocab"].shape[0]           # vocab_size
    wp, hp, vp = _round_up(w, 128), _round_up(h, 128), _round_up(v, 128)
    num_layers = len(raw["w_ih"])
    bf = jnp.bfloat16
    return {
        "w_proj_t": jnp.pad(raw["w_proj"].T, ((0, 0), (0, wp - w))).astype(bf),
        "b_proj": jnp.pad(raw["b_proj"], (0, wp - w)),
        "emb": jnp.pad(raw["emb"], ((0, 0), (0, wp - w))).astype(bf),
        "w_ih_t": [_pad_gru_weight_t(raw["w_ih"][l], hp,
                                     wp if l == 0 else hp).astype(bf)
                   for l in range(num_layers)],
        "w_hh_t": [_pad_gru_weight_t(raw["w_hh"][l], hp, hp).astype(bf)
                   for l in range(num_layers)],
        "b_ih": [_pad_gru_bias(b, hp) for b in raw["b_ih"]],
        "b_hh": [_pad_gru_bias(b, hp) for b in raw["b_hh"]],
        "w_vocab_t": jnp.pad(raw["w_vocab"].T, ((0, hp - h), (0, vp - v))).astype(bf),
        "b_vocab": jnp.pad(raw["b_vocab"], (0, vp - v)),
    }


# ------------------------------------------------------------------
# Full forward (DecoderfromFeatures2.forward)
# ------------------------------------------------------------------
@functools.partial(jax.jit, static_argnames=("vocab_size", "max_seq_len"))
def decoder_forward(params, img_rep, targets, real_lens, *, vocab_size, max_seq_len=20):
    n = img_rep.shape[0]
    t_len = targets.shape[1]
    hp = params["w_hh_t"][0].shape[0]
    vp = params["w_vocab_t"].shape[1]
    n_p = _round_up(max(n, 8), 8)          # pad batch to a sublane multiple

    # 1) image projection (K-tiled Linear, bf16 operands, f32 accumulation)
    img_flat = img_rep.reshape(n, -1).astype(jnp.bfloat16)
    img_flat = jnp.pad(img_flat, ((0, n_p - n), (0, 0)))
    img_proj = linear(img_flat, params["w_proj_t"], params["b_proj"],
                      out_dtype=jnp.bfloat16)                          # (Np, Wp)

    # 2) teacher-forced inputs, built directly time-major (index-transposed gather;
    #    no large XLA activation transpose)
    teacher = jnp.pad(targets[:, :-1], ((0, n_p - n), (0, 0)))          # (Np, T-1)
    emb_tm = params["emb"][teacher.T]                                   # (T-1, Np, Wp)
    x_tm = jnp.concatenate([img_proj[None], emb_tm], axis=0)            # (T, Np, Wp)

    tc = min(8, t_len)
    t_pad = _round_up(t_len, tc)
    if t_pad != t_len:
        x_tm = jnp.pad(x_tm, ((0, t_pad - t_len), (0, 0), (0, 0)))

    # 3) DecoderfromFeatures2: lengths are real_lens + 1, clamped to max_seq_len
    eff = jnp.clip(real_lens.astype(jnp.int32) + 1, 0, max_seq_len)
    eff = jnp.pad(eff, (0, n_p - n))                                    # pad rows: len 0
    lens_b = jnp.broadcast_to(eff[:, None], (n_p, 128))

    # 4) GRU stack: fused input projection + in-kernel recurrence, time-chunk pipelined
    num_layers = len(params["w_ih_t"])
    layer_in = x_tm
    for l in range(num_layers):
        # TODO(synk): inter-layer dropout (train mode, num_layers > 1) not applied.
        layer_in = gru_layer(layer_in, lens_b,
                             params["w_ih_t"][l], params["b_ih"][l],
                             params["w_hh_t"][l], params["b_hh"][l],
                             tc=tc, batch_first_out=(l == num_layers - 1))

    # 5) vocab projection: batch-first, lane-dense slab straight into the matmul
    out_bf = layer_in.reshape(n_p * t_pad, hp)                          # (Np*T, Hp) bf16
    logits = linear(out_bf, params["w_vocab_t"], params["b_vocab"],
                    out_dtype=jnp.float32, tm_cap=1024, tn_cap=512)     # (Np*T, Vp)
    return logits.reshape(n_p, t_pad, vp)[:n, :t_len, :vocab_size]


# ------------------------------------------------------------------
# Pure-JAX f32 reference (PyTorch-layout weights), for correctness check
# ------------------------------------------------------------------
def reference_forward(raw, img_rep, targets, real_lens, *, max_seq_len=20):
    n = img_rep.shape[0]
    img_flat = img_rep.reshape(n, -1)
    y = img_flat @ raw["w_proj"].T + raw["b_proj"]
    emb = raw["emb"][targets[:, :-1]]
    x = jnp.concatenate([y[:, None, :], emb], axis=1)            # (N, T, W)
    t_len = x.shape[1]
    eff = jnp.clip(real_lens.astype(jnp.int32) + 1, 0, max_seq_len)

    inp = x
    for l in range(len(raw["w_ih"])):
        w_ih, w_hh = raw["w_ih"][l], raw["w_hh"][l]
        b_ih, b_hh = raw["b_ih"][l], raw["b_hh"][l]
        hsz = w_hh.shape[1]
        h = jnp.zeros((n, hsz), jnp.float32)
        outs = []
        for t in range(t_len):
            gi = inp[:, t, :] @ w_ih.T + b_ih
            gh = h @ w_hh.T + b_hh
            i_r, i_z, i_n = jnp.split(gi, 3, axis=-1)
            h_r, h_z, h_n = jnp.split(gh, 3, axis=-1)
            r = jax.nn.sigmoid(i_r + h_r)
            z = jax.nn.sigmoid(i_z + h_z)
            nn_ = jnp.tanh(i_n + r * h_n)
            h_new = (1.0 - z) * nn_ + z * h
            valid = (eff > t)[:, None]
            h = jnp.where(valid, h_new, h)
            outs.append(jnp.where(valid, h_new, 0.0))
        inp = jnp.stack(outs, axis=1)
    return inp @ raw["w_vocab"].T + raw["b_vocab"]


# ------------------------------------------------------------------
if __name__ == "__main__":
    N, C, HS, WS = 2, 4, 4, 4          # img_rep (N, C, Hs, Ws) -> img_feature_size = 64
    F = C * HS * WS
    WORD_VEC = 32                      # word_vec_size
    HIDDEN = 32                        # output_size (GRU hidden)
    VOCAB = 1000                       # vocab_size (non-multiple of 128 -> exercises padding)
    T = 8                              # targets sequence length
    NUM_LAYERS = 1
    MAX_SEQ_LEN = 20

    key = jax.random.PRNGKey(0)
    ks = jax.random.split(key, 12)

    raw = {
        "w_proj": jax.random.normal(ks[0], (WORD_VEC, F), jnp.float32) * 0.1,
        "b_proj": jax.random.normal(ks[1], (WORD_VEC,), jnp.float32) * 0.1,
        "emb": jax.random.normal(ks[2], (VOCAB, WORD_VEC), jnp.float32) * 0.1,
        "w_ih": [jax.random.normal(ks[3], (3 * HIDDEN, WORD_VEC), jnp.float32) * 0.1],
        "w_hh": [jax.random.normal(ks[4], (3 * HIDDEN, HIDDEN), jnp.float32) * 0.1],
        "b_ih": [jax.random.normal(ks[5], (3 * HIDDEN,), jnp.float32) * 0.1],
        "b_hh": [jax.random.normal(ks[6], (3 * HIDDEN,), jnp.float32) * 0.1],
        "w_vocab": jax.random.normal(ks[7], (VOCAB, HIDDEN), jnp.float32) * 0.1,
        "b_vocab": jax.random.normal(ks[8], (VOCAB,), jnp.float32) * 0.1,
    }
    assert NUM_LAYERS == len(raw["w_ih"])

    img_rep = jax.random.normal(ks[9], (N, C, HS, WS), jnp.float32)
    targets = jax.random.randint(ks[10], (N, T), 0, VOCAB, jnp.int32)
    real_lens = jnp.array([7, 4], jnp.int32)   # module adds 1 -> effective lengths [8, 5]

    params = prepare_params(raw)
    out = decoder_forward(params, img_rep, targets, real_lens,
                          vocab_size=VOCAB, max_seq_len=MAX_SEQ_LEN)
    out = jax.block_until_ready(out)
    assert out.shape == (N, T, VOCAB), out.shape

    ref = reference_forward(raw, img_rep, targets, real_lens, max_seq_len=MAX_SEQ_LEN)
    # Tolerance re-baselined for bf16 MXU operands (f32 accumulation) vs f32 reference.
    np.testing.assert_allclose(np.asarray(out), np.asarray(ref), rtol=3e-2, atol=1e-2)
    print("KERNEL_OK")
</pallas_src>

<mosaic_0001>
module attributes {stable_mosaic.version = 11 : i64} {
  func.func @_linear_kernel(%arg0: i32, %arg1: i32, %arg2: i32, %arg3: memref<8x64xbf16, #tpu.memory_space<vmem>>, %arg4: memref<64x128xbf16, #tpu.memory_space<vmem>>, %arg5: memref<1x128xf32, #tpu.memory_space<vmem>>, %arg6: memref<8x128xbf16, #tpu.memory_space<vmem>>, %arg7: memref<8x128xf32, #tpu.memory_space<vmem>>) attributes {dimension_semantics = [#tpu.dimension_semantics<parallel>, #tpu.dimension_semantics<parallel>, #tpu.dimension_semantics<arbitrary>], iteration_bounds = array<i64: 1, 1, 1>, scalar_prefetch = 0 : i64, scratch_operands = 1 : i64, tpu.core_type = #tpu.core_type<tc>, window_params = [{transform_indices = @transform_0, window_bounds = array<i64: 8, 64>}, {transform_indices = @transform_1, window_bounds = array<i64: 64, 128>}, {transform_indices = @transform_2, window_bounds = array<i64: 1, 128>}, {transform_indices = @transform_3, window_bounds = array<i64: 8, 128>}]} {
    %c0_i32 = arith.constant 0 : i32
    %0 = arith.cmpi eq, %arg2, %c0_i32 : i32
    %1 = arith.extui %0 : i1 to i32
    %c0_i32_0 = arith.constant 0 : i32
    %2 = arith.cmpi ne, %1, %c0_i32_0 : i32
    scf.if %2 {
      %cst_10 = arith.constant 0.000000e+00 : f32
      %12 = vector.broadcast %cst_10 : f32 to vector<8x128xf32>
      %c0_11 = arith.constant 0 : index
      %c0_12 = arith.constant 0 : index
      %13 = vector.load %arg7[%c0_11, %c0_12] : memref<8x128xf32, #tpu.memory_space<vmem>>, vector<8x128xf32>
      tpu.vector_store %arg7[%c0_11, %c0_12], %12 {strides = array<i32>} : memref<8x128xf32, #tpu.memory_space<vmem>>, vector<8x128xf32>,
    } else {
    }
    %c0 = arith.constant 0 : index
    %c0_1 = arith.constant 0 : index
    %3 = vector.load %arg7[%c0, %c0_1] : memref<8x128xf32, #tpu.memory_space<vmem>>, vector<8x128xf32>
    %c0_2 = arith.constant 0 : index
    %c0_3 = arith.constant 0 : index
    %4 = vector.load %arg3[%c0_2, %c0_3] : memref<8x64xbf16, #tpu.memory_space<vmem>>, vector<8x64xbf16>
    %c0_4 = arith.constant 0 : index
    %c0_5 = arith.constant 0 : index
    %5 = vector.load %arg4[%c0_4, %c0_5] : memref<64x128xbf16, #tpu.memory_space<vmem>>, vector<64x128xbf16>
    %cst = arith.constant dense<0.000000e+00> : vector<8x128xf32>
    %6 = tpu.matmul %4, %5, %cst {dimension_numbers = #tpu.dot_dimension_numbers<[1], [0], [0], [1], [0, 0, 1, 1], [], []>} : vector<8x64xbf16>, vector<64x128xbf16>, vector<8x128xf32> -> vector<8x128xf32>
    %7 = arith.addf %3, %6 : vector<8x128xf32>
    %c0_6 = arith.constant 0 : index
    %c0_7 = arith.constant 0 : index
    %8 = vector.load %arg7[%c0_6, %c0_7] : memref<8x128xf32, #tpu.memory_space<vmem>>, vector<8x128xf32>
    tpu.vector_store %arg7[%c0_6, %c0_7], %7 {strides = array<i32>} : memref<8x128xf32, #tpu.memory_space<vmem>>, vector<8x128xf32>,
    %c0_i32_8 = arith.constant 0 : i32
    %9 = arith.cmpi eq, %arg2, %c0_i32_8 : i32
    %10 = arith.extui %9 : i1 to i32
    %c0_i32_9 = arith.constant 0 : i32
    %11 = arith.cmpi ne, %10, %c0_i32_9 : i32
    scf.if %11 {
      %c0_10 = arith.constant 0 : index
      %c0_11 = arith.constant 0 : index
      %12 = vector.load %arg7[%c0_10, %c0_11] : memref<8x128xf32, #tpu.memory_space<vmem>>, vector<8x128xf32>
      %c0_12 = arith.constant 0 : index
      %c0_13 = arith.constant 0 : index
      %13 = vector.load %arg5[%c0_12, %c0_13] : memref<1x128xf32, #tpu.memory_space<vmem>>, vector<1x128xf32>
      %14 = vector.broadcast %13 : vector<1x128xf32> to vector<8x128xf32>
      %15 = arith.addf %12, %14 : vector<8x128xf32>
      %16 = arith.truncf %15 : vector<8x128xf32> to vector<8x128xbf16>
      %c0_14 = arith.constant 0 : index
      %c0_15 = arith.constant 0 : index
      %17 = vector.load %arg6[%c0_14, %c0_15] : memref<8x128xbf16, #tpu.memory_space<vmem>>, vector<8x128xbf16>
      tpu.vector_store %arg6[%c0_14, %c0_15], %16 {strides = array<i32>} : memref<8x128xbf16, #tpu.memory_space<vmem>>, vector<8x128xbf16>,
    } else {
    }
    return
  }
  func.func @transform_0(%arg0: i32, %arg1: i32, %arg2: i32) -> (i32, i32) {
    %c0_i32 = arith.constant 0 : i32
    return %arg0, %arg2 : i32, i32
  }
  func.func @transform_1(%arg0: i32, %arg1: i32, %arg2: i32) -> (i32, i32) {
    %c0_i32 = arith.constant 0 : i32
    return %arg2, %arg1 : i32, i32
  }
  func.func @transform_2(%arg0: i32, %arg1: i32, %arg2: i32) -> (i32, i32) {
    %c0_i32 = arith.constant 0 : i32
    %c0_i32_0 = arith.constant 0 : i32
    return %c0_i32, %arg1 : i32, i32
  }
  func.func @transform_3(%arg0: i32, %arg1: i32, %arg2: i32) -> (i32, i32) {
    %c0_i32 = arith.constant 0 : i32
    return %arg0, %arg1 : i32, i32
  }
}

module attributes {stable_mosaic.version = 11 : i64} {
  func.func @_linear_kernel(%arg0: i32, %arg1: i32, %arg2: i32, %arg3: memref<64x128xbf16, #tpu.memory_space<vmem>>, %arg4: memref<128x512xbf16, #tpu.memory_space<vmem>>, %arg5: memref<1x512xf32, #tpu.memory_space<vmem>>, %arg6: memref<64x512xf32, #tpu.memory_space<vmem>>, %arg7: memref<64x512xf32, #tpu.memory_space<vmem>>) attributes {dimension_semantics = [#tpu.dimension_semantics<parallel>, #tpu.dimension_semantics<parallel>, #tpu.dimension_semantics<arbitrary>], iteration_bounds = array<i64: 1, 2, 1>, scalar_prefetch = 0 : i64, scratch_operands = 1 : i64, tpu.core_type = #tpu.core_type<tc>, window_params = [{transform_indices = @transform_0, window_bounds = array<i64: 64, 128>}, {transform_indices = @transform_1, window_bounds = array<i64: 128, 512>}, {transform_indices = @transform_2, window_bounds = array<i64: 1, 512>}, {transform_indices = @transform_3, window_bounds = array<i64: 64, 512>}]} {
    %c0_i32 = arith.constant 0 : i32
    %0 = arith.cmpi eq, %arg2, %c0_i32 : i32
    %1 = arith.extui %0 : i1 to i32
    %c0_i32_0 = arith.constant 0 : i32
    %2 = arith.cmpi ne, %1, %c0_i32_0 : i32
    scf.if %2 {
      %cst_10 = arith.constant 0.000000e+00 : f32
      %12 = vector.broadcast %cst_10 : f32 to vector<64x512xf32>
      %c0_11 = arith.constant 0 : index
      %c0_12 = arith.constant 0 : index
      %13 = vector.load %arg7[%c0_11, %c0_12] : memref<64x512xf32, #tpu.memory_space<vmem>>, vector<64x512xf32>
      tpu.vector_store %arg7[%c0_11, %c0_12], %12 {strides = array<i32>} : memref<64x512xf32, #tpu.memory_space<vmem>>, vector<64x512xf32>,
    } else {
    }
    %c0 = arith.constant 0 : index
    %c0_1 = arith.constant 0 : index
    %3 = vector.load %arg7[%c0, %c0_1] : memref<64x512xf32, #tpu.memory_space<vmem>>, vector<64x512xf32>
    %c0_2 = arith.constant 0 : index
    %c0_3 = arith.constant 0 : index
    %4 = vector.load %arg3[%c0_2, %c0_3] : memref<64x128xbf16, #tpu.memory_space<vmem>>, vector<64x128xbf16>
    %c0_4 = arith.constant 0 : index
    %c0_5 = arith.constant 0 : index
    %5 = vector.load %arg4[%c0_4, %c0_5] : memref<128x512xbf16, #tpu.memory_space<vmem>>, vector<128x512xbf16>
    %cst = arith.constant dense<0.000000e+00> : vector<64x512xf32>
    %6 = tpu.matmul %4, %5, %cst {dimension_numbers = #tpu.dot_dimension_numbers<[1], [0], [0], [1], [0, 0, 1, 1], [], []>} : vector<64x128xbf16>, vector<128x512xbf16>, vector<64x512xf32> -> vector<64x512xf32>
    %7 = arith.addf %3, %6 : vector<64x512xf32>
    %c0_6 = arith.constant 0 : index
    %c0_7 = arith.constant 0 : index
    %8 = vector.load %arg7[%c0_6, %c0_7] : memref<64x512xf32, #tpu.memory_space<vmem>>, vector<64x512xf32>
    tpu.vector_store %arg7[%c0_6, %c0_7], %7 {strides = array<i32>} : memref<64x512xf32, #tpu.memory_space<vmem>>, vector<64x512xf32>,
    %c0_i32_8 = arith.constant 0 : i32
    %9 = arith.cmpi eq, %arg2, %c0_i32_8 : i32
    %10 = arith.extui %9 : i1 to i32
    %c0_i32_9 = arith.constant 0 : i32
    %11 = arith.cmpi ne, %10, %c0_i32_9 : i32
    scf.if %11 {
      %c0_10 = arith.constant 0 : index
      %c0_11 = arith.constant 0 : index
      %12 = vector.load %arg7[%c0_10, %c0_11] : memref<64x512xf32, #tpu.memory_space<vmem>>, vector<64x512xf32>
      %c0_12 = arith.constant 0 : index
      %c0_13 = arith.constant 0 : index
      %13 = vector.load %arg5[%c0_12, %c0_13] : memref<1x512xf32, #tpu.memory_space<vmem>>, vector<1x512xf32>
      %14 = vector.broadcast %13 : vector<1x512xf32> to vector<64x512xf32>
      %15 = arith.addf %12, %14 : vector<64x512xf32>
      %c0_14 = arith.constant 0 : index
      %c0_15 = arith.constant 0 : index
      %16 = vector.load %arg6[%c0_14, %c0_15] : memref<64x512xf32, #tpu.memory_space<vmem>>, vector<64x512xf32>
      tpu.vector_store %arg6[%c0_14, %c0_15], %15 {strides = array<i32>} : memref<64x512xf32, #tpu.memory_space<vmem>>, vector<64x512xf32>,
    } else {
    }
    return
  }
  func.func @transform_0(%arg0: i32, %arg1: i32, %arg2: i32) -> (i32, i32) {
    %c0_i32 = arith.constant 0 : i32
    return %arg0, %arg2 : i32, i32
  }
  func.func @transform_1(%arg0: i32, %arg1: i32, %arg2: i32) -> (i32, i32) {
    %c0_i32 = arith.constant 0 : i32
    return %arg2, %arg1 : i32, i32
  }
  func.func @transform_2(%arg0: i32, %arg1: i32, %arg2: i32) -> (i32, i32) {
    %c0_i32 = arith.constant 0 : i32
    %c0_i32_0 = arith.constant 0 : i32
    return %c0_i32, %arg1 : i32, i32
  }
  func.func @transform_3(%arg0: i32, %arg1: i32, %arg2: i32) -> (i32, i32) {
    %c0_i32 = arith.constant 0 : i32
    return %arg0, %arg1 : i32, i32
  }
}

module attributes {stable_mosaic.version = 11 : i64} {
  func.func @_gru_fused_kernel(%arg0: i32, %arg1: i32, %arg2: memref<8x128xi32, #tpu.memory_space<vmem>>, %arg3: memref<8x8x128xbf16, #tpu.memory_space<vmem>>, %arg4: memref<128x384xbf16, #tpu.memory_space<vmem>>, %arg5: memref<1x384xf32, #tpu.memory_space<vmem>>, %arg6: memref<128x384xbf16, #tpu.memory_space<vmem>>, %arg7: memref<1x384xf32, #tpu.memory_space<vmem>>, %arg8: memref<8x8x128xbf16, #tpu.memory_space<vmem>>, %arg9: memref<8x128xf32, #tpu.memory_space<vmem>>, %arg10: memref<64x384xf32, #tpu.memory_space<vmem>>) attributes {dimension_semantics = [#tpu.dimension_semantics<parallel>, #tpu.dimension_semantics<arbitrary>], iteration_bounds = array<i64: 1, 1>, scalar_prefetch = 0 : i64, scratch_operands = 2 : i64, tpu.core_type = #tpu.core_type<tc>, window_params = [{transform_indices = @transform_0, window_bounds = array<i64: 8, 128>}, {transform_indices = @transform_1, window_bounds = array<i64: 8, 8, 128>}, {pipeline_mode = #tpu.pipeline_mode<synchronous>, transform_indices = @transform_2, window_bounds = array<i64: 128, 384>}, {pipeline_mode = #tpu.pipeline_mode<synchronous>, transform_indices = @transform_3, window_bounds = array<i64: 1, 384>}, {pipeline_mode = #tpu.pipeline_mode<synchronous>, transform_indices = @transform_4, window_bounds = array<i64: 128, 384>}, {pipeline_mode = #tpu.pipeline_mode<synchronous>, transform_indices = @transform_5, window_bounds = array<i64: 1, 384>}, {transform_indices = @transform_6, window_bounds = array<i64: 8, 8, 128>}]} {
    %c0_i32 = arith.constant 0 : i32
    %0 = arith.cmpi eq, %arg1, %c0_i32 : i32
    %1 = arith.extui %0 : i1 to i32
    %c0_i32_0 = arith.constant 0 : i32
    %2 = arith.cmpi ne, %1, %c0_i32_0 : i32
    scf.if %2 {
      %cst_78 = arith.constant 0.000000e+00 : f32
      %361 = vector.broadcast %cst_78 : f32 to vector<8x128xf32>
      %c0_79 = arith.constant 0 : index
      %c0_80 = arith.constant 0 : index
      %362 = vector.load %arg9[%c0_79, %c0_80] : memref<8x128xf32, #tpu.memory_space<vmem>>, vector<8x128xf32>
      tpu.vector_store %arg9[%c0_79, %c0_80], %361 {strides = array<i32>} : memref<8x128xf32, #tpu.memory_space<vmem>>, vector<8x128xf32>,
    } else {
    }
    %c0 = arith.constant 0 : index
    %c0_1 = arith.constant 0 : index
    %c0_2 = arith.constant 0 : index
    %3 = vector.load %arg3[%c0, %c0_1, %c0_2] : memref<8x8x128xbf16, #tpu.memory_space<vmem>>, vector<8x8x128xbf16>
    %4 = vector.shape_cast %3 : vector<8x8x128xbf16> to vector<64x128xbf16>
    %c0_3 = arith.constant 0 : index
    %c0_4 = arith.constant 0 : index
    %5 = vector.load %arg4[%c0_3, %c0_4] : memref<128x384xbf16, #tpu.memory_space<vmem>>, vector<128x384xbf16>
    %cst = arith.constant dense<0.000000e+00> : vector<64x384xf32>
    %6 = tpu.matmul %4, %5, %cst {dimension_numbers = #tpu.dot_dimension_numbers<[1], [0], [0], [1], [0, 0, 1, 1], [], []>} : vector<64x128xbf16>, vector<128x384xbf16>, vector<64x384xf32> -> vector<64x384xf32>
    %c0_5 = arith.constant 0 : index
    %c0_6 = arith.constant 0 : index
    %7 = vector.load %arg5[%c0_5, %c0_6] : memref<1x384xf32, #tpu.memory_space<vmem>>, vector<1x384xf32>
    %8 = vector.broadcast %7 : vector<1x384xf32> to vector<64x384xf32>
    %9 = arith.addf %6, %8 : vector<64x384xf32>
    %c0_7 = arith.constant 0 : index
    %c0_8 = arith.constant 0 : index
    %10 = vector.load %arg10[%c0_7, %c0_8] : memref<64x384xf32, #tpu.memory_space<vmem>>, vector<64x384xf32>
    tpu.vector_store %arg10[%c0_7, %c0_8], %9 {strides = array<i32>} : memref<64x384xf32, #tpu.memory_space<vmem>>, vector<64x384xf32>,
    %c0_9 = arith.constant 0 : index
    %c0_10 = arith.constant 0 : index
    %11 = vector.load %arg2[%c0_9, %c0_10] : memref<8x128xi32, #tpu.memory_space<vmem>>, vector<8x1xi32>
    %c0_11 = arith.constant 0 : index
    %c0_12 = arith.constant 0 : index
    %12 = vector.load %arg6[%c0_11, %c0_12] : memref<128x384xbf16, #tpu.memory_space<vmem>>, vector<128x384xbf16>
    %c0_13 = arith.constant 0 : index
    %c0_14 = arith.constant 0 : index
    %13 = vector.load %arg7[%c0_13, %c0_14] : memref<1x384xf32, #tpu.memory_space<vmem>>, vector<1x384xf32>
    %c8_i32 = arith.constant 8 : i32
    %14 = arith.muli %arg1, %c8_i32 : i32
    %c0_15 = arith.constant 0 : index
    %c0_16 = arith.constant 0 : index
    %15 = vector.load %arg9[%c0_15, %c0_16] : memref<8x128xf32, #tpu.memory_space<vmem>>, vector<8x128xf32>
    %c0_17 = arith.constant 0 : index
    %c0_18 = arith.constant 0 : index
    %16 = vector.load %arg10[%c0_17, %c0_18] : memref<64x384xf32, #tpu.memory_space<vmem>>, vector<8x384xf32>
    %17 = arith.truncf %15 : vector<8x128xf32> to vector<8x128xbf16>
    %cst_19 = arith.constant dense<0.000000e+00> : vector<8x384xf32>
    %18 = tpu.matmul %17, %12, %cst_19 {dimension_numbers = #tpu.dot_dimension_numbers<[1], [0], [0], [1], [0, 0, 1, 1], [], []>} : vector<8x128xbf16>, vector<128x384xbf16>, vector<8x384xf32> -> vector<8x384xf32>
    %19 = vector.broadcast %13 : vector<1x384xf32> to vector<8x384xf32>
    %20 = arith.addf %18, %19 : vector<8x384xf32>
    %21 = vector.extract_strided_slice %16 {offsets = [0, 0], sizes = [8, 128], strides = [1, 1]} : vector<8x384xf32> to vector<8x128xf32>
    %22 = vector.extract_strided_slice %20 {offsets = [0, 0], sizes = [8, 128], strides = [1, 1]} : vector<8x384xf32> to vector<8x128xf32>
    %23 = arith.addf %21, %22 : vector<8x128xf32>
    %24 = arith.negf %23 : vector<8x128xf32>
    %25 = math.exp %24 : vector<8x128xf32>
    %cst_20 = arith.constant 1.000000e+00 : f32
    %26 = vector.broadcast %cst_20 : f32 to vector<8x128xf32>
    %27 = arith.addf %26, %25 : vector<8x128xf32>
    %28 = arith.divf %26, %27 : vector<8x128xf32>
    %29 = vector.extract_strided_slice %16 {offsets = [0, 128], sizes = [8, 128], strides = [1, 1]} : vector<8x384xf32> to vector<8x128xf32>
    %30 = vector.extract_strided_slice %20 {offsets = [0, 128], sizes = [8, 128], strides = [1, 1]} : vector<8x384xf32> to vector<8x128xf32>
    %31 = arith.addf %29, %30 : vector<8x128xf32>
    %32 = arith.negf %31 : vector<8x128xf32>
    %33 = math.exp %32 : vector<8x128xf32>
    %cst_21 = arith.constant 1.000000e+00 : f32
    %34 = vector.broadcast %cst_21 : f32 to vector<8x128xf32>
    %35 = arith.addf %34, %33 : vector<8x128xf32>
    %36 = arith.divf %34, %35 : vector<8x128xf32>
    %37 = vector.extract_strided_slice %16 {offsets = [0, 256], sizes = [8, 128], strides = [1, 1]} : vector<8x384xf32> to vector<8x128xf32>
    %38 = vector.extract_strided_slice %20 {offsets = [0, 256], sizes = [8, 128], strides = [1, 1]} : vector<8x384xf32> to vector<8x128xf32>
    %39 = arith.mulf %28, %38 : vector<8x128xf32>
    %40 = arith.addf %37, %39 : vector<8x128xf32>
    %41 = math.tanh %40 : vector<8x128xf32>
    %42 = arith.subf %15, %41 : vector<8x128xf32>
    %43 = arith.mulf %36, %42 : vector<8x128xf32>
    %44 = arith.addf %41, %43 : vector<8x128xf32>
    %c0_i32_22 = arith.constant 0 : i32
    %45 = arith.addi %14, %c0_i32_22 : i32
    %46 = vector.broadcast %45 : i32 to vector<8x1xi32>
    %47 = arith.cmpi sgt, %11, %46 : vector<8x1xi32>
    %cst_23 = arith.constant 0.000000e+00 : f32
    %48 = vector.shape_cast %47 : vector<8x1xi1> to vector<8x1xi1>
    %49 = vector.broadcast %48 : vector<8x1xi1> to vector<8x128xi1>
    %50 = vector.broadcast %cst_23 : f32 to vector<8x128xf32>
    %51 = arith.select %49, %44, %50 : vector<8x128xi1>, vector<8x128xf32>
    %52 = arith.truncf %51 : vector<8x128xf32> to vector<8x128xbf16>
    %c0_24 = arith.constant 0 : index
    %c0_25 = arith.constant 0 : index
    %c0_26 = arith.constant 0 : index
    %53 = vector.load %arg8[%c0_24, %c0_25, %c0_26] : memref<8x8x128xbf16, #tpu.memory_space<vmem>>, vector<8x1x128xbf16>
    %54 = vector.shape_cast %53 : vector<8x1x128xbf16> to vector<8x128xbf16>
    %55 = vector.shape_cast %52 : vector<8x128xbf16> to vector<8x1x128xbf16>
    tpu.vector_store %arg8[%c0_24, %c0_25, %c0_26], %55 {strides = array<i32>} : memref<8x8x128xbf16, #tpu.memory_space<vmem>>, vector<8x1x128xbf16>,
    %56 = vector.shape_cast %47 : vector<8x1xi1> to vector<8x1xi1>
    %57 = vector.broadcast %56 : vector<8x1xi1> to vector<8x128xi1>
    %58 = arith.select %57, %44, %15 : vector<8x128xi1>, vector<8x128xf32>
    %c8 = arith.constant 8 : index
    %c0_27 = arith.constant 0 : index
    %59 = vector.load %arg10[%c8, %c0_27] : memref<64x384xf32, #tpu.memory_space<vmem>>, vector<8x384xf32>
    %60 = arith.truncf %58 : vector<8x128xf32> to vector<8x128xbf16>
    %cst_28 = arith.constant dense<0.000000e+00> : vector<8x384xf32>
    %61 = tpu.matmul %60, %12, %cst_28 {dimension_numbers = #tpu.dot_dimension_numbers<[1], [0], [0], [1], [0, 0, 1, 1], [], []>} : vector<8x128xbf16>, vector<128x384xbf16>, vector<8x384xf32> -> vector<8x384xf32>
    %62 = vector.broadcast %13 : vector<1x384xf32> to vector<8x384xf32>
    %63 = arith.addf %61, %62 : vector<8x384xf32>
    %64 = vector.extract_strided_slice %59 {offsets = [0, 0], sizes = [8, 128], strides = [1, 1]} : vector<8x384xf32> to vector<8x128xf32>
    %65 = vector.extract_strided_slice %63 {offsets = [0, 0], sizes = [8, 128], strides = [1, 1]} : vector<8x384xf32> to vector<8x128xf32>
    %66 = arith.addf %64, %65 : vector<8x128xf32>
    %67 = arith.negf %66 : vector<8x128xf32>
    %68 = math.exp %67 : vector<8x128xf32>
    %cst_29 = arith.constant 1.000000e+00 : f32
    %69 = vector.broadcast %cst_29 : f32 to vector<8x128xf32>
    %70 = arith.addf %69, %68 : vector<8x128xf32>
    %71 = arith.divf %69, %70 : vector<8x128xf32>
    %72 = vector.extract_strided_slice %59 {offsets = [0, 128], sizes = [8, 128], strides = [1, 1]} : vector<8x384xf32> to vector<8x128xf32>
    %73 = vector.extract_strided_slice %63 {offsets = [0, 128], sizes = [8, 128], strides = [1, 1]} : vector<8x384xf32> to vector<8x128xf32>
    %74 = arith.addf %72, %73 : vector<8x128xf32>
    %75 = arith.negf %74 : vector<8x128xf32>
    %76 = math.exp %75 : vector<8x128xf32>
    %cst_30 = arith.constant 1.000000e+00 : f32
    %77 = vector.broadcast %cst_30 : f32 to vector<8x128xf32>
    %78 = arith.addf %77, %76 : vector<8x128xf32>
    %79 = arith.divf %77, %78 : vector<8x128xf32>
    %80 = vector.extract_strided_slice %59 {offsets = [0, 256], sizes = [8, 128], strides = [1, 1]} : vector<8x384xf32> to vector<8x128xf32>
    %81 = vector.extract_strided_slice %63 {offsets = [0, 256], sizes = [8, 128], strides = [1, 1]} : vector<8x384xf32> to vector<8x128xf32>
    %82 = arith.mulf %71, %81 : vector<8x128xf32>
    %83 = arith.addf %80, %82 : vector<8x128xf32>
    %84 = math.tanh %83 : vector<8x128xf32>
    %85 = arith.subf %58, %84 : vector<8x128xf32>
    %86 = arith.mulf %79, %85 : vector<8x128xf32>
    %87 = arith.addf %84, %86 : vector<8x128xf32>
    %c1_i32 = arith.constant 1 : i32
    %88 = arith.addi %14, %c1_i32 : i32
    %89 = vector.broadcast %88 : i32 to vector<8x1xi32>
    %90 = arith.cmpi sgt, %11, %89 : vector<8x1xi32>
    %cst_31 = arith.constant 0.000000e+00 : f32
    %91 = vector.shape_cast %90 : vector<8x1xi1> to vector<8x1xi1>
    %92 = vector.broadcast %91 : vector<8x1xi1> to vector<8x128xi1>
    %93 = vector.broadcast %cst_31 : f32 to vector<8x128xf32>
    %94 = arith.select %92, %87, %93 : vector<8x128xi1>, vector<8x128xf32>
    %95 = arith.truncf %94 : vector<8x128xf32> to vector<8x128xbf16>
    %c0_32 = arith.constant 0 : index
    %c1 = arith.constant 1 : index
    %c0_33 = arith.constant 0 : index
    %96 = vector.load %arg8[%c0_32, %c1, %c0_33] : memref<8x8x128xbf16, #tpu.memory_space<vmem>>, vector<8x1x128xbf16>
    %97 = vector.shape_cast %96 : vector<8x1x128xbf16> to vector<8x128xbf16>
    %98 = vector.shape_cast %95 : vector<8x128xbf16> to vector<8x1x128xbf16>
    tpu.vector_store %arg8[%c0_32, %c1, %c0_33], %98 {strides = array<i32>} : memref<8x8x128xbf16, #tpu.memory_space<vmem>>, vector<8x1x128xbf16>,
    %99 = vector.shape_cast %90 : vector<8x1xi1> to vector<8x1xi1>
    %100 = vector.broadcast %99 : vector<8x1xi1> to vector<8x128xi1>
    %101 = arith.select %100, %87, %58 : vector<8x128xi1>, vector<8x128xf32>
    %c16 = arith.constant 16 : index
    %c0_34 = arith.constant 0 : index
    %102 = vector.load %arg10[%c16, %c0_34] : memref<64x384xf32, #tpu.memory_space<vmem>>, vector<8x384xf32>
    %103 = arith.truncf %101 : vector<8x128xf32> to vector<8x128xbf16>
    %cst_35 = arith.constant dense<0.000000e+00> : vector<8x384xf32>
    %104 = tpu.matmul %103, %12, %cst_35 {dimension_numbers = #tpu.dot_dimension_numbers<[1], [0], [0], [1], [0, 0, 1, 1], [], []>} : vector<8x128xbf16>, vector<128x384xbf16>, vector<8x384xf32> -> vector<8x384xf32>
    %105 = vector.broadcast %13 : vector<1x384xf32> to vector<8x384xf32>
    %106 = arith.addf %104, %105 : vector<8x384xf32>
    %107 = vector.extract_strided_slice %102 {offsets = [0, 0], sizes = [8, 128], strides = [1, 1]} : vector<8x384xf32> to vector<8x128xf32>
    %108 = vector.extract_strided_slice %106 {offsets = [0, 0], sizes = [8, 128], strides = [1, 1]} : vector<8x384xf32> to vector<8x128xf32>
    %109 = arith.addf %107, %108 : vector<8x128xf32>
    %110 = arith.negf %109 : vector<8x128xf32>
    %111 = math.exp %110 : vector<8x128xf32>
    %cst_36 = arith.constant 1.000000e+00 : f32
    %112 = vector.broadcast %cst_36 : f32 to vector<8x128xf32>
    %113 = arith.addf %112, %111 : vector<8x128xf32>
    %114 = arith.divf %112, %113 : vector<8x128xf32>
    %115 = vector.extract_strided_slice %102 {offsets = [0, 128], sizes = [8, 128], strides = [1, 1]} : vector<8x384xf32> to vector<8x128xf32>
    %116 = vector.extract_strided_slice %106 {offsets = [0, 128], sizes = [8, 128], strides = [1, 1]} : vector<8x384xf32> to vector<8x128xf32>
    %117 = arith.addf %115, %116 : vector<8x128xf32>
    %118 = arith.negf %117 : vector<8x128xf32>
    %119 = math.exp %118 : vector<8x128xf32>
    %cst_37 = arith.constant 1.000000e+00 : f32
    %120 = vector.broadcast %cst_37 : f32 to vector<8x128xf32>
    %121 = arith.addf %120, %119 : vector<8x128xf32>
    %122 = arith.divf %120, %121 : vector<8x128xf32>
    %123 = vector.extract_strided_slice %102 {offsets = [0, 256], sizes = [8, 128], strides = [1, 1]} : vector<8x384xf32> to vector<8x128xf32>
    %124 = vector.extract_strided_slice %106 {offsets = [0, 256], sizes = [8, 128], strides = [1, 1]} : vector<8x384xf32> to vector<8x128xf32>
    %125 = arith.mulf %114, %124 : vector<8x128xf32>
    %126 = arith.addf %123, %125 : vector<8x128xf32>
    %127 = math.tanh %126 : vector<8x128xf32>
    %128 = arith.subf %101, %127 : vector<8x128xf32>
    %129 = arith.mulf %122, %128 : vector<8x128xf32>
    %130 = arith.addf %127, %129 : vector<8x128xf32>
    %c2_i32 = arith.constant 2 : i32
    %131 = arith.addi %14, %c2_i32 : i32
    %132 = vector.broadcast %131 : i32 to vector<8x1xi32>
    %133 = arith.cmpi sgt, %11, %132 : vector<8x1xi32>
    %cst_38 = arith.constant 0.000000e+00 : f32
    %134 = vector.shape_cast %133 : vector<8x1xi1> to vector<8x1xi1>
    %135 = vector.broadcast %134 : vector<8x1xi1> to vector<8x128xi1>
    %136 = vector.broadcast %cst_38 : f32 to vector<8x128xf32>
    %137 = arith.select %135, %130, %136 : vector<8x128xi1>, vector<8x128xf32>
    %138 = arith.truncf %137 : vector<8x128xf32> to vector<8x128xbf16>
    %c0_39 = arith.constant 0 : index
    %c2 = arith.constant 2 : index
    %c0_40 = arith.constant 0 : index
    %139 = vector.load %arg8[%c0_39, %c2, %c0_40] : memref<8x8x128xbf16, #tpu.memory_space<vmem>>, vector<8x1x128xbf16>
    %140 = vector.shape_cast %139 : vector<8x1x128xbf16> to vector<8x128xbf16>
    %141 = vector.shape_cast %138 : vector<8x128xbf16> to vector<8x1x128xbf16>
    tpu.vector_store %arg8[%c0_39, %c2, %c0_40], %141 {strides = array<i32>} : memref<8x8x128xbf16, #tpu.memory_space<vmem>>, vector<8x1x128xbf16>,
    %142 = vector.shape_cast %133 : vector<8x1xi1> to vector<8x1xi1>
    %143 = vector.broadcast %142 : vector<8x1xi1> to vector<8x128xi1>
    %144 = arith.select %143, %130, %101 : vector<8x128xi1>, vector<8x128xf32>
    %c24 = arith.constant 24 : index
    %c0_41 = arith.constant 0 : index
    %145 = vector.load %arg10[%c24, %c0_41] : memref<64x384xf32, #tpu.memory_space<vmem>>, vector<8x384xf32>
    %146 = arith.truncf %144 : vector<8x128xf32> to vector<8x128xbf16>
    %cst_42 = arith.constant dense<0.000000e+00> : vector<8x384xf32>
    %147 = tpu.matmul %146, %12, %cst_42 {dimension_numbers = #tpu.dot_dimension_numbers<[1], [0], [0], [1], [0, 0, 1, 1], [], []>} : vector<8x128xbf16>, vector<128x384xbf16>, vector<8x384xf32> -> vector<8x384xf32>
    %148 = vector.broadcast %13 : vector<1x384xf32> to vector<8x384xf32>
    %149 = arith.addf %147, %148 : vector<8x384xf32>
    %150 = vector.extract_strided_slice %145 {offsets = [0, 0], sizes = [8, 128], strides = [1, 1]} : vector<8x384xf32> to vector<8x128xf32>
    %151 = vector.extract_strided_slice %149 {offsets = [0, 0], sizes = [8, 128], strides = [1, 1]} : vector<8x384xf32> to vector<8x128xf32>
    %152 = arith.addf %150, %151 : vector<8x128xf32>
    %153 = arith.negf %152 : vector<8x128xf32>
    %154 = math.exp %153 : vector<8x128xf32>
    %cst_43 = arith.constant 1.000000e+00 : f32
    %155 = vector.broadcast %cst_43 : f32 to vector<8x128xf32>
    %156 = arith.addf %155, %154 : vector<8x128xf32>
    %157 = arith.divf %155, %156 : vector<8x128xf32>
    %158 = vector.extract_strided_slice %145 {offsets = [0, 128], sizes = [8, 128], strides = [1, 1]} : vector<8x384xf32> to vector<8x128xf32>
    %159 = vector.extract_strided_slice %149 {offsets = [0, 128], sizes = [8, 128], strides = [1, 1]} : vector<8x384xf32> to vector<8x128xf32>
    %160 = arith.addf %158, %159 : vector<8x128xf32>
    %161 = arith.negf %160 : vector<8x128xf32>
    %162 = math.exp %161 : vector<8x128xf32>
    %cst_44 = arith.constant 1.000000e+00 : f32
    %163 = vector.broadcast %cst_44 : f32 to vector<8x128xf32>
    %164 = arith.addf %163, %162 : vector<8x128xf32>
    %165 = arith.divf %163, %164 : vector<8x128xf32>
    %166 = vector.extract_strided_slice %145 {offsets = [0, 256], sizes = [8, 128], strides = [1, 1]} : vector<8x384xf32> to vector<8x128xf32>
    %167 = vector.extract_strided_slice %149 {offsets = [0, 256], sizes = [8, 128], strides = [1, 1]} : vector<8x384xf32> to vector<8x128xf32>
    %168 = arith.mulf %157, %167 : vector<8x128xf32>
    %169 = arith.addf %166, %168 : vector<8x128xf32>
    %170 = math.tanh %169 : vector<8x128xf32>
    %171 = arith.subf %144, %170 : vector<8x128xf32>
    %172 = arith.mulf %165, %171 : vector<8x128xf32>
    %173 = arith.addf %170, %172 : vector<8x128xf32>
    %c3_i32 = arith.constant 3 : i32
    %174 = arith.addi %14, %c3_i32 : i32
    %175 = vector.broadcast %174 : i32 to vector<8x1xi32>
    %176 = arith.cmpi sgt, %11, %175 : vector<8x1xi32>
    %cst_45 = arith.constant 0.000000e+00 : f32
    %177 = vector.shape_cast %176 : vector<8x1xi1> to vector<8x1xi1>
    %178 = vector.broadcast %177 : vector<8x1xi1> to vector<8x128xi1>
    %179 = vector.broadcast %cst_45 : f32 to vector<8x128xf32>
    %180 = arith.select %178, %173, %179 : vector<8x128xi1>, vector<8x128xf32>
    %181 = arith.truncf %180 : vector<8x128xf32> to vector<8x128xbf16>
    %c0_46 = arith.constant 0 : index
    %c3 = arith.constant 3 : index
    %c0_47 = arith.constant 0 : index
    %182 = vector.load %arg8[%c0_46, %c3, %c0_47] : memref<8x8x128xbf16, #tpu.memory_space<vmem>>, vector<8x1x128xbf16>
    %183 = vector.shape_cast %182 : vector<8x1x128xbf16> to vector<8x128xbf16>
    %184 = vector.shape_cast %181 : vector<8x128xbf16> to vector<8x1x128xbf16>
    tpu.vector_store %arg8[%c0_46, %c3, %c0_47], %184 {strides = array<i32>} : memref<8x8x128xbf16, #tpu.memory_space<vmem>>, vector<8x1x128xbf16>,
    %185 = vector.shape_cast %176 : vector<8x1xi1> to vector<8x1xi1>
    %186 = vector.broadcast %185 : vector<8x1xi1> to vector<8x128xi1>
    %187 = arith.select %186, %173, %144 : vector<8x128xi1>, vector<8x128xf32>
    %c32 = arith.constant 32 : index
    %c0_48 = arith.constant 0 : index
    %188 = vector.load %arg10[%c32, %c0_48] : memref<64x384xf32, #tpu.memory_space<vmem>>, vector<8x384xf32>
    %189 = arith.truncf %187 : vector<8x128xf32> to vector<8x128xbf16>
    %cst_49 = arith.constant dense<0.000000e+00> : vector<8x384xf32>
    %190 = tpu.matmul %189, %12, %cst_49 {dimension_numbers = #tpu.dot_dimension_numbers<[1], [0], [0], [1], [0, 0, 1, 1], [], []>} : vector<8x128xbf16>, vector<128x384xbf16>, vector<8x384xf32> -> vector<8x384xf32>
    %191 = vector.broadcast %13 : vector<1x384xf32> to vector<8x384xf32>
    %192 = arith.addf %190, %191 : vector<8x384xf32>
    %193 = vector.extract_strided_slice %188 {offsets = [0, 0], sizes = [8, 128], strides = [1, 1]} : vector<8x384xf32> to vector<8x128xf32>
    %194 = vector.extract_strided_slice %192 {offsets = [0, 0], sizes = [8, 128], strides = [1, 1]} : vector<8x384xf32> to vector<8x128xf32>
    %195 = arith.addf %193, %194 : vector<8x128xf32>
    %196 = arith.negf %195 : vector<8x128xf32>
    %197 = math.exp %196 : vector<8x128xf32>
    %cst_50 = arith.constant 1.000000e+00 : f32
    %198 = vector.broadcast %cst_50 : f32 to vector<8x128xf32>
    %199 = arith.addf %198, %197 : vector<8x128xf32>
    %200 = arith.divf %198, %199 : vector<8x128xf32>
    %201 = vector.extract_strided_slice %188 {offsets = [0, 128], sizes = [8, 128], strides = [1, 1]} : vector<8x384xf32> to vector<8x128xf32>
    %202 = vector.extract_strided_slice %192 {offsets = [0, 128], sizes = [8, 128], strides = [1, 1]} : vector<8x384xf32> to vector<8x128xf32>
    %203 = arith.addf %201, %202 : vector<8x128xf32>
    %204 = arith.negf %203 : vector<8x128xf32>
    %205 = math.exp %204 : vector<8x128xf32>
    %cst_51 = arith.constant 1.000000e+00 : f32
    %206 = vector.broadcast %cst_51 : f32 to vector<8x128xf32>
    %207 = arith.addf %206, %205 : vector<8x128xf32>
    %208 = arith.divf %206, %207 : vector<8x128xf32>
    %209 = vector.extract_strided_slice %188 {offsets = [0, 256], sizes = [8, 128], strides = [1, 1]} : vector<8x384xf32> to vector<8x128xf32>
    %210 = vector.extract_strided_slice %192 {offsets = [0, 256], sizes = [8, 128], strides = [1, 1]} : vector<8x384xf32> to vector<8x128xf32>
    %211 = arith.mulf %200, %210 : vector<8x128xf32>
    %212 = arith.addf %209, %211 : vector<8x128xf32>
    %213 = math.tanh %212 : vector<8x128xf32>
    %214 = arith.subf %187, %213 : vector<8x128xf32>
    %215 = arith.mulf %208, %214 : vector<8x128xf32>
    %216 = arith.addf %213, %215 : vector<8x128xf32>
    %c4_i32 = arith.constant 4 : i32
    %217 = arith.addi %14, %c4_i32 : i32
    %218 = vector.broadcast %217 : i32 to vector<8x1xi32>
    %219 = arith.cmpi sgt, %11, %218 : vector<8x1xi32>
    %cst_52 = arith.constant 0.000000e+00 : f32
    %220 = vector.shape_cast %219 : vector<8x1xi1> to vector<8x1xi1>
    %221 = vector.broadcast %220 : vector<8x1xi1> to vector<8x128xi1>
    %222 = vector.broadcast %cst_52 : f32 to vector<8x128xf32>
    %223 = arith.select %221, %216, %222 : vector<8x128xi1>, vector<8x128xf32>
    %224 = arith.truncf %223 : vector<8x128xf32> to vector<8x128xbf16>
    %c0_53 = arith.constant 0 : index
    %c4 = arith.constant 4 : index
    %c0_54 = arith.constant 0 : index
    %225 = vector.load %arg8[%c0_53, %c4, %c0_54] : memref<8x8x128xbf16, #tpu.memory_space<vmem>>, vector<8x1x128xbf16>
    %226 = vector.shape_cast %225 : vector<8x1x128xbf16> to vector<8x128xbf16>
    %227 = vector.shape_cast %224 : vector<8x128xbf16> to vector<8x1x128xbf16>
    tpu.vector_store %arg8[%c0_53, %c4, %c0_54], %227 {strides = array<i32>} : memref<8x8x128xbf16, #tpu.memory_space<vmem>>, vector<8x1x128xbf16>,
    %228 = vector.shape_cast %219 : vector<8x1xi1> to vector<8x1xi1>
    %229 = vector.broadcast %228 : vector<8x1xi1> to vector<8x128xi1>
    %230 = arith.select %229, %216, %187 : vector<8x128xi1>, vector<8x128xf32>
    %c40 = arith.constant 40 : index
    %c0_55 = arith.constant 0 : index
    %231 = vector.load %arg10[%c40, %c0_55] : memref<64x384xf32, #tpu.memory_space<vmem>>, vector<8x384xf32>
    %232 = arith.truncf %230 : vector<8x128xf32> to vector<8x128xbf16>
    %cst_56 = arith.constant dense<0.000000e+00> : vector<8x384xf32>
    %233 = tpu.matmul %232, %12, %cst_56 {dimension_numbers = #tpu.dot_dimension_numbers<[1], [0], [0], [1], [0, 0, 1, 1], [], []>} : vector<8x128xbf16>, vector<128x384xbf16>, vector<8x384xf32> -> vector<8x384xf32>
    %234 = vector.broadcast %13 : vector<1x384xf32> to vector<8x384xf32>
    %235 = arith.addf %233, %234 : vector<8x384xf32>
    %236 = vector.extract_strided_slice %231 {offsets = [0, 0], sizes = [8, 128], strides = [1, 1]} : vector<8x384xf32> to vector<8x128xf32>
    %237 = vector.extract_strided_slice %235 {offsets = [0, 0], sizes = [8, 128], strides = [1, 1]} : vector<8x384xf32> to vector<8x128xf32>
    %238 = arith.addf %236, %237 : vector<8x128xf32>
    %239 = arith.negf %238 : vector<8x128xf32>
    %240 = math.exp %239 : vector<8x128xf32>
    %cst_57 = arith.constant 1.000000e+00 : f32
    %241 = vector.broadcast %cst_57 : f32 to vector<8x128xf32>
    %242 = arith.addf %241, %240 : vector<8x128xf32>
    %243 = arith.divf %241, %242 : vector<8x128xf32>
    %244 = vector.extract_strided_slice %231 {offsets = [0, 128], sizes = [8, 128], strides = [1, 1]} : vector<8x384xf32> to vector<8x128xf32>
    %245 = vector.extract_strided_slice %235 {offsets = [0, 128], sizes = [8, 128], strides = [1, 1]} : vector<8x384xf32> to vector<8x128xf32>
    %246 = arith.addf %244, %245 : vector<8x128xf32>
    %247 = arith.negf %246 : vector<8x128xf32>
    %248 = math.exp %247 : vector<8x128xf32>
    %cst_58 = arith.constant 1.000000e+00 : f32
    %249 = vector.broadcast %cst_58 : f32 to vector<8x128xf32>
    %250 = arith.addf %249, %248 : vector<8x128xf32>
    %251 = arith.divf %249, %250 : vector<8x128xf32>
    %252 = vector.extract_strided_slice %231 {offsets = [0, 256], sizes = [8, 128], strides = [1, 1]} : vector<8x384xf32> to vector<8x128xf32>
    %253 = vector.extract_strided_slice %235 {offsets = [0, 256], sizes = [8, 128], strides = [1, 1]} : vector<8x384xf32> to vector<8x128xf32>
    %254 = arith.mulf %243, %253 : vector<8x128xf32>
    %255 = arith.addf %252, %254 : vector<8x128xf32>
    %256 = math.tanh %255 : vector<8x128xf32>
    %257 = arith.subf %230, %256 : vector<8x128xf32>
    %258 = arith.mulf %251, %257 : vector<8x128xf32>
    %259 = arith.addf %256, %258 : vector<8x128xf32>
    %c5_i32 = arith.constant 5 : i32
    %260 = arith.addi %14, %c5_i32 : i32
    %261 = vector.broadcast %260 : i32 to vector<8x1xi32>
    %262 = arith.cmpi sgt, %11, %261 : vector<8x1xi32>
    %cst_59 = arith.constant 0.000000e+00 : f32
    %263 = vector.shape_cast %262 : vector<8x1xi1> to vector<8x1xi1>
    %264 = vector.broadcast %263 : vector<8x1xi1> to vector<8x128xi1>
    %265 = vector.broadcast %cst_59 : f32 to vector<8x128xf32>
    %266 = arith.select %264, %259, %265 : vector<8x128xi1>, vector<8x128xf32>
    %267 = arith.truncf %266 : vector<8x128xf32> to vector<8x128xbf16>
    %c0_60 = arith.constant 0 : index
    %c5 = arith.constant 5 : index
    %c0_61 = arith.constant 0 : index
    %268 = vector.load %arg8[%c0_60, %c5, %c0_61] : memref<8x8x128xbf16, #tpu.memory_space<vmem>>, vector<8x1x128xbf16>
    %269 = vector.shape_cast %268 : vector<8x1x128xbf16> to vector<8x128xbf16>
    %270 = vector.shape_cast %267 : vector<8x128xbf16> to vector<8x1x128xbf16>
    tpu.vector_store %arg8[%c0_60, %c5, %c0_61], %270 {strides = array<i32>} : memref<8x8x128xbf16, #tpu.memory_space<vmem>>, vector<8x1x128xbf16>,
    %271 = vector.shape_cast %262 : vector<8x1xi1> to vector<8x1xi1>
    %272 = vector.broadcast %271 : vector<8x1xi1> to vector<8x128xi1>
    %273 = arith.select %272, %259, %230 : vector<8x128xi1>, vector<8x128xf32>
    %c48 = arith.constant 48 : index
    %c0_62 = arith.constant 0 : index
    %274 = vector.load %arg10[%c48, %c0_62] : memref<64x384xf32, #tpu.memory_space<vmem>>, vector<8x384xf32>
    %275 = arith.truncf %273 : vector<8x128xf32> to vector<8x128xbf16>
    %cst_63 = arith.constant dense<0.000000e+00> : vector<8x384xf32>
    %276 = tpu.matmul %275, %12, %cst_63 {dimension_numbers = #tpu.dot_dimension_numbers<[1], [0], [0], [1], [0, 0, 1, 1], [], []>} : vector<8x128xbf16>, vector<128x384xbf16>, vector<8x384xf32> -> vector<8x384xf32>
    %277 = vector.broadcast %13 : vector<1x384xf32> to vector<8x384xf32>
    %278 = arith.addf %276, %277 : vector<8x384xf32>
    %279 = vector.extract_strided_slice %274 {offsets = [0, 0], sizes = [8, 128], strides = [1, 1]} : vector<8x384xf32> to vector<8x128xf32>
    %280 = vector.extract_strided_slice %278 {offsets = [0, 0], sizes = [8, 128], strides = [1, 1]} : vector<8x384xf32> to vector<8x128xf32>
    %281 = arith.addf %279, %280 : vector<8x128xf32>
    %282 = arith.negf %281 : vector<8x128xf32>
    %283 = math.exp %282 : vector<8x128xf32>
    %cst_64 = arith.constant 1.000000e+00 : f32
    %284 = vector.broadcast %cst_64 : f32 to vector<8x128xf32>
    %285 = arith.addf %284, %283 : vector<8x128xf32>
    %286 = arith.divf %284, %285 : vector<8x128xf32>
    %287 = vector.extract_strided_slice %274 {offsets = [0, 128], sizes = [8, 128], strides = [1, 1]} : vector<8x384xf32> to vector<8x128xf32>
    %288 = vector.extract_strided_slice %278 {offsets = [0, 128], sizes = [8, 128], strides = [1, 1]} : vector<8x384xf32> to vector<8x128xf32>
    %289 = arith.addf %287, %288 : vector<8x128xf32>
    %290 = arith.negf %289 : vector<8x128xf32>
    %291 = math.exp %290 : vector<8x128xf32>
    %cst_65 = arith.constant 1.000000e+00 : f32
    %292 = vector.broadcast %cst_65 : f32 to vector<8x128xf32>
    %293 = arith.addf %292, %291 : vector<8x128xf32>
    %294 = arith.divf %292, %293 : vector<8x128xf32>
    %295 = vector.extract_strided_slice %274 {offsets = [0, 256], sizes = [8, 128], strides = [1, 1]} : vector<8x384xf32> to vector<8x128xf32>
    %296 = vector.extract_strided_slice %278 {offsets = [0, 256], sizes = [8, 128], strides = [1, 1]} : vector<8x384xf32> to vector<8x128xf32>
    %297 = arith.mulf %286, %296 : vector<8x128xf32>
    %298 = arith.addf %295, %297 : vector<8x128xf32>
    %299 = math.tanh %298 : vector<8x128xf32>
    %300 = arith.subf %273, %299 : vector<8x128xf32>
    %301 = arith.mulf %294, %300 : vector<8x128xf32>
    %302 = arith.addf %299, %301 : vector<8x128xf32>
    %c6_i32 = arith.constant 6 : i32
    %303 = arith.addi %14, %c6_i32 : i32
    %304 = vector.broadcast %303 : i32 to vector<8x1xi32>
    %305 = arith.cmpi sgt, %11, %304 : vector<8x1xi32>
    %cst_66 = arith.constant 0.000000e+00 : f32
    %306 = vector.shape_cast %305 : vector<8x1xi1> to vector<8x1xi1>
    %307 = vector.broadcast %306 : vector<8x1xi1> to vector<8x128xi1>
    %308 = vector.broadcast %cst_66 : f32 to vector<8x128xf32>
    %309 = arith.select %307, %302, %308 : vector<8x128xi1>, vector<8x128xf32>
    %310 = arith.truncf %309 : vector<8x128xf32> to vector<8x128xbf16>
    %c0_67 = arith.constant 0 : index
    %c6 = arith.constant 6 : index
    %c0_68 = arith.constant 0 : index
    %311 = vector.load %arg8[%c0_67, %c6, %c0_68] : memref<8x8x128xbf16, #tpu.memory_space<vmem>>, vector<8x1x128xbf16>
    %312 = vector.shape_cast %311 : vector<8x1x128xbf16> to vector<8x128xbf16>
    %313 = vector.shape_cast %310 : vector<8x128xbf16> to vector<8x1x128xbf16>
    tpu.vector_store %arg8[%c0_67, %c6, %c0_68], %313 {strides = array<i32>} : memref<8x8x128xbf16, #tpu.memory_space<vmem>>, vector<8x1x128xbf16>,
    %314 = vector.shape_cast %305 : vector<8x1xi1> to vector<8x1xi1>
    %315 = vector.broadcast %314 : vector<8x1xi1> to vector<8x128xi1>
    %316 = arith.select %315, %302, %273 : vector<8x128xi1>, vector<8x128xf32>
    %c56 = arith.constant 56 : index
    %c0_69 = arith.constant 0 : index
    %317 = vector.load %arg10[%c56, %c0_69] : memref<64x384xf32, #tpu.memory_space<vmem>>, vector<8x384xf32>
    %318 = arith.truncf %316 : vector<8x128xf32> to vector<8x128xbf16>
    %cst_70 = arith.constant dense<0.000000e+00> : vector<8x384xf32>
    %319 = tpu.matmul %318, %12, %cst_70 {dimension_numbers = #tpu.dot_dimension_numbers<[1], [0], [0], [1], [0, 0, 1, 1], [], []>} : vector<8x128xbf16>, vector<128x384xbf16>, vector<8x384xf32> -> vector<8x384xf32>
    %320 = vector.broadcast %13 : vector<1x384xf32> to vector<8x384xf32>
    %321 = arith.addf %319, %320 : vector<8x384xf32>
    %322 = vector.extract_strided_slice %317 {offsets = [0, 0], sizes = [8, 128], strides = [1, 1]} : vector<8x384xf32> to vector<8x128xf32>
    %323 = vector.extract_strided_slice %321 {offsets = [0, 0], sizes = [8, 128], strides = [1, 1]} : vector<8x384xf32> to vector<8x128xf32>
    %324 = arith.addf %322, %323 : vector<8x128xf32>
    %325 = arith.negf %324 : vector<8x128xf32>
    %326 = math.exp %325 : vector<8x128xf32>
    %cst_71 = arith.constant 1.000000e+00 : f32
    %327 = vector.broadcast %cst_71 : f32 to vector<8x128xf32>
    %328 = arith.addf %327, %326 : vector<8x128xf32>
    %329 = arith.divf %327, %328 : vector<8x128xf32>
    %330 = vector.extract_strided_slice %317 {offsets = [0, 128], sizes = [8, 128], strides = [1, 1]} : vector<8x384xf32> to vector<8x128xf32>
    %331 = vector.extract_strided_slice %321 {offsets = [0, 128], sizes = [8, 128], strides = [1, 1]} : vector<8x384xf32> to vector<8x128xf32>
    %332 = arith.addf %330, %331 : vector<8x128xf32>
    %333 = arith.negf %332 : vector<8x128xf32>
    %334 = math.exp %333 : vector<8x128xf32>
    %cst_72 = arith.constant 1.000000e+00 : f32
    %335 = vector.broadcast %cst_72 : f32 to vector<8x128xf32>
    %336 = arith.addf %335, %334 : vector<8x128xf32>
    %337 = arith.divf %335, %336 : vector<8x128xf32>
    %338 = vector.extract_strided_slice %317 {offsets = [0, 256], sizes = [8, 128], strides = [1, 1]} : vector<8x384xf32> to vector<8x128xf32>
    %339 = vector.extract_strided_slice %321 {offsets = [0, 256], sizes = [8, 128], strides = [1, 1]} : vector<8x384xf32> to vector<8x128xf32>
    %340 = arith.mulf %329, %339 : vector<8x128xf32>
    %341 = arith.addf %338, %340 : vector<8x128xf32>
    %342 = math.tanh %341 : vector<8x128xf32>
    %343 = arith.subf %316, %342 : vector<8x128xf32>
    %344 = arith.mulf %337, %343 : vector<8x128xf32>
    %345 = arith.addf %342, %344 : vector<8x128xf32>
    %c7_i32 = arith.constant 7 : i32
    %346 = arith.addi %14, %c7_i32 : i32
    %347 = vector.broadcast %346 : i32 to vector<8x1xi32>
    %348 = arith.cmpi sgt, %11, %347 : vector<8x1xi32>
    %cst_73 = arith.constant 0.000000e+00 : f32
    %349 = vector.shape_cast %348 : vector<8x1xi1> to vector<8x1xi1>
    %350 = vector.broadcast %349 : vector<8x1xi1> to vector<8x128xi1>
    %351 = vector.broadcast %cst_73 : f32 to vector<8x128xf32>
    %352 = arith.select %350, %345, %351 : vector<8x128xi1>, vector<8x128xf32>
    %353 = arith.truncf %352 : vector<8x128xf32> to vector<8x128xbf16>
    %c0_74 = arith.constant 0 : index
    %c7 = arith.constant 7 : index
    %c0_75 = arith.constant 0 : index
    %354 = vector.load %arg8[%c0_74, %c7, %c0_75] : memref<8x8x128xbf16, #tpu.memory_space<vmem>>, vector<8x1x128xbf16>
    %355 = vector.shape_cast %354 : vector<8x1x128xbf16> to vector<8x128xbf16>
    %356 = vector.shape_cast %353 : vector<8x128xbf16> to vector<8x1x128xbf16>
    tpu.vector_store %arg8[%c0_74, %c7, %c0_75], %356 {strides = array<i32>} : memref<8x8x128xbf16, #tpu.memory_space<vmem>>, vector<8x1x128xbf16>,
    %357 = vector.shape_cast %348 : vector<8x1xi1> to vector<8x1xi1>
    %358 = vector.broadcast %357 : vector<8x1xi1> to vector<8x128xi1>
    %359 = arith.select %358, %345, %316 : vector<8x128xi1>, vector<8x128xf32>
    %c0_76 = arith.constant 0 : index
    %c0_77 = arith.constant 0 : index
    %360 = vector.load %arg9[%c0_76, %c0_77] : memref<8x128xf32, #tpu.memory_space<vmem>>, vector<8x128xf32>
    tpu.vector_store %arg9[%c0_76, %c0_77], %359 {strides = array<i32>} : memref<8x128xf32, #tpu.memory_space<vmem>>, vector<8x128xf32>,
    return
  }
  func.func @transform_0(%arg0: i32, %arg1: i32) -> (i32, i32) {
    %c0_i32 = arith.constant 0 : i32
    %c0_i32_0 = arith.constant 0 : i32
    return %arg0, %c0_i32 : i32, i32
  }
  func.func @transform_1(%arg0: i32, %arg1: i32) -> (i32, i32, i32) {
    %c0_i32 = arith.constant 0 : i32
    %c0_i32_0 = arith.constant 0 : i32
    return %arg1, %arg0, %c0_i32 : i32, i32, i32
  }
  func.func @transform_2(%arg0: i32, %arg1: i32) -> (i32, i32) {
    %c0_i32 = arith.constant 0 : i32
    %c0_i32_0 = arith.constant 0 : i32
    %c0_i32_1 = arith.constant 0 : i32
    return %c0_i32, %c0_i32_0 : i32, i32
  }
  func.func @transform_3(%arg0: i32, %arg1: i32) -> (i32, i32) {
    %c0_i32 = arith.constant 0 : i32
    %c0_i32_0 = arith.constant 0 : i32
    %c0_i32_1 = arith.constant 0 : i32
    return %c0_i32, %c0_i32_0 : i32, i32
  }
  func.func @transform_4(%arg0: i32, %arg1: i32) -> (i32, i32) {
    %c0_i32 = arith.constant 0 : i32
    %c0_i32_0 = arith.constant 0 : i32
    %c0_i32_1 = arith.constant 0 : i32
    return %c0_i32, %c0_i32_0 : i32, i32
  }
  func.func @transform_5(%arg0: i32, %arg1: i32) -> (i32, i32) {
    %c0_i32 = arith.constant 0 : i32
    %c0_i32_0 = arith.constant 0 : i32
    %c0_i32_1 = arith.constant 0 : i32
    return %c0_i32, %c0_i32_0 : i32, i32
  }
  func.func @transform_6(%arg0: i32, %arg1: i32) -> (i32, i32, i32) {
    %c0_i32 = arith.constant 0 : i32
    %c0_i32_0 = arith.constant 0 : i32
    return %arg0, %arg1, %c0_i32 : i32, i32, i32
  }
}

</mosaic_0001>

<bundles_post_ra>
// kernel: decoder_forward.3
= control target key start
LH: loop header
LB: loop body
LE: loop exit
PB: predicated region body
PF: predicated region fallthrough
CT: control target
= control target key end

     0   :  { %8 = vsyncpa [#allocation4], 0  ;;  %s283_s0 = inlined_call_operand.vmem [shape: bf16[8,64], index: 0, kind: input, shape index: {}]   ;;  %s284_s1 = inlined_call_operand.hbm [shape: bf16[64,128], index: 1, kind: input, shape index: {}]   ;;  %s285_s2 = inlined_call_operand.hbm [shape: f32[1,128], index: 2, kind: input, shape index: {}]   ;;  %s286_s3 = inlined_call_operand.vmem [shape: bf16[8,128], index: 3, kind: output, shape index: {}]  }
   0x1   :  { %9 = vsyncpa [#allocation6], 0  ;;  %s227_s12 = smov [#allocation3]   ;;  %s179_s16 = scalar_lea.hbm %s284_s1, 512 }
   0x2   :  { %s17_s13 = sshll.u32 %s227_s12, 4  ;;  %p180_p0 = scmp.ne.s32.totalorder %s284_s1, %s179_s16  ;;  %s18_s13 = int_to_ptr.vmem [resolvable:$true] %s17_s13 }
   0x3   :  { %p183_p1 = scmp.lt.u32.totalorder %s179_s16, %s284_s1 }
   0x5   :  { %p185_p2 = pnand %p183_p1, %p180_p0 }
   0x7   :  { %188 = shalt.err (!%p185_p2)
}
   0x8   :  { %s189_s21 = scalar_lea.vmem %s18_s13, 512  ;;  %p194_p4 = scmp.lt.s32.totalorder %s18_s13, %s18_s13 }
   0x9   :  { %p190_p3 = scmp.ne.s32.totalorder %s18_s13, %s189_s21  ;;  %p195_p5 = scmp.lt.s32.totalorder %s189_s21, %s189_s21 }
   0xb   :  { %p196_p6 = por %p195_p5, %p194_p4 }
   0xd   :  { %p197_p7 = pnand %p196_p6, %p190_p3 }
   0xf   :  { %200 = shalt.err (!%p197_p7)
}
  0x10   :  { %s228_s22 = smov 64   ;;  %s229_s23 = smov 4  }
  0x11   :  { %23 = dma.hbm_to_vmem [thread:$0]  %s284_s1, 512, %s18_s13, [#allocation4], %s228_s22, %s228_s22, %s229_s23  }
  0x12   :  { %s230_s26 = smov [#allocation5]   ;;  %s201_s30 = scalar_lea.hbm %s285_s2, 16 }
  0x13   :  { %s30_s27 = sshll.u32 %s230_s26, 4  ;;  %p202_p8 = scmp.ne.s32.totalorder %s285_s2, %s201_s30  ;;  %s31_s27 = int_to_ptr.vmem [resolvable:$true] %s30_s27 }
  0x14   :  { %p205_p9 = scmp.lt.u32.totalorder %s201_s30, %s285_s2 }
  0x16   :  { %p207_p10 = pnand %p205_p9, %p202_p8 }
  0x18   :  { %210 = shalt.err (!%p207_p10)
}
  0x19   :  { %s211_s8 = scalar_lea.vmem %s31_s27, 16  ;;  %s215_s1 = scalar_lea.vmem %s31_s27, 32 }
  0x1a   :  { %p212_p11 = scmp.ne.s32.totalorder %s31_s27, %s211_s8  ;;  %p216_p12 = scmp.lt.s32.totalorder %s31_s27, %s31_s27 }
  0x1b   :  { %p217_p13 = scmp.lt.s32.totalorder %s215_s1, %s211_s8 }
  0x1d   :  { %p218_p0 = por %p217_p13, %p216_p12 }
  0x1f   :  { %p219_p1 = pnand %p218_p0, %p212_p11 }
  0x21   :  { %222 = shalt.err (!%p219_p1)
}
  0x22   :  { %33 = dma.hbm_to_vmem [thread:$0]  %s285_s2, 16, %s31_s27, [#allocation6]  }
  0x23   :  { %223 = dma.done.wait [#allocation4], 512  }
  0x24   :  { %224 = vsyncadd [#allocation4], 4294966784 }
  0x25   :  { %225 = dma.done.wait [#allocation6], 16  }
  0x26   :  { %226 = vsyncadd [#allocation6], 4294967280  ;;  %v231_v0 = vmov 0.0   ;;  %vm232_vm0 = vmmov 0   ;;  %v175_v1 = vld [vmem:[#allocation3] sm:$0xff]   ;;  %v176_v2 = vld [vmem:[#allocation3 + $0x8] sm:$0xff]  }
  0x27   :  { %157 = vmatprep.subr.bf16.mxu0 %v231_v0  ;;  %165 = vmatprep.mubr.msk.bf16.mxu0 %vm232_vm0, %v231_v0  ;;  %v177_v3 = vld [vmem:[#allocation3 + $0x10] sm:$0xff]   ;;  %v178_v4 = vld [vmem:[#allocation3 + $0x18] sm:$0xff]   ;;  %v47_v5 = vld [vmem:[%s283_s0] sm:$0xf]  ;;  %vm80_vm1 = vcmask 523264  }
  0x28   :  { %158 = vmatpush3.bf16.msra.mxu0 %v175_v1  ;;  %v151_v6 = vld [vmem:[#allocation5] ss:$0 sm:$0xff] }
  0x29   :  { %159 = vmatprep.subr.bf16.mxu0 %v231_v0 }
  0x2c   :  { %160 = vmatpush3.bf16.msra.mxu0 %v176_v2 }
  0x2d   :  { %161 = vmatprep.subr.bf16.mxu0 %v231_v0 }
  0x30   :  { %162 = vmatpush3.bf16.msra.mxu0 %v177_v3 }
  0x31   :  { %163 = vmatprep.subr.bf16.mxu0 %v231_v0 }
  0x34   :  { %164 = vmatpush3.bf16.msra.mxu0 %v178_v4 }
  0x37   :  { %166 = vmatmul.mubr.msk.bf16.vlgmr.msra.gmra.mrb[0].mxu0 %vm80_vm1, %v47_v5 }
 0x10a   :  { %v118_v7 = vpop.f32.mrb[0].mxu0 }
 0x10b   :  { %v137_v8 = vadd.f32 %v151_v6, %v118_v7  ;;  %v167_v9 = vpop.f32.mrb[1].mxu0 }
 0x10c   :  { %v121_v10 = vpop.f32.mrb[2].mxu0 }
 0x10d   :  { %v138_v11 = vpack.c.bf16 %v137_v8, %v137_v8  ;;  %v168_v12 = vpop.f32.mrb[3].mxu0 }
 0x10f   :  { %139 = vst [vmem:[%s286_s3] sm:$0xf] %v138_v11 }
 0x110   :  { %144 = vsyncpa [#allocation4], 1 }
 0x111   :  { %145 = vsyncpa [#allocation6], 1 }

// kernel: decoder_forward.5
= control target key start
LH: loop header
LB: loop body
LE: loop exit
PB: predicated region body
PF: predicated region fallthrough
CT: control target
= control target key end

     0   :  { %s1355_s12 = smov 0   ;;  %s1357_s13 = smov 0   ;;  %s1697_s0 = inlined_call_operand.vmem [shape: bf16[64,128], index: 0, kind: input, shape index: {}]   ;;  %s1698_s1 = inlined_call_operand.vmem [shape: bf16[128,1024], index: 1, kind: input, shape index: {}]   ;;  %s1699_s2 = inlined_call_operand.vmem [shape: f32[1,1024], index: 2, kind: input, shape index: {}]   ;;  %s1700_s3 = inlined_call_operand.vmem [shape: f32[64,1024], index: 3, kind: output, shape index: {}]  }
   0x1   :  { %s1359_s14 = smov 0   ;;  %s1361_s15 = smov 0  }
   0x2   :  { %s1363_s16 = smov 0  }
   0x3 LB: > { %s28_s17 = sadd.s32 1, %s1328_s15  ;;  %s1146_s18 = sadd.s32 4294967295, %s1332_s16   ;;  %s1332_s16 = sphi %s1363_s16, %s13_s16   ;;  %s1328_s15 = sphi %s1361_s15, %s1705_s15   ;;  %s1324_s14 = sphi %s1359_s14, %s1704_s14   ;;  %s1320_s13 = sphi %s1357_s13, %s1703_s13   ;;  %s1316_s12 = sphi %s1355_s12, %s1702_s12  }
   0x4   : > { %p30_p0 = scmp.ge.s32.totalorder %s28_s17, 2  ;;  %p76_p1 = scmp.ne.s32.totalorder %s1320_s13, %s1316_s12 }
   0x5   : > { %p77_p2 = scmp.eq.s32.totalorder %s1332_s16, 0  ;;  %p134_p4 = scmp.eq.s32.totalorder %s1146_s18, 1 }
   0x6   : > { %s1707_s17 = smov (%p30_p0, %s28_s17), 0  ;;  %s69_s20 = sadd.s32 1, %s1320_s13 }
   0x7   : > { %p78_p3 = por %p77_p2, %p76_p1  ;;  %s65_s19 = ssub.s32 %s1328_s15, %s1707_s17 }
   0x8   : > { %p67_p5 = scmp.eq.s32.totalorder %s65_s19, 0  ;;  %p1390_p6 = por %p134_p4, %p76_p1 }
   0x9   : > { %p1150_p7 = scmp.ge.s32.totalorder %s1332_s16, 2 }
   0xa   : > { %s1395_s22 = scalar_select %p67_p5, %s1320_s13, %s69_s20  }
   0xb   : > { %168 = sbr.rel (%p1150_p7) target bundleno = 38 (0x26), region = 20 }
  0x12   : > { %171 = sbr.rel (!%p78_p3) target bundleno = 38 (0x26), region = 24  ;;  %s173_s23 = sand.u32 (%p78_p3), 1, %s1320_s13  }
  0x13   : > { %s1199_s24 = sshll.u32 (%p78_p3), %s1328_s15, 4  ;;  %s1151_s25 = sshll.u32 (%p78_p3), %s173_s23, 8 }
  0x14   : > { %s1403_s28 = scalar_lea.vmem (%p78_p3), %s1698_s1, %s1199_s24  ;;  %s1408_s29 = scalar_lea.vmem (%p78_p3), [#allocation3], %s1151_s25 }
  0x15   : > { %v194_v0 = vld [vmem:[%s1403_s28] sm:$0xff] (%p78_p3)  ;;  %v196_v1 = vld [vmem:[%s1403_s28 + $0x8] sm:$0xff] (%p78_p3) }
  0x16   : > { %v198_v2 = vld [vmem:[%s1403_s28 + $0x20] sm:$0xff] (%p78_p3)  ;;  %195 = vst [vmem:[%s1408_s29] sm:$0xff] (%p78_p3), %v194_v0  ;;  %197 = vst [vmem:[%s1408_s29 + $0x8] sm:$0xff] (%p78_p3), %v196_v1  ;;  %v200_v3 = vld [vmem:[%s1403_s28 + $0x28] sm:$0xff] (%p78_p3) }
  0x17   : > { %199 = vst [vmem:[%s1408_s29 + $0x10] sm:$0xff] (%p78_p3), %v198_v2  ;;  %v202_v4 = vld [vmem:[%s1403_s28 + $0x40] sm:$0xff] (%p78_p3)  ;;  %v204_v5 = vld [vmem:[%s1403_s28 + $0x48] sm:$0xff] (%p78_p3)  ;;  %201 = vst [vmem:[%s1408_s29 + $0x18] sm:$0xff] (%p78_p3), %v200_v3 }
  0x18   : > { %203 = vst [vmem:[%s1408_s29 + $0x20] sm:$0xff] (%p78_p3), %v202_v4  ;;  %205 = vst [vmem:[%s1408_s29 + $0x28] sm:$0xff] (%p78_p3), %v204_v5  ;;  %v206_v6 = vld [vmem:[%s1403_s28 + $0x60] sm:$0xff] (%p78_p3)  ;;  %v208_v7 = vld [vmem:[%s1403_s28 + $0x68] sm:$0xff] (%p78_p3) }
  0x19   : > { %v210_v8 = vld [vmem:[%s1403_s28 + $0x80] sm:$0xff]  ;;  %207 = vst [vmem:[%s1408_s29 + $0x30] sm:$0xff] %v206_v6  ;;  %209 = vst [vmem:[%s1408_s29 + $0x38] sm:$0xff] %v208_v7  ;;  %v212_v9 = vld [vmem:[%s1403_s28 + $0x88] sm:$0xff] }
  0x1a   : > { %211 = vst [vmem:[%s1408_s29 + $0x40] sm:$0xff] %v210_v8  ;;  %v214_v10 = vld [vmem:[%s1403_s28 + $0xa0] sm:$0xff]  ;;  %v216_v11 = vld [vmem:[%s1403_s28 + $0xa8] sm:$0xff]  ;;  %213 = vst [vmem:[%s1408_s29 + $0x48] sm:$0xff] %v212_v9 }
  0x1b   : > { %215 = vst [vmem:[%s1408_s29 + $0x50] sm:$0xff] %v214_v10  ;;  %217 = vst [vmem:[%s1408_s29 + $0x58] sm:$0xff] %v216_v11  ;;  %v218_v12 = vld [vmem:[%s1403_s28 + $0xc0] sm:$0xff]  ;;  %v220_v13 = vld [vmem:[%s1403_s28 + $0xc8] sm:$0xff] }
  0x1c   : > { %v222_v14 = vld [vmem:[%s1403_s28 + $0xe0] sm:$0xff]  ;;  %219 = vst [vmem:[%s1408_s29 + $0x60] sm:$0xff] %v218_v12  ;;  %221 = vst [vmem:[%s1408_s29 + $0x68] sm:$0xff] %v220_v13  ;;  %v224_v15 = vld [vmem:[%s1403_s28 + $0xe8] sm:$0xff] }
  0x1d   : > { %223 = vst [vmem:[%s1408_s29 + $0x70] sm:$0xff] %v222_v14  ;;  %v226_v16 = vld [vmem:[%s1403_s28 + $0x100] sm:$0xff]  ;;  %v228_v17 = vld [vmem:[%s1403_s28 + $0x108] sm:$0xff]  ;;  %225 = vst [vmem:[%s1408_s29 + $0x78] sm:$0xff] %v224_v15 }
  0x1e   : > { %227 = vst [vmem:[%s1408_s29 + $0x80] sm:$0xff] %v226_v16  ;;  %229 = vst [vmem:[%s1408_s29 + $0x88] sm:$0xff] %v228_v17  ;;  %v230_v18 = vld [vmem:[%s1403_s28 + $0x120] sm:$0xff]  ;;  %v232_v19 = vld [vmem:[%s1403_s28 + $0x128] sm:$0xff] }
  0x1f   : > { %v234_v20 = vld [vmem:[%s1403_s28 + $0x140] sm:$0xff]  ;;  %231 = vst [vmem:[%s1408_s29 + $0x90] sm:$0xff] %v230_v18  ;;  %233 = vst [vmem:[%s1408_s29 + $0x98] sm:$0xff] %v232_v19  ;;  %v236_v21 = vld [vmem:[%s1403_s28 + $0x148] sm:$0xff] }
  0x20   : > { %235 = vst [vmem:[%s1408_s29 + $0xa0] sm:$0xff] %v234_v20  ;;  %v238_v22 = vld [vmem:[%s1403_s28 + $0x160] sm:$0xff]  ;;  %v240_v23 = vld [vmem:[%s1403_s28 + $0x168] sm:$0xff]  ;;  %237 = vst [vmem:[%s1408_s29 + $0xa8] sm:$0xff] %v236_v21 }
  0x21   : > { %239 = vst [vmem:[%s1408_s29 + $0xb0] sm:$0xff] %v238_v22  ;;  %241 = vst [vmem:[%s1408_s29 + $0xb8] sm:$0xff] %v240_v23  ;;  %v242_v24 = vld [vmem:[%s1403_s28 + $0x180] sm:$0xff]  ;;  %v244_v25 = vld [vmem:[%s1403_s28 + $0x188] sm:$0xff] }
  0x22   : > { %v246_v26 = vld [vmem:[%s1403_s28 + $0x1a0] sm:$0xff]  ;;  %243 = vst [vmem:[%s1408_s29 + $0xc0] sm:$0xff] %v242_v24  ;;  %245 = vst [vmem:[%s1408_s29 + $0xc8] sm:$0xff] %v244_v25  ;;  %v248_v27 = vld [vmem:[%s1403_s28 + $0x1a8] sm:$0xff] }
  0x23   : > { %247 = vst [vmem:[%s1408_s29 + $0xd0] sm:$0xff] %v246_v26  ;;  %v250_v28 = vld [vmem:[%s1403_s28 + $0x1c0] sm:$0xff]  ;;  %v252_v29 = vld [vmem:[%s1403_s28 + $0x1c8] sm:$0xff]  ;;  %249 = vst [vmem:[%s1408_s29 + $0xd8] sm:$0xff] %v248_v27 }
  0x24   : > { %251 = vst [vmem:[%s1408_s29 + $0xe0] sm:$0xff] %v250_v28  ;;  %253 = vst [vmem:[%s1408_s29 + $0xe8] sm:$0xff] %v252_v29  ;;  %v254_v30 = vld [vmem:[%s1403_s28 + $0x1e0] sm:$0xff]  ;;  %v256_v31 = vld [vmem:[%s1403_s28 + $0x1e8] sm:$0xff] }
  0x25   : > { %255 = vst [vmem:[%s1408_s29 + $0xf0] sm:$0xff] %v254_v30  ;;  %257 = vst [vmem:[%s1408_s29 + $0xf8] sm:$0xff] %v256_v31 }
  0x26 PF: > { %p1154_p8 = scmp.ge.s32.totalorder %s1332_s16, 1  ;;  %p270_p9 = scmp.lt.s32.totalorder %s1332_s16, 3 }
  0x28   : > { %p271_p10 = pnand %p1154_p8, %p270_p9 }
  0x29   : > { %s277_s30 = sand.u32 (!%p271_p10), 1, %s1316_s12   ;;  %v1334_v32 = vmov (!%p271_p10), 0   ;;  %v1290_v1 = vld [vmem:[%s1697_s0] sm:$0xff] (!%p271_p10)   ;;  %v1291_v2 = vld [vmem:[%s1697_s0 + $0x8] sm:$0xff] (!%p271_p10)   ;;  %v1292_v3 = vld [vmem:[%s1697_s0 + $0x10] sm:$0xff] (!%p271_p10)   ;;  %s1157_s19 = sshll.u32 (!%p271_p10), %s1324_s14, 2  ;;  %v869_v5 = vlaneseq (!%p271_p10) }
  0x2a   : > { %274 = sbr.rel (%p271_p10) target bundleno = 329 (0x149), region = 51  ;;  %s1474_s4 = sshll.u32 (!%p271_p10), %s277_s30, 8  ;;  %654 = vmatprep.mubr.bf16.mxu0 (!%p271_p10), %v1334_v32  ;;  %727 = vmatprep.mubr.bf16.mxu1 (!%p271_p10), %v1334_v32  ;;  %v1293_v4 = vld [vmem:[%s1697_s0 + $0x18] sm:$0xff] (!%p271_p10)  }
  0x2b   : > { %s1479_s5 = scalar_lea.vmem (!%p271_p10), [#allocation3], %s1474_s4  ;;  %p323_p11 = scmp.lt.s32.totalorder (!%p271_p10), %s1157_s19, 7  ;;  %v870_v6 = vshrl.u32 (!%p271_p10), %v869_v5, 7 }
  0x2c   : > { %v1242_v33 = vld [vmem:[%s1479_s5 + $0x4] ss:$16 sps:$4 sm:$0xff] (!%p271_p10)   ;;  %v1244_v34 = vld [vmem:[%s1479_s5 + $0xc] ss:$16 sps:$4 sm:$0xff] (!%p271_p10)   ;;  %v1246_v35 = vld [vmem:[%s1479_s5] ss:$16 sps:$4 sm:$0xff] (!%p271_p10)  }
  0x2d   : > { %622 = vmatprep.subr.bf16.mxu0 (!%p271_p10), %v1242_v33  ;;  %v1247_v36 = vld [vmem:[%s1479_s5 + $0x8] ss:$16 sps:$4 sm:$0xff] (!%p271_p10)   ;;  %695 = vmatprep.subr.bf16.mxu1 (!%p271_p10), %v1244_v34  ;;  %v1248_v37 = vld [vmem:[%s1479_s5 + $0x24] ss:$16 sps:$4 sm:$0xff] (!%p271_p10)   ;;  %v1250_v38 = vld [vmem:[%s1479_s5 + $0x2c] ss:$16 sps:$4 sm:$0xff] (!%p271_p10)  }
  0x2e   : > { %623 = vmatpush1.bf16.msra.mxu0 (!%p271_p10), %v1246_v35  ;;  %696 = vmatpush1.bf16.msra.mxu1 (!%p271_p10), %v1247_v36  ;;  %v1252_v39 = vld [vmem:[%s1479_s5 + $0x20] ss:$16 sps:$4 sm:$0xff] (!%p271_p10)   ;;  %v1253_v40 = vld [vmem:[%s1479_s5 + $0x28] ss:$16 sps:$4 sm:$0xff] (!%p271_p10)   ;;  %v1254_v41 = vld [vmem:[%s1479_s5 + $0x44] ss:$16 sps:$4 sm:$0xff] (!%p271_p10)  }
  0x2f   : > { %624 = vmatprep.subr.bf16.mxu0 (!%p271_p10), %v1248_v37  ;;  %697 = vmatprep.subr.bf16.mxu1 (!%p271_p10), %v1250_v38  ;;  %v1256_v42 = vld [vmem:[%s1479_s5 + $0x4c] ss:$16 sps:$4 sm:$0xff] (!%p271_p10)   ;;  %v1258_v43 = vld [vmem:[%s1479_s5 + $0x40] ss:$16 sps:$4 sm:$0xff] (!%p271_p10)   ;;  %v1259_v44 = vld [vmem:[%s1479_s5 + $0x48] ss:$16 sps:$4 sm:$0xff] (!%p271_p10)  }
  0x30   : > { %v1260_v45 = vld [vmem:[%s1479_s5 + $0x64] ss:$16 sps:$4 sm:$0xff] (!%p271_p10)   ;;  %v1262_v46 = vld [vmem:[%s1479_s5 + $0x6c] ss:$16 sps:$4 sm:$0xff] (!%p271_p10)   ;;  %v1264_v47 = vld [vmem:[%s1479_s5 + $0x60] ss:$16 sps:$4 sm:$0xff] (!%p271_p10)  }
  0x31   : > { %v1265_v48 = vld [vmem:[%s1479_s5 + $0x68] ss:$16 sps:$4 sm:$0xff]   ;;  %v1266_v49 = vld [vmem:[%s1479_s5 + $0x84] ss:$16 sps:$4 sm:$0xff]   ;;  %v1268_v50 = vld [vmem:[%s1479_s5 + $0x8c] ss:$16 sps:$4 sm:$0xff]  }
  0x32   : > { %625 = vmatpush1.bf16.msra.mxu0 %v1252_v39  ;;  %698 = vmatpush1.bf16.msra.mxu1 %v1253_v40  ;;  %v1270_v51 = vld [vmem:[%s1479_s5 + $0x80] ss:$16 sps:$4 sm:$0xff]   ;;  %v1271_v52 = vld [vmem:[%s1479_s5 + $0x88] ss:$16 sps:$4 sm:$0xff]   ;;  %v1272_v53 = vld [vmem:[%s1479_s5 + $0xa4] ss:$16 sps:$4 sm:$0xff]  }
  0x33   : > { %626 = vmatprep.subr.bf16.mxu0 %v1254_v41  ;;  %699 = vmatprep.subr.bf16.mxu1 %v1256_v42  ;;  %v1274_v54 = vld [vmem:[%s1479_s5 + $0xac] ss:$16 sps:$4 sm:$0xff]   ;;  %v1276_v55 = vld [vmem:[%s1479_s5 + $0xa0] ss:$16 sps:$4 sm:$0xff]   ;;  %v1277_v56 = vld [vmem:[%s1479_s5 + $0xa8] ss:$16 sps:$4 sm:$0xff]  }
  0x34   : > { %v1278_v57 = vld [vmem:[%s1479_s5 + $0xc4] ss:$16 sps:$4 sm:$0xff]   ;;  %v1280_v58 = vld [vmem:[%s1479_s5 + $0xcc] ss:$16 sps:$4 sm:$0xff]   ;;  %v1282_v59 = vld [vmem:[%s1479_s5 + $0xc0] ss:$16 sps:$4 sm:$0xff]  }
  0x35   : > { %v1283_v60 = vld [vmem:[%s1479_s5 + $0xc8] ss:$16 sps:$4 sm:$0xff]   ;;  %v1284_v61 = vld [vmem:[%s1479_s5 + $0xe4] ss:$16 sps:$4 sm:$0xff]   ;;  %v1286_v62 = vld [vmem:[%s1479_s5 + $0xec] ss:$16 sps:$4 sm:$0xff]  }
  0x36   : > { %627 = vmatpush1.bf16.msra.mxu0 %v1258_v43  ;;  %700 = vmatpush1.bf16.msra.mxu1 %v1259_v44  ;;  %v1288_v63 = vld [vmem:[%s1479_s5 + $0xe0] ss:$16 sps:$4 sm:$0xff]   ;;  %v1289_v0 = vld [vmem:[%s1479_s5 + $0xe8] ss:$16 sps:$4 sm:$0xff]   ;;  %s1709_s19 = smov (!%p323_p11, %s1157_s19), 7  ;;  %v871_v7 = vsub.s32 0, %v870_v6 }
  0x37   : > { %628 = vmatprep.subr.bf16.mxu0 %v1260_v45  ;;  %701 = vmatprep.subr.bf16.mxu1 %v1262_v46  ;;  %s325_s24 = scalar_lea.vmem %s1699_s2, %s1709_s19  ;;  %v879_v8 = vsub.s32 2, %v870_v6  ;;  %v875_v10 = vsub.s32 1, %v870_v6  ;;  %v883_v11 = vsub.s32 3, %v870_v6  ;;  %s1548_s25 = scalar_lea.vmem [#allocation4], %s1474_s4 }
  0x38   : > { %v867_v9 = vld [vmem:[%s325_s24] sm:$0xf]  ;;  %s1200_s26 = sshll.u32 (%p1390_p6), %s1324_s14, 5 }
  0x39   : > { %v1535_v12 = vrot.slane %v867_v9, %v871_v7  ;;  %v1537_v13 = vrot.slane %v867_v9, %v879_v8  ;;  %v1539_v14 = vrot.slane %v867_v9, %v875_v10  ;;  %v1541_v15 = vrot.slane %v867_v9, %v883_v11  ;;  %s1619_s29 = scalar_lea.vmem (%p1390_p6), %s1700_s3, %s1200_s26 }
  0x3a   : > { %629 = vmatpush1.bf16.msra.mxu0 %v1264_v47  ;;  %702 = vmatpush1.bf16.msra.mxu1 %v1265_v48 }
  0x3b   : > { %630 = vmatprep.subr.bf16.mxu0 %v1266_v49  ;;  %703 = vmatprep.subr.bf16.mxu1 %v1268_v50 }
  0x3e   : > { %631 = vmatpush1.bf16.msra.mxu0 %v1270_v51  ;;  %704 = vmatpush1.bf16.msra.mxu1 %v1271_v52 }
  0x3f   : > { %632 = vmatprep.subr.bf16.mxu0 %v1272_v53  ;;  %705 = vmatprep.subr.bf16.mxu1 %v1274_v54 }
  0x42   : > { %633 = vmatpush1.bf16.msra.mxu0 %v1276_v55  ;;  %706 = vmatpush1.bf16.msra.mxu1 %v1277_v56 }
  0x43   : > { %634 = vmatprep.subr.bf16.mxu0 %v1278_v57  ;;  %707 = vmatprep.subr.bf16.mxu1 %v1280_v58 }
  0x46   : > { %635 = vmatpush1.bf16.msra.mxu0 %v1282_v59  ;;  %708 = vmatpush1.bf16.msra.mxu1 %v1283_v60 }
  0x47   : > { %636 = vmatprep.subr.bf16.mxu0 %v1284_v61  ;;  %709 = vmatprep.subr.bf16.mxu1 %v1286_v62 }
  0x4a   : > { %637 = vmatpush1.bf16.msra.mxu0 %v1288_v63  ;;  %710 = vmatpush1.bf16.msra.mxu1 %v1289_v0 }
  0x4d   : > { %655 = vmatmul.mubr.bf16.vlgmr.msra.gmra.mrb[0].mxu0 %v1290_v1  ;;  %728 = vmatmul.mubr.bf16.vlgmr.msra.gmra.mrb[0].mxu1 %v1290_v1 }
  0x4e   : > { %664 = vmatprep.mubr.bf16.mxu0 %v1334_v32  ;;  %737 = vmatprep.mubr.bf16.mxu1 %v1334_v32 }
  0x55   : > { %665 = vmatmul.mubr.bf16.gmra.mrb[4].mxu0 %v1291_v2  ;;  %738 = vmatmul.mubr.bf16.gmra.mrb[4].mxu1 %v1291_v2 }
  0x56   : > { %674 = vmatprep.mubr.bf16.mxu0 %v1334_v32  ;;  %747 = vmatprep.mubr.bf16.mxu1 %v1334_v32 }
  0x5d   : > { %675 = vmatmul.mubr.bf16.gmra.mrb[8].mxu0 %v1292_v3  ;;  %748 = vmatmul.mubr.bf16.gmra.mrb[8].mxu1 %v1292_v3 }
  0x5e   : > { %684 = vmatprep.mubr.bf16.mxu0 %v1334_v32  ;;  %757 = vmatprep.mubr.bf16.mxu1 %v1334_v32 }
  0x65   : > { %685 = vmatmul.mubr.bf16.gmra.mrb[12].mxu0 %v1293_v4  ;;  %758 = vmatmul.mubr.bf16.gmra.mrb[12].mxu1 %v1293_v4 }
 0x120   : > { %v656_v16 = vpop.f32.mrb[0].mxu0  ;;  %v729_v17 = vpop.f32.mrb[0].mxu1 }
 0x121   : > { %v889_v18 = vadd.f32 %v1535_v12, %v656_v16  ;;  %v891_v19 = vadd.f32 %v1537_v13, %v729_v17  ;;  %v658_v20 = vpop.f32.mrb[1].mxu0  ;;  %v731_v21 = vpop.f32.mrb[1].mxu1 }
 0x122   : > { %v890_v22 = vadd.f32 %v1539_v14, %v658_v20  ;;  %v892_v23 = vadd.f32 %v1541_v15, %v731_v21  ;;  %v660_v24 = vpop.f32.mrb[2].mxu0  ;;  %v733_v25 = vpop.f32.mrb[2].mxu1 }
 0x123   : > { %921 = vst [vmem:[%s1548_s25] sm:$0xff] %v889_v18  ;;  %923 = vst [vmem:[%s1548_s25 + $0x10] sm:$0xff] %v891_v19  ;;  %v893_v26 = vadd.f32 %v1535_v12, %v660_v24  ;;  %v895_v27 = vadd.f32 %v1537_v13, %v733_v25  ;;  %v662_v28 = vpop.f32.mrb[3].mxu0  ;;  %v735_v29 = vpop.f32.mrb[3].mxu1 }
 0x124   : > { %922 = vst [vmem:[%s1548_s25 + $0x8] sm:$0xff] %v890_v22  ;;  %924 = vst [vmem:[%s1548_s25 + $0x18] sm:$0xff] %v892_v23  ;;  %v894_v30 = vadd.f32 %v1539_v14, %v662_v28  ;;  %v896_v31 = vadd.f32 %v1541_v15, %v735_v29 }
 0x125   : > { %925 = vst [vmem:[%s1548_s25 + $0x20] sm:$0xff] %v893_v26  ;;  %927 = vst [vmem:[%s1548_s25 + $0x30] sm:$0xff] %v895_v27 }
 0x126   : > { %926 = vst [vmem:[%s1548_s25 + $0x28] sm:$0xff] %v894_v30  ;;  %928 = vst [vmem:[%s1548_s25 + $0x38] sm:$0xff] %v896_v31 }
 0x128   : > { %v666_v32 = vpop.f32.mrb[4].mxu0  ;;  %v739_v33 = vpop.f32.mrb[4].mxu1 }
 0x129   : > { %v897_v34 = vadd.f32 %v1535_v12, %v666_v32  ;;  %v899_v35 = vadd.f32 %v1537_v13, %v739_v33  ;;  %v668_v36 = vpop.f32.mrb[5].mxu0  ;;  %v741_v37 = vpop.f32.mrb[5].mxu1 }
 0x12a   : > { %v898_v38 = vadd.f32 %v1539_v14, %v668_v36  ;;  %v900_v39 = vadd.f32 %v1541_v15, %v741_v37  ;;  %v670_v40 = vpop.f32.mrb[6].mxu0  ;;  %v743_v41 = vpop.f32.mrb[6].mxu1 }
 0x12b   : > { %929 = vst [vmem:[%s1548_s25 + $0x40] sm:$0xff] %v897_v34  ;;  %931 = vst [vmem:[%s1548_s25 + $0x50] sm:$0xff] %v899_v35  ;;  %v901_v42 = vadd.f32 %v1535_v12, %v670_v40  ;;  %v903_v43 = vadd.f32 %v1537_v13, %v743_v41  ;;  %v672_v44 = vpop.f32.mrb[7].mxu0  ;;  %v745_v45 = vpop.f32.mrb[7].mxu1 }
 0x12c   : > { %930 = vst [vmem:[%s1548_s25 + $0x48] sm:$0xff] %v898_v38  ;;  %932 = vst [vmem:[%s1548_s25 + $0x58] sm:$0xff] %v900_v39  ;;  %v902_v46 = vadd.f32 %v1539_v14, %v672_v44  ;;  %v904_v47 = vadd.f32 %v1541_v15, %v745_v45  ;;  %v986_v20 = vld [vmem:[%s1548_s25 + $0x20] sm:$0xff] (%p1390_p6)  ;;  %v990_v22 = vld [vmem:[%s1548_s25 + $0x30] sm:$0xff] (%p1390_p6) }
 0x12d   : > { %933 = vst [vmem:[%s1548_s25 + $0x60] sm:$0xff] %v901_v42  ;;  %935 = vst [vmem:[%s1548_s25 + $0x70] sm:$0xff] %v903_v43  ;;  %v988_v21 = vld [vmem:[%s1548_s25 + $0x28] sm:$0xff] (%p1390_p6)  ;;  %v992_v23 = vld [vmem:[%s1548_s25 + $0x38] sm:$0xff] (%p1390_p6) }
 0x12e   : > { %934 = vst [vmem:[%s1548_s25 + $0x68] sm:$0xff] %v902_v46  ;;  %936 = vst [vmem:[%s1548_s25 + $0x78] sm:$0xff] %v904_v47 }
 0x12f   : > { %987 = vst [vmem:[%s1619_s29 + $0x40] sm:$0xff] (%p1390_p6), %v986_v20  ;;  %989 = vst [vmem:[%s1619_s29 + $0x48] sm:$0xff] (%p1390_p6), %v988_v21 }
 0x130   : > { %v676_v48 = vpop.f32.mrb[8].mxu0  ;;  %v749_v49 = vpop.f32.mrb[8].mxu1  ;;  %991 = vst [vmem:[%s1619_s29 + $0x50] sm:$0xff] (%p1390_p6), %v990_v22  ;;  %993 = vst [vmem:[%s1619_s29 + $0x58] sm:$0xff] (%p1390_p6), %v992_v23 }
 0x131   : > { %v905_v50 = vadd.f32 %v1535_v12, %v676_v48  ;;  %v907_v51 = vadd.f32 %v1537_v13, %v749_v49  ;;  %v678_v52 = vpop.f32.mrb[9].mxu0  ;;  %v751_v53 = vpop.f32.mrb[9].mxu1 }
 0x132   : > { %v906_v54 = vadd.f32 %v1539_v14, %v678_v52  ;;  %v908_v55 = vadd.f32 %v1541_v15, %v751_v53  ;;  %v680_v56 = vpop.f32.mrb[10].mxu0  ;;  %v753_v57 = vpop.f32.mrb[10].mxu1  ;;  %v994_v24 = vld [vmem:[%s1548_s25 + $0x40] sm:$0xff] (%p1390_p6)  ;;  %v998_v26 = vld [vmem:[%s1548_s25 + $0x50] sm:$0xff] (%p1390_p6) }
 0x133   : > { %937 = vst [vmem:[%s1548_s25 + $0x80] sm:$0xff] %v905_v50  ;;  %939 = vst [vmem:[%s1548_s25 + $0x90] sm:$0xff] %v907_v51  ;;  %v909_v58 = vadd.f32 %v1535_v12, %v680_v56  ;;  %v911_v59 = vadd.f32 %v1537_v13, %v753_v57  ;;  %v682_v60 = vpop.f32.mrb[11].mxu0  ;;  %v755_v61 = vpop.f32.mrb[11].mxu1  ;;  %v996_v25 = vld [vmem:[%s1548_s25 + $0x48] sm:$0xff] (%p1390_p6)  ;;  %v1000_v27 = vld [vmem:[%s1548_s25 + $0x58] sm:$0xff] (%p1390_p6) }
 0x134   : > { %938 = vst [vmem:[%s1548_s25 + $0x88] sm:$0xff] %v906_v54  ;;  %940 = vst [vmem:[%s1548_s25 + $0x98] sm:$0xff] %v908_v55  ;;  %v910_v62 = vadd.f32 %v1539_v14, %v682_v60  ;;  %v912_v63 = vadd.f32 %v1541_v15, %v755_v61  ;;  %v1002_v28 = vld [vmem:[%s1548_s25 + $0x60] sm:$0xff] (%p1390_p6)  ;;  %v1006_v30 = vld [vmem:[%s1548_s25 + $0x70] sm:$0xff] (%p1390_p6) }
 0x135   : > { %941 = vst [vmem:[%s1548_s25 + $0xa0] sm:$0xff] %v909_v58  ;;  %943 = vst [vmem:[%s1548_s25 + $0xb0] sm:$0xff] %v911_v59  ;;  %v1004_v29 = vld [vmem:[%s1548_s25 + $0x68] sm:$0xff] (%p1390_p6)  ;;  %v1008_v31 = vld [vmem:[%s1548_s25 + $0x78] sm:$0xff] (%p1390_p6) }
 0x136   : > { %942 = vst [vmem:[%s1548_s25 + $0xa8] sm:$0xff] %v910_v62  ;;  %944 = vst [vmem:[%s1548_s25 + $0xb8] sm:$0xff] %v912_v63 }
 0x137   : > { %995 = vst [vmem:[%s1619_s29 + $0x80] sm:$0xff] (%p1390_p6), %v994_v24  ;;  %997 = vst [vmem:[%s1619_s29 + $0x88] sm:$0xff] (%p1390_p6), %v996_v25 }
 0x138   : > { %v686_v0 = vpop.f32.mrb[12].mxu0  ;;  %v759_v1 = vpop.f32.mrb[12].mxu1  ;;  %959 = sbr.rel (!%p1390_p6) target bundleno = 329 (0x149), region = 67  ;;  %999 = vst [vmem:[%s1619_s29 + $0x90] sm:$0xff] (%p1390_p6), %v998_v26  ;;  %1001 = vst [vmem:[%s1619_s29 + $0x98] sm:$0xff] (%p1390_p6), %v1000_v27 }
 0x139   : > { %v913_v2 = vadd.f32 %v1535_v12, %v686_v0  ;;  %v915_v3 = vadd.f32 %v1537_v13, %v759_v1  ;;  %v688_v4 = vpop.f32.mrb[13].mxu0  ;;  %v761_v5 = vpop.f32.mrb[13].mxu1  ;;  %1003 = vst [vmem:[%s1619_s29 + $0xc0] sm:$0xff] (%p1390_p6), %v1002_v28  ;;  %1005 = vst [vmem:[%s1619_s29 + $0xc8] sm:$0xff] (%p1390_p6), %v1004_v29 }
 0x13a   : > { %v914_v6 = vadd.f32 %v1539_v14, %v688_v4  ;;  %v916_v7 = vadd.f32 %v1541_v15, %v761_v5  ;;  %v690_v8 = vpop.f32.mrb[14].mxu0  ;;  %v763_v9 = vpop.f32.mrb[14].mxu1  ;;  %1007 = vst [vmem:[%s1619_s29 + $0xd0] sm:$0xff] (%p1390_p6), %v1006_v30  ;;  %v1010_v32 = vld [vmem:[%s1548_s25 + $0x80] sm:$0xff] (%p1390_p6)  ;;  %1009 = vst [vmem:[%s1619_s29 + $0xd8] sm:$0xff] (%p1390_p6), %v1008_v31  ;;  %v1014_v34 = vld [vmem:[%s1548_s25 + $0x90] sm:$0xff] (%p1390_p6) }
 0x13b   : > { %945 = vst [vmem:[%s1548_s25 + $0xc0] sm:$0xff] %v913_v2  ;;  %947 = vst [vmem:[%s1548_s25 + $0xd0] sm:$0xff] %v915_v3  ;;  %v917_v10 = vadd.f32 %v1535_v12, %v690_v8  ;;  %v919_v11 = vadd.f32 %v1537_v13, %v763_v9  ;;  %v692_v16 = vpop.f32.mrb[15].mxu0  ;;  %v765_v17 = vpop.f32.mrb[15].mxu1  ;;  %v978_v12 = vld [vmem:[%s1548_s25] sm:$0xff] (%p1390_p6)  ;;  %v980_v13 = vld [vmem:[%s1548_s25 + $0x8] sm:$0xff] (%p1390_p6) }
 0x13c   : > { %946 = vst [vmem:[%s1548_s25 + $0xc8] sm:$0xff] %v914_v6  ;;  %948 = vst [vmem:[%s1548_s25 + $0xd8] sm:$0xff] %v916_v7  ;;  %v918_v18 = vadd.f32 %v1539_v14, %v692_v16  ;;  %v920_v19 = vadd.f32 %v1541_v15, %v765_v17  ;;  %v982_v14 = vld [vmem:[%s1548_s25 + $0x10] sm:$0xff] (%p1390_p6)  ;;  %v984_v15 = vld [vmem:[%s1548_s25 + $0x18] sm:$0xff] (%p1390_p6) }
 0x13d   : > { %949 = vst [vmem:[%s1548_s25 + $0xe0] sm:$0xff] %v917_v10  ;;  %951 = vst [vmem:[%s1548_s25 + $0xf0] sm:$0xff] %v919_v11  ;;  %v1012_v33 = vld [vmem:[%s1548_s25 + $0x88] sm:$0xff] (%p1390_p6)  ;;  %v1016_v35 = vld [vmem:[%s1548_s25 + $0x98] sm:$0xff] (%p1390_p6) }
 0x13e   : > { %950 = vst [vmem:[%s1548_s25 + $0xe8] sm:$0xff] %v918_v18  ;;  %952 = vst [vmem:[%s1548_s25 + $0xf8] sm:$0xff] %v920_v19  ;;  %v1018_v36 = vld [vmem:[%s1548_s25 + $0xa0] sm:$0xff] (%p1390_p6)  ;;  %v1020_v37 = vld [vmem:[%s1548_s25 + $0xa8] sm:$0xff] (%p1390_p6) }
 0x13f   : > { %979 = vst [vmem:[%s1619_s29] sm:$0xff] %v978_v12  ;;  %981 = vst [vmem:[%s1619_s29 + $0x8] sm:$0xff] %v980_v13  ;;  %v1022_v38 = vld [vmem:[%s1548_s25 + $0xb0] sm:$0xff]  ;;  %v1024_v39 = vld [vmem:[%s1548_s25 + $0xb8] sm:$0xff] }
 0x140   : > { %983 = vst [vmem:[%s1619_s29 + $0x10] sm:$0xff] %v982_v14  ;;  %985 = vst [vmem:[%s1619_s29 + $0x18] sm:$0xff] %v984_v15 }
 0x141   : > { %1011 = vst [vmem:[%s1619_s29 + $0x100] sm:$0xff] %v1010_v32  ;;  %1013 = vst [vmem:[%s1619_s29 + $0x108] sm:$0xff] %v1012_v33 }
 0x142   : > { %1015 = vst [vmem:[%s1619_s29 + $0x110] sm:$0xff] %v1014_v34  ;;  %1017 = vst [vmem:[%s1619_s29 + $0x118] sm:$0xff] %v1016_v35  ;;  %v1026_v40 = vld [vmem:[%s1548_s25 + $0xc0] sm:$0xff]  ;;  %v1030_v42 = vld [vmem:[%s1548_s25 + $0xd0] sm:$0xff] }
 0x143   : > { %1019 = vst [vmem:[%s1619_s29 + $0x140] sm:$0xff] %v1018_v36  ;;  %1021 = vst [vmem:[%s1619_s29 + $0x148] sm:$0xff] %v1020_v37  ;;  %v1028_v41 = vld [vmem:[%s1548_s25 + $0xc8] sm:$0xff]  ;;  %v1032_v43 = vld [vmem:[%s1548_s25 + $0xd8] sm:$0xff] }
 0x144   : > { %1023 = vst [vmem:[%s1619_s29 + $0x150] sm:$0xff] %v1022_v38  ;;  %1025 = vst [vmem:[%s1619_s29 + $0x158] sm:$0xff] %v1024_v39  ;;  %v1034_v44 = vld [vmem:[%s1548_s25 + $0xe0] sm:$0xff]  ;;  %v1038_v46 = vld [vmem:[%s1548_s25 + $0xf0] sm:$0xff] }
 0x145   : > { %1027 = vst [vmem:[%s1619_s29 + $0x180] sm:$0xff] %v1026_v40  ;;  %1029 = vst [vmem:[%s1619_s29 + $0x188] sm:$0xff] %v1028_v41  ;;  %v1036_v45 = vld [vmem:[%s1548_s25 + $0xe8] sm:$0xff]  ;;  %v1040_v47 = vld [vmem:[%s1548_s25 + $0xf8] sm:$0xff] }
 0x146   : > { %1031 = vst [vmem:[%s1619_s29 + $0x190] sm:$0xff] %v1030_v42  ;;  %1033 = vst [vmem:[%s1619_s29 + $0x198] sm:$0xff] %v1032_v43 }
 0x147   : > { %1035 = vst [vmem:[%s1619_s29 + $0x1c0] sm:$0xff] %v1034_v44  ;;  %1037 = vst [vmem:[%s1619_s29 + $0x1c8] sm:$0xff] %v1036_v45 }
 0x148   : > { %1039 = vst [vmem:[%s1619_s29 + $0x1d0] sm:$0xff] %v1038_v46  ;;  %1041 = vst [vmem:[%s1619_s29 + $0x1d8] sm:$0xff] %v1040_v47 }
 0x149 PF: > { %s13_s16 = sadd.s32 1, %s1332_s16   ;;  %s1702_s12 = smov %s1320_s13 }
 0x14a   : > { %p10_p12 = scmp.ge.s32.totalorder %s13_s16, 4   ;;  %s1703_s13 = smov %s1395_s22 }
 0x14b   : > { %s1704_s14 = smov %s1328_s15  ;;  %s1705_s15 = smov %s1707_s17 }
 0x14c   :  { %12 = sbr.rel (!%p10_p12) target bundleno = 3 (0x3), region = 127 }

// kernel: decoder_forward.4
= control target key start
LH: loop header
LB: loop body
LE: loop exit
PB: predicated region body
PF: predicated region fallthrough
CT: control target
= control target key end

     0   :  { %11 = vsyncpa [#allocation5], 0  ;;  %s4489_s0 = inlined_call_operand.vmem [shape: s32[8,128], index: 0, kind: input, shape index: {}]   ;;  %s4490_s1 = inlined_call_operand.vmem [shape: bf16[8,8,128], index: 1, kind: input, shape index: {}]   ;;  %s4491_s2 = inlined_call_operand.hbm [shape: bf16[128,384], index: 2, kind: input, shape index: {}]   ;;  %s4492_s3 = inlined_call_operand.vmem [shape: f32[1,384], index: 3, kind: input, shape index: {}]   ;;  %s4493_s4 = inlined_call_operand.hbm [shape: bf16[128,384], index: 4, kind: input, shape index: {}]   ;;  %s4494_s5 = inlined_call_operand.vmem [shape: f32[1,384], index: 5, kind: input, shape index: {}]   ;;  %s4495_s6 = inlined_call_operand.vmem [shape: bf16[8,8,128], index: 6, kind: output, shape index: {}]  }
   0x1   :  { %12 = vsyncpa [#allocation7], 0  ;;  %s3200_s21 = smov [#allocation4]   ;;  %s3152_s25 = scalar_lea.hbm %s4491_s2, 3072 }
   0x2   :  { %s22_s22 = sshll.u32 %s3200_s21, 4  ;;  %p3153_p0 = scmp.ne.s32.totalorder %s4491_s2, %s3152_s25  ;;  %s23_s22 = int_to_ptr.vmem [resolvable:$true] %s22_s22 }
   0x3   :  { %p3156_p1 = scmp.lt.u32.totalorder %s3152_s25, %s4491_s2 }
   0x5   :  { %p3158_p2 = pnand %p3156_p1, %p3153_p0 }
   0x7   :  { %3161 = shalt.err (!%p3158_p2)
}
   0x8   :  { %s3162_s30 = scalar_lea.vmem %s23_s22, 3072  ;;  %p3167_p4 = scmp.lt.s32.totalorder %s23_s22, %s23_s22 }
   0x9   :  { %p3163_p3 = scmp.ne.s32.totalorder %s23_s22, %s3162_s30  ;;  %p3168_p5 = scmp.lt.s32.totalorder %s3162_s30, %s3162_s30 }
   0xb   :  { %p3169_p6 = por %p3168_p5, %p3167_p4 }
   0xd   :  { %p3170_p7 = pnand %p3169_p6, %p3163_p3 }
   0xf   :  { %3173 = shalt.err (!%p3170_p7)
}
  0x10   :  { %s3201_s7 = smov 192   ;;  %s3202_s8 = smov 12  }
  0x11   :  { %28 = dma.hbm_to_vmem [thread:$0]  %s4491_s2, 3072, %s23_s22, [#allocation5], %s3201_s7, %s3201_s7, %s3202_s8  }
  0x12   :  { %s3203_s11 = smov [#allocation6]   ;;  %s3174_s15 = scalar_lea.hbm %s4493_s4, 3072 }
  0x13   :  { %s36_s12 = sshll.u32 %s3203_s11, 4  ;;  %p3175_p8 = scmp.ne.s32.totalorder %s4493_s4, %s3174_s15  ;;  %s37_s12 = int_to_ptr.vmem [resolvable:$true] %s36_s12 }
  0x14   :  { %p3178_p9 = scmp.lt.u32.totalorder %s3174_s15, %s4493_s4 }
  0x16   :  { %p3180_p10 = pnand %p3178_p9, %p3175_p8 }
  0x18   :  { %3183 = shalt.err (!%p3180_p10)
}
  0x19   :  { %s3184_s20 = scalar_lea.vmem %s37_s12, 3072  ;;  %p3189_p12 = scmp.lt.s32.totalorder %s37_s12, %s37_s12 }
  0x1a   :  { %p3185_p11 = scmp.ne.s32.totalorder %s37_s12, %s3184_s20  ;;  %p3190_p13 = scmp.lt.s32.totalorder %s3184_s20, %s3184_s20 }
  0x1c   :  { %p3191_p0 = por %p3190_p13, %p3189_p12 }
  0x1e   :  { %p3192_p1 = pnand %p3191_p0, %p3185_p11 }
  0x20   :  { %3195 = shalt.err (!%p3192_p1)
}
  0x21   :  { %42 = dma.hbm_to_vmem [thread:$0]  %s4493_s4, 3072, %s37_s12, [#allocation7], %s3201_s7, %s3201_s7, %s3202_s8  }
  0x22   :  { %3196 = dma.done.wait [#allocation5], 3072  }
  0x23   :  { %3197 = vsyncadd [#allocation5], 4294964224 }
  0x24   :  { %3198 = dma.done.wait [#allocation7], 3072  }
  0x25   :  { %3199 = vsyncadd [#allocation7], 4294964224  ;;  %v4496_v0 = vmov 0   ;;  %v2980_v1 = vld [vmem:[#allocation4 + $0x4] ss:$12 sps:$4 sm:$0xff]   ;;  %v3015_v31 = vld [vmem:[%s4490_s1 + $0x8] sm:$0xff]   ;;  %v99_v60 = vlaneseq }
  0x26   :  { %298 = vmatprep.mubr.bf16.mxu0 %v4496_v0  ;;  %2978 = vset.pattern.permute.xlu0 %v4496_v0  ;;  %v2982_v2 = vld [vmem:[#allocation4] ss:$12 sps:$4 sm:$0xff]   ;;  %v2983_v3 = vld [vmem:[#allocation4 + $0x1c] ss:$12 sps:$4 sm:$0xff]   ;;  %v2985_v4 = vld [vmem:[#allocation4 + $0x18] ss:$12 sps:$4 sm:$0xff]  }
  0x27   :  { %2979 = vset.pattern.permute.xlu1 %v4496_v0  ;;  %266 = vmatprep.subr.bf16.mxu0 %v2980_v1  ;;  %v2986_v5 = vld [vmem:[#allocation4 + $0x34] ss:$12 sps:$4 sm:$0xff]   ;;  %v2988_v6 = vld [vmem:[#allocation4 + $0x30] ss:$12 sps:$4 sm:$0xff]   ;;  %v2989_v7 = vld [vmem:[#allocation4 + $0x4c] ss:$12 sps:$4 sm:$0xff]  }
  0x28   :  { %267 = vmatpush1.bf16.msra.mxu0 %v2982_v2  ;;  %v3001_v8 = vld [vmem:[#allocation4 + $0x8] ss:$12 sps:$4 sm:$0xff]   ;;  %v2992_v10 = vld [vmem:[#allocation4 + $0x64] ss:$12 sps:$4 sm:$0xff]   ;;  %v3005_v11 = vld [vmem:[#allocation4 + $0x20] ss:$12 sps:$4 sm:$0xff]  }
  0x29   :  { %268 = vmatprep.subr.bf16.mxu0 %v2983_v3  ;;  %v2991_v9 = vld [vmem:[#allocation4 + $0x48] ss:$12 sps:$4 sm:$0xff]   ;;  %2784 = vmatprep.subr.bf16.mxu1 %v3001_v8  ;;  %v3006_v12 = vld [vmem:[%s4490_s1] sm:$0xff]   ;;  %v3014_v16 = vld [vmem:[#allocation4 + $0x50] ss:$12 sps:$4 sm:$0xff]   ;;  %v4498_v36 = vmov 0.0  }
  0x2a   :  { %2785 = vmatpush3.bf16.msra.mxu1 %v3001_v8  ;;  %v2994_v13 = vld [vmem:[#allocation4 + $0x60] ss:$12 sps:$4 sm:$0xff]   ;;  %v3010_v14 = vld [vmem:[#allocation4 + $0x38] ss:$12 sps:$4 sm:$0xff]   ;;  %2800 = vmatprep.mubr.bf16.mxu1 %v3006_v12  ;;  %v2995_v15 = vld [vmem:[#allocation4 + $0x7c] ss:$12 sps:$4 sm:$0xff]  }
  0x2b   :  { %2786 = vmatprep.subr.bf16.mxu1 %v3005_v11  ;;  %v2997_v17 = vld [vmem:[#allocation4 + $0x78] ss:$12 sps:$4 sm:$0xff]   ;;  %v2998_v18 = vld [vmem:[#allocation4 + $0x94] ss:$12 sps:$4 sm:$0xff]   ;;  %v3000_v20 = vld [vmem:[#allocation4 + $0x90] ss:$12 sps:$4 sm:$0xff]  }
  0x2c   :  { %269 = vmatpush1.bf16.msra.mxu0 %v2985_v4  ;;  %v3019_v19 = vld [vmem:[#allocation4 + $0x68] ss:$12 sps:$4 sm:$0xff]   ;;  %v3002_v21 = vld [vmem:[#allocation4 + $0xac] ss:$12 sps:$4 sm:$0xff]   ;;  %v3275_v24 = vld [vmem:[#allocation6 + $0x4] ss:$12 sps:$4 sm:$0xff]  }
  0x2d   :  { %270 = vmatprep.subr.bf16.mxu0 %v2986_v5  ;;  %v3023_v22 = vld [vmem:[#allocation4 + $0x80] ss:$12 sps:$4 sm:$0xff]   ;;  %v3004_v23 = vld [vmem:[#allocation4 + $0xa8] ss:$12 sps:$4 sm:$0xff]   ;;  %v3028_v25 = vld [vmem:[#allocation4 + $0x98] ss:$12 sps:$4 sm:$0xff]  }
  0x2e   :  { %2787 = vmatpush3.bf16.msra.mxu1 %v3005_v11  ;;  %v3277_v26 = vld [vmem:[#allocation6] ss:$12 sps:$4 sm:$0xff]   ;;  %v3280_v27 = vld [vmem:[#allocation6 + $0x1c] ss:$12 sps:$4 sm:$0xff]   ;;  %v3283_v29 = vld [vmem:[#allocation6 + $0x18] ss:$12 sps:$4 sm:$0xff]  }
  0x2f   :  { %2788 = vmatprep.subr.bf16.mxu1 %v3010_v14  ;;  %v3032_v28 = vld [vmem:[#allocation4 + $0xb0] ss:$12 sps:$4 sm:$0xff]   ;;  %v3287_v30 = vld [vmem:[#allocation6 + $0x34] ss:$12 sps:$4 sm:$0xff]   ;;  %v3296_v33 = vld [vmem:[#allocation6 + $0x4c] ss:$12 sps:$4 sm:$0xff]  }
  0x30   :  { %271 = vmatpush1.bf16.msra.mxu0 %v2988_v6  ;;  %v3293_v32 = vld [vmem:[#allocation6 + $0x30] ss:$12 sps:$4 sm:$0xff]   ;;  %v3298_v34 = vld [vmem:[#allocation6 + $0x8] ss:$12 sps:$4 sm:$0xff]   ;;  %v3303_v35 = vld [vmem:[%s4489_s0] sm:$0xff]  ;;  %vm3206_vm2 = vmmov 0  }
  0x31   :  { %272 = vmatprep.subr.bf16.mxu0 %v2989_v7  ;;  %vm714_vm0 = vcmp.gt.s32.totalorder %v3303_v35, 0  ;;  %v3308_v37 = vld [vmem:[#allocation6 + $0x48] ss:$12 sps:$4 sm:$0xff]   ;;  %v3316_v40 = vld [vmem:[#allocation6 + $0x64] ss:$12 sps:$4 sm:$0xff]   ;;  %vm962_vm1 = vcmp.gt.s32.totalorder %v3303_v35, 1 }
  0x32   :  { %2789 = vmatpush3.bf16.msra.mxu1 %v3010_v14  ;;  %v3024_v38 = vld [vmem:[%s4490_s1 + $0x10] sm:$0xff]   ;;  %v715_v39 = vsel %vm714_vm0, 1, %v4496_v0  ;;  %v3319_v41 = vld [vmem:[#allocation6 + $0x20] ss:$12 sps:$4 sm:$0xff]   ;;  %v3326_v43 = vld [vmem:[#allocation6 + $0x7c] ss:$12 sps:$4 sm:$0xff]  }
  0x33   :  { %2790 = vmatprep.subr.bf16.mxu1 %v3014_v16  ;;  %717 = vperm.xlu0 %2978, %v715_v39   ;;  %v3323_v42 = vld [vmem:[#allocation6 + $0x60] ss:$12 sps:$4 sm:$0xff]   ;;  %v3330_v44 = vld [vmem:[#allocation6 + $0x38] ss:$12 sps:$4 sm:$0xff]   ;;  %v963_v47 = vsel %vm962_vm1, 1, %v4496_v0  ;;  %vm1704_vm3 = vcmp.gt.s32.totalorder %v3303_v35, 4 }
  0x34   :  { %273 = vmatpush1.bf16.msra.mxu0 %v2991_v9  ;;  %v3033_v45 = vld [vmem:[%s4490_s1 + $0x18] sm:$0xff]   ;;  %v3342_v48 = vld [vmem:[#allocation6 + $0x94] ss:$12 sps:$4 sm:$0xff]   ;;  %v1705_v53 = vsel %vm1704_vm3, 1, %v4496_v0  ;;  %vm2199_vm4 = vcmp.gt.s32.totalorder %v3303_v35, 6  ;;  %v3207_v58 = vmov 0.0|0.0  }
  0x35   :  { %274 = vmatprep.subr.bf16.mxu0 %v2992_v10  ;;  %v3337_v46 = vld [vmem:[#allocation6 + $0x78] ss:$12 sps:$4 sm:$0xff]   ;;  %v3345_v49 = vld [vmem:[#allocation6 + $0x50] ss:$12 sps:$4 sm:$0xff]   ;;  %v3358_v52 = vld [vmem:[#allocation6 + $0x68] ss:$12 sps:$4 sm:$0xff]  }
  0x36   :  { %2791 = vmatpush3.bf16.msra.mxu1 %v3014_v16  ;;  %v3352_v50 = vld [vmem:[#allocation6 + $0x90] ss:$12 sps:$4 sm:$0xff]   ;;  %v3355_v51 = vld [vmem:[#allocation6 + $0xac] ss:$12 sps:$4 sm:$0xff]   ;;  %v3364_v54 = vld [vmem:[#allocation6 + $0xa8] ss:$12 sps:$4 sm:$0xff]  }
  0x37   :  { %2792 = vmatprep.subr.bf16.mxu1 %v3019_v19  ;;  %965 = vperm.xlu0 %2978, %v963_v47   ;;  %v3369_v55 = vld [vmem:[#allocation6 + $0x80] ss:$12 sps:$4 sm:$0xff]   ;;  %v2200_v56 = vsel %vm2199_vm4, 1, %v4496_v0  ;;  %v3376_v57 = vld [vmem:[#allocation6 + $0x98] ss:$12 sps:$4 sm:$0xff]   ;;  %v3420_v61 = vshrl.u32 %v99_v60, 7 }
  0x38   :  { %275 = vmatpush1.bf16.msra.mxu0 %v2994_v13  ;;  %v3383_v59 = vld [vmem:[#allocation6 + $0xb0] ss:$12 sps:$4 sm:$0xff]   ;;  %v97_v63 = vld [vmem:[%s4492_s3] sm:$0x7]  ;;  %vm827_vm7 = vcmask 1040384   ;;  %vm1209_vm10 = vcmp.gt.s32.totalorder %v3303_v35, 2 }
  0x39   :  { %276 = vmatprep.subr.bf16.mxu0 %v2995_v15  ;;  %v101_v62 = vsub.s32 0, %v3420_v61  ;;  %v105_v1 = vsub.s32 1, %v3420_v61  ;;  %v4500_v9 = vsub.s32 2, %v3420_v61  ;;  %vm828_vm8 = vsmask.f32 256 }
  0x3a   :  { %2793 = vmatpush3.bf16.msra.mxu1 %v3019_v19  ;;  %vm3521_vm9 = vmand %vm827_vm7, %vm828_vm8  ;;  %vm1457_vm11 = vcmp.gt.s32.totalorder %v3303_v35, 3  ;;  %vm1952_vm12 = vcmp.gt.s32.totalorder %v3303_v35, 5  ;;  %vm2447_vm13 = vcmp.gt.s32.totalorder %v3303_v35, 7  ;;  %vm1075_vm15 = vsmask.f32 7938 }
  0x3b   :  { %2794 = vmatprep.subr.bf16.mxu1 %v3023_v22  ;;  %1707 = vperm.xlu0 %2978, %v1705_v53   ;;  %v102_v3 = vrot.slane %v97_v63, %v101_v62  ;;  %v106_v5 = vrot.slane %v97_v63, %v105_v1  ;;  %v3434_v11 = vrot.slane %v97_v63, %v4500_v9  ;;  %vm3654_vm0 = vmand %vm827_vm7, %vm1075_vm15  ;;  %vm1322_vm3 = vcmask 1041409  }
  0x3c   :  { %277 = vmatpush1.bf16.msra.mxu0 %v2997_v17  ;;  %vm1323_vm4 = vsmask.f32 1280  ;;  %vm1570_vm7 = vsmask.f32 7942 }
  0x3d   :  { %278 = vmatprep.subr.bf16.mxu0 %v2998_v18  ;;  %vm3946_vm8 = vmand %vm1322_vm3, %vm1570_vm7 }
  0x3e   :  { %2795 = vmatpush3.bf16.msra.mxu1 %v3023_v22 }
  0x3f   :  { %2796 = vmatprep.subr.bf16.mxu1 %v3028_v25  ;;  %2202 = vperm.xlu0 %2978, %v2200_v56  }
  0x40   :  { %279 = vmatpush1.bf16.msra.mxu0 %v3000_v20 }
  0x41   :  { %280 = vmatprep.subr.bf16.mxu0 %v3002_v21 }
  0x42   :  { %2797 = vmatpush3.bf16.msra.mxu1 %v3028_v25 }
  0x43   :  { %2798 = vmatprep.subr.bf16.mxu1 %v3032_v28 }
  0x44   :  { %281 = vmatpush1.bf16.msra.mxu0 %v3004_v23 }
  0x45   :  { %612 = vmatprep.subr.bf16.mxu0 %v3275_v24 }
  0x46   :  { %2799 = vmatpush3.bf16.msra.mxu1 %v3032_v28 }
  0x47   :  { %299 = vmatmul.mubr.bf16.vlgmr.msra.gmra.mrb[0].mxu0 %v3006_v12  ;;  %2808 = vmatprep.subr.bf16.mxu1 %v4498_v36 }
  0x48   :  { %613 = vmatpush1.bf16.msra.mxu0 %v3277_v26  ;;  %308 = vmatprep.mubr.bf16.mxu0 %v4496_v0 }
  0x49   :  { %614 = vmatprep.subr.bf16.mxu0 %v3280_v27  ;;  %2801 = vmatmul.mubr.bf16.vlgmr.msra.gmra.mrb[0].mxu1 %v3015_v31 }
  0x4a   :  { %2809 = vmatpush3.bf16.msra.mxu1 %v3298_v34  ;;  %2804 = vmatprep.mubr.bf16.mxu1 %v3024_v38 }
  0x4b   :  { %2810 = vmatprep.subr.bf16.mxu1 %v4498_v36 }
  0x4c   :  { %615 = vmatpush1.bf16.msra.mxu0 %v3283_v29 }
  0x4d   :  { %616 = vmatprep.subr.bf16.mxu0 %v3287_v30 }
  0x4e   :  { %2811 = vmatpush3.bf16.msra.mxu1 %v3319_v41 }
  0x4f   :  { %309 = vmatmul.mubr.bf16.gmra.mrb[4].mxu0 %v3015_v31  ;;  %2812 = vmatprep.subr.bf16.mxu1 %v4498_v36 }
  0x50   :  { %617 = vmatpush1.bf16.msra.mxu0 %v3293_v32  ;;  %318 = vmatprep.mubr.bf16.mxu0 %v4496_v0 }
  0x51   :  { %618 = vmatprep.subr.bf16.mxu0 %v3296_v33  ;;  %2805 = vmatmul.mubr.bf16.gmra.mrb[4].mxu1 %v3033_v45 }
  0x52   :  { %2813 = vmatpush3.bf16.msra.mxu1 %v3330_v44  ;;  %2824 = vmatprep.mubr.msk.bf16.mxu1 %vm3206_vm2, %v4498_v36 }
  0x53   :  { %2814 = vmatprep.subr.bf16.mxu1 %v4498_v36 }
  0x54   :  { %619 = vmatpush1.bf16.msra.mxu0 %v3308_v37 }
  0x55   :  { %620 = vmatprep.subr.bf16.mxu0 %v3316_v40 }
  0x56   :  { %2815 = vmatpush3.bf16.msra.mxu1 %v3345_v49 }
  0x57   :  { %319 = vmatmul.mubr.bf16.gmra.mrb[8].mxu0 %v3024_v38  ;;  %2816 = vmatprep.subr.bf16.mxu1 %v4498_v36 }
  0x58   :  { %621 = vmatpush1.bf16.msra.mxu0 %v3323_v42  ;;  %328 = vmatprep.mubr.bf16.mxu0 %v4496_v0 }
  0x59   :  { %622 = vmatprep.subr.bf16.mxu0 %v3326_v43 }
  0x5a   :  { %2817 = vmatpush3.bf16.msra.mxu1 %v3358_v52 }
  0x5b   :  { %2818 = vmatprep.subr.bf16.mxu1 %v4498_v36 }
  0x5c   :  { %623 = vmatpush1.bf16.msra.mxu0 %v3337_v46 }
  0x5d   :  { %624 = vmatprep.subr.bf16.mxu0 %v3342_v48 }
  0x5e   :  { %2819 = vmatpush3.bf16.msra.mxu1 %v3369_v55 }
  0x5f   :  { %329 = vmatmul.mubr.bf16.gmra.mrb[12].mxu0 %v3033_v45  ;;  %2820 = vmatprep.subr.bf16.mxu1 %v4498_v36 }
  0x60   :  { %625 = vmatpush1.bf16.msra.mxu0 %v3352_v50  ;;  %644 = vmatprep.mubr.bf16.mxu0 %v4496_v0 }
  0x61   :  { %626 = vmatprep.subr.bf16.mxu0 %v3355_v51 }
  0x62   :  { %2821 = vmatpush3.bf16.msra.mxu1 %v3376_v57 }
  0x63   :  { %2822 = vmatprep.subr.bf16.mxu1 %v4498_v36 }
  0x64   :  { %627 = vmatpush1.bf16.msra.mxu0 %v3364_v54 }
  0x65   :  { %859 = vmatprep.subr.bf16.mxu0 %v3275_v24 }
  0x66   :  { %2823 = vmatpush3.bf16.msra.mxu1 %v3383_v59 }
  0x67   :  { %645 = vmatmul.mubr.bf16.vlgmr.msra.gmra.mrb[16].mxu0 %v3207_v58  ;;  %2828 = vmatprep.subr.bf16.mxu1 %v4498_v36 }
  0x68   :  { %860 = vmatpush1.bf16.msra.mxu0 %v3277_v26  ;;  %891 = vmatprep.mubr.bf16.mxu0 %v4496_v0 }
  0x69   :  { %861 = vmatprep.subr.bf16.mxu0 %v3280_v27  ;;  %2825 = vmatmul.mubr.bf16.vlgmr.msra.gmra.mrb[8].mxu1 %v3207_v58 }
  0x6a   :  { %2829 = vmatpush3.bf16.msra.mxu1 %v3298_v34  ;;  %2844 = vmatprep.mubr.msk.bf16.mxu1 %vm3206_vm2, %v4498_v36 }
  0x6b   :  { %2830 = vmatprep.subr.bf16.mxu1 %v4498_v36 }
  0x6c   :  { %862 = vmatpush1.bf16.msra.mxu0 %v3283_v29 }
  0x6d   :  { %863 = vmatprep.subr.bf16.mxu0 %v3287_v30 }
  0x6e   :  { %2831 = vmatpush3.bf16.msra.mxu1 %v3319_v41 }
  0x6f   :  { %2832 = vmatprep.subr.bf16.mxu1 %v4498_v36 }
  0x70   :  { %864 = vmatpush1.bf16.msra.mxu0 %v3293_v32 }
  0x71   :  { %865 = vmatprep.subr.bf16.mxu0 %v3296_v33 }
  0x72   :  { %2833 = vmatpush3.bf16.msra.mxu1 %v3330_v44 }
  0x73   :  { %2834 = vmatprep.subr.bf16.mxu1 %v4498_v36 }
  0x74   :  { %866 = vmatpush1.bf16.msra.mxu0 %v3308_v37 }
  0x75   :  { %867 = vmatprep.subr.bf16.mxu0 %v3316_v40 }
  0x76   :  { %2835 = vmatpush3.bf16.msra.mxu1 %v3345_v49 }
  0x77   :  { %2836 = vmatprep.subr.bf16.mxu1 %v4498_v36 }
  0x78   :  { %868 = vmatpush1.bf16.msra.mxu0 %v3323_v42 }
  0x79   :  { %869 = vmatprep.subr.bf16.mxu0 %v3326_v43 }
  0x7a   :  { %2837 = vmatpush3.bf16.msra.mxu1 %v3358_v52 }
  0x7b   :  { %2838 = vmatprep.subr.bf16.mxu1 %v4498_v36 }
  0x7c   :  { %870 = vmatpush1.bf16.msra.mxu0 %v3337_v46 }
  0x7d   :  { %871 = vmatprep.subr.bf16.mxu0 %v3342_v48 }
  0x7e   :  { %2839 = vmatpush3.bf16.msra.mxu1 %v3369_v55 }
  0x7f   :  { %2840 = vmatprep.subr.bf16.mxu1 %v4498_v36 }
  0x80   :  { %872 = vmatpush1.bf16.msra.mxu0 %v3352_v50 }
  0x81   :  { %873 = vmatprep.subr.bf16.mxu0 %v3355_v51 }
  0x82   :  { %2841 = vmatpush3.bf16.msra.mxu1 %v3376_v57 }
  0x83   :  { %2842 = vmatprep.subr.bf16.mxu1 %v4498_v36 }
  0x84   :  { %874 = vmatpush1.bf16.msra.mxu0 %v3364_v54 }
  0x85   :  { %1106 = vmatprep.subr.bf16.mxu0 %v3275_v24 }
  0x86   :  { %2843 = vmatpush3.bf16.msra.mxu1 %v3383_v59 }
  0x87   :  { %2848 = vmatprep.subr.bf16.mxu1 %v4498_v36 }
 0x11a   :  { %v300_v2 = vpop.f32.mrb[0].mxu0 }
 0x11b   :  { %v302_v4 = vpop.f32.mrb[1].mxu0 }
 0x11c   :  { %v304_v6 = vpop.f32.mrb[2].mxu0  ;;  %v2802_v17 = vpop.f32.mrb[0].mxu1 }
 0x11d   :  { %v3427_v7 = vadd.f32 %v304_v6, %v102_v3  ;;  %v306_v8 = vpop.f32.mrb[3].mxu0  ;;  %v3443_v20 = vadd.f32 %v2802_v17, %v3434_v11  ;;  %v373_v21 = vpop.f32.mrb[1].mxu1 }
 0x11e   :  { %v3430_v10 = vadd.f32 %v306_v8, %v106_v5  ;;  %v2803_v23 = vpop.f32.mrb[2].mxu1 }
 0x11f   :  { %v3448_v25 = vadd.f32 %v2803_v23, %v3434_v11  ;;  %v376_v28 = vpop.f32.mrb[3].mxu1 }
 0x120   :  { %v3451_v31 = vadd.f32 %v376_v28, %v3434_v11 }
 0x121   :  { %4502 = vst [vmem:[#allocation11_spill] sm:$0xff] %v3448_v25 }
 0x122   :  { %v310_v12 = vpop.f32.mrb[4].mxu0 }
 0x123   :  { %v3436_v13 = vadd.f32 %v310_v12, %v102_v3  ;;  %v312_v14 = vpop.f32.mrb[5].mxu0 }
 0x124   :  { %v3438_v15 = vadd.f32 %v312_v14, %v106_v5  ;;  %v314_v16 = vpop.f32.mrb[6].mxu0  ;;  %v2806_v56 = vpop.f32.mrb[4].mxu1 }
 0x125   :  { %v3440_v18 = vadd.f32 %v314_v16, %v102_v3  ;;  %v316_v19 = vpop.f32.mrb[7].mxu0  ;;  %v3460_v63 = vadd.f32 %v2806_v56, %v3434_v11  ;;  %v389_v6 = vpop.f32.mrb[5].mxu1  ;;  %v461_v56 = vld [vmem:[%s4494_s5] sm:$0x7] }
 0x126   :  { %v3445_v22 = vadd.f32 %v316_v19, %v106_v5  ;;  %v3465_v12 = vadd.f32 %v389_v6, %v3434_v11  ;;  %v2807_v14 = vpop.f32.mrb[6].mxu1  ;;  %v3484_v0 = vrot.slane %v461_v56, %v101_v62 }
 0x127   :  { %4506 = vst [vmem:[#allocation15_spill] sm:$0xff] %v3460_v63  ;;  %v3468_v16 = vadd.f32 %v2807_v14, %v3434_v11  ;;  %v392_v17 = vpop.f32.mrb[7].mxu1 }
 0x128   :  { %4501 = vst [vmem:[#allocation10_spill] sm:$0xff] %v3445_v22  ;;  %4508 = vst [vmem:[#allocation17_spill] sm:$0xff] %v3465_v12  ;;  %v3471_v19 = vadd.f32 %v392_v17, %v3434_v11  ;;  %v3486_v17 = vrot.slane %v461_v56, %v105_v1 }
 0x129   :  { %4509 = vst [vmem:[#allocation18_spill] sm:$0xff] %v3468_v16  ;;  %v303_v16 = vadd.f32 %v302_v4, %v106_v5 }
 0x12a   :  { %v320_v38 = vpop.f32.mrb[8].mxu0  ;;  %4510 = vst [vmem:[#allocation19_spill] sm:$0xff] %v3471_v19 }
 0x12b   :  { %v3453_v39 = vadd.f32 %v320_v38, %v102_v3  ;;  %v322_v45 = vpop.f32.mrb[9].mxu0 }
 0x12c   :  { %v3455_v47 = vadd.f32 %v322_v45, %v106_v5  ;;  %v324_v53 = vpop.f32.mrb[10].mxu0 }
 0x12d   :  { %4503 = vst [vmem:[#allocation12_spill] sm:$0xff] %v3453_v39  ;;  %v3457_v58 = vadd.f32 %v324_v53, %v102_v3  ;;  %v326_v60 = vpop.f32.mrb[11].mxu0 }
 0x12e   :  { %4504 = vst [vmem:[#allocation13_spill] sm:$0xff] %v3455_v47  ;;  %v3462_v8 = vadd.f32 %v326_v60, %v106_v5 }
 0x12f   :  { %4505 = vst [vmem:[#allocation14_spill] sm:$0xff] %v3457_v58 }
 0x130   :  { %4507 = vst [vmem:[#allocation16_spill] sm:$0xff] %v3462_v8 }
 0x132   :  { %v330_v23 = vpop.f32.mrb[12].mxu0 }
 0x133   :  { %v3473_v28 = vadd.f32 %v330_v23, %v102_v3  ;;  %v332_v38 = vpop.f32.mrb[13].mxu0  ;;  %v301_v23 = vadd.f32 %v300_v2, %v102_v3 }
 0x134   :  { %v3475_v45 = vadd.f32 %v332_v38, %v106_v5  ;;  %v334_v53 = vpop.f32.mrb[14].mxu0 }
 0x135   :  { %4511 = vst [vmem:[#allocation20_spill] sm:$0xff] %v3473_v28  ;;  %v3480_v60 = vadd.f32 %v334_v53, %v102_v3  ;;  %v336_v6 = vpop.f32.mrb[15].mxu0 }
 0x136   :  { %4512 = vst [vmem:[#allocation21_spill] sm:$0xff] %v3475_v45  ;;  %v3482_v14 = vadd.f32 %v336_v6, %v106_v5 }
 0x137   :  { %4513 = vst [vmem:[#allocation22_spill] sm:$0xff] %v3480_v60 }
 0x138   :  { %4514 = vst [vmem:[#allocation23_spill] sm:$0xff] %v3482_v14 }
 0x13a   :  { %v646_v36 = vpop.f32.mrb[16].mxu0 }
 0x13b   :  { %v647_v9 = vadd.f32 %v646_v36, %v3484_v0  ;;  %v648_v38 = vpop.f32.mrb[17].mxu0  ;;  %v4515_v36 = vsub.s32 2, %v3420_v61 }
 0x13c   :  { %v649_v63 = vadd.f32 %v648_v38, %v3486_v17  ;;  %v650_v45 = vpop.f32.mrb[18].mxu0  ;;  %v687_v6 = vpop.f32.mrb[8].mxu1 }
 0x13d   :  { %v693_v28 = vadd.f32 %v647_v9, %v301_v23  ;;  %v651_v19 = vpop.f32.mrb[19].mxu0  ;;  %v2826_v14 = vpop.f32.mrb[9].mxu1  ;;  %v3492_v2 = vrot.slane %v461_v56, %v4515_v36  ;;  %v374_v9 = vadd.f32 %v373_v21, %v3434_v11  ;;  %v3209_v23 = vmov 286326784  }
 0x13e   :  { %v700_v53 = vadd.f32 %v649_v63, %v303_v16  ;;  %v690_v62 = vpop.f32.mrb[10].mxu1  ;;  %v718_v14 = vpop.permute.xlu0 %717  ;;  %v764_v38 = vunpack.c.l.s4 %v3209_v23 }
 0x13f   :  { %v2646_v60 = vmul.f32 -1.442695, %v693_v28  ;;  %v2827_v8 = vpop.f32.mrb[11].mxu1  ;;  %v688_v3 = vadd.f32 %v687_v6, %v3492_v2  ;;  %vm719_vm5 = vcmp.eq.s32.totalorder %v718_v14, 1 }
 0x140   :  { %v2647_v1 = vmul.f32 -1.442695, %v700_v53  ;;  %v3208_v8 = vmov 1966171168   ;;  %vm2694_vm6 = vmpackc.low %vm719_vm5, %vm719_vm5 }
 0x141   :  { %3048 = vpow2.f32 %v2646_v60  ;;  %v724_v28 = vunpack.c.l.s4 %v3208_v8 }
 0x142   :  { %3050 = vpow2.f32 %v2647_v1  ;;  %v765_v1 = vunpack.c.0.s8 %v764_v38 }
 0x143   :  { %v725_v60 = vunpack.c.0.s8 %v724_v28 }
 0x145   :  { %v3497_v6 = vsub.s32 %v725_v60, %v3420_v61 }
 0x14b   :  { %v3049_v58 = vpop.eup %3048 }
 0x14c   :  { %v697_v12 = vadd.f32 1.0, %v3049_v58  ;;  %v3051_v4 = vpop.eup %3050 }
 0x14d   :  { %v704_v16 = vadd.f32 1.0, %v3051_v4 }
 0x14e   :  { %3052 = vrcp.f32 %v697_v12 }
 0x158   :  { %v3053_v5 = vpop.eup %3052 }
 0x159   :  { %v707_v63 = vmul.f32 %v3053_v5, %v688_v3  ;;  %v4516_v3 = vmov 0.0  }
 0x15b   :  { %v708_v19 = vadd.f32 %v707_v63, %v374_v9  ;;  %v4517_v9 = vmov 0   ;;  %v3513_v63 = vsub.s32 %v765_v1, %v3420_v61  ;;  %v830_v61 = vld [vmem:[%s4495_s6] sm:$0x1] }
 0x15d   :  { %3054 = vtanh.f32 %v708_v19 }
 0x15e   :  { %3056 = vrcp.f32 %v704_v16 }
 0x167   :  { %v3055_v58 = vpop.eup %3054 }
 0x168   :  { %v710_v45 = vsub.f32 0.0, %v3055_v58  ;;  %v3057_v12 = vpop.eup %3056 }
 0x16a   :  { %v711_v56 = vmul.f32 %v3057_v12, %v710_v45 }
 0x16c   :  { %v712_v53 = vadd.f32 %v3055_v58, %v711_v56  ;;  %v1953_v58 = vsel %vm1952_vm12, 1, %v4517_v9 }
 0x16e   :  { %v3499_v11 = vsel %vm719_vm5, %v712_v53, 0.0  ;;  %v2695_v21 = vpack.c.bf16 %v712_v53, %v712_v53  ;;  %v833_v53 = vld [vmem:[%s4495_s6 + $0x4] sm:$0x1]  ;;  %vm3787_vm5 = vmand %vm1322_vm3, %vm1323_vm4 }
 0x16f   :  { %v721_v62 = vpack.c.bf16 %v3499_v11, %v3499_v11 }
 0x170   :  { %2696 = vmatmul.mubr.msk.bf16.vlgmr.msra.gmra.mrb[20].mxu0 %vm2694_vm6, %v2695_v21  ;;  %2845 = vmatmul.mubr.msk.bf16.vlgmr.msra.gmra.mrb[12].mxu1 %vm2694_vm6, %v2695_v21  ;;  %v836_v21 = vld [vmem:[%s4495_s6 + $0x8] sm:$0x1] }
 0x171   :  { %v729_v36 = vrot.slane %v721_v62, %v3497_v6  ;;  %1107 = vmatpush1.bf16.msra.mxu0 %v3277_v26  ;;  %2849 = vmatpush3.bf16.msra.mxu1 %v3298_v34  ;;  %v842_v62 = vld [vmem:[%s4495_s6 + $0x10] sm:$0x1] }
 0x172   :  { %1108 = vmatprep.subr.bf16.mxu0 %v3280_v27  ;;  %2850 = vmatprep.subr.bf16.mxu1 %v4516_v3 }
 0x173   :  { %v730_v4 = vcombine.high %v729_v36, %v729_v36  ;;  %v737_v5 = vrot.slane %v729_v36, %v3497_v6  ;;  %1138 = vmatprep.mubr.bf16.mxu0 %v4517_v9  ;;  %2864 = vmatprep.mubr.msk.bf16.mxu1 %vm3206_vm2, %v4516_v3 }
 0x175   :  { %v744_v16 = vrot.slane %v730_v4, %v3497_v6  ;;  %v745_v19 = vcombine.high %v737_v5, %v737_v5  ;;  %v748_v8 = vunpack.i.h.s16 %v737_v5  ;;  %v2648_v28 = vpack.i.b16 %v737_v5, %v737_v5  ;;  %1109 = vmatpush1.bf16.msra.mxu0 %v3283_v29  ;;  %2851 = vmatpush3.bf16.msra.mxu1 %v3319_v41 }
 0x176   :  { %1110 = vmatprep.subr.bf16.mxu0 %v3287_v30  ;;  %2852 = vmatprep.subr.bf16.mxu1 %v4516_v3 }
 0x177   :  { %v746_v45 = vcombine.high %v744_v16, %v744_v16  ;;  %v750_v12 = vunpack.i.h.s16 %v744_v16  ;;  %v752_v60 = vunpack.i.h.s16 %v745_v19  ;;  %v756_v14 = vpack.i.b16 %v748_v8, %v748_v8  ;;  %v848_v8 = vld [vmem:[%s4495_s6 + $0x18] sm:$0x1] }
 0x178   :  { %v2649_v56 = vpack.i.b16 %v744_v16, %v744_v16  ;;  %v2650_v23 = vpack.i.b16 %v745_v19, %v745_v19  ;;  %v769_v38 = vrot.slane %v2648_v28, %v3513_v63  ;;  %v839_v16 = vld [vmem:[%s4495_s6 + $0xc] sm:$0x1]  ;;  %v845_v19 = vld [vmem:[%s4495_s6 + $0x14] sm:$0x1] }
 0x179   :  { %v754_v1 = vunpack.i.h.s16 %v746_v45  ;;  %v758_v36 = vpack.i.b16 %v750_v12, %v750_v12  ;;  %v760_v4 = vpack.i.b16 %v752_v60, %v752_v60  ;;  %v2651_v5 = vpack.i.b16 %v746_v45, %v746_v45  ;;  %1111 = vmatpush1.bf16.msra.mxu0 %v3293_v32  ;;  %2853 = vmatpush3.bf16.msra.mxu1 %v3330_v44 }
 0x17a   :  { %v776_v28 = vrot.slane %v756_v14, %v3513_v63  ;;  %v783_v45 = vrot.slane %v2649_v56, %v3513_v63  ;;  %v797_v12 = vrot.slane %v2650_v23, %v3513_v63  ;;  %v831_v60 = vsel %vm3521_vm9, %v769_v38, %v830_v61  ;;  %1112 = vmatprep.subr.bf16.mxu0 %v3296_v33  ;;  %v851_v14 = vld [vmem:[%s4495_s6 + $0x1c] sm:$0x1] }
 0x17b   :  { %v762_v47 = vpack.i.b16 %v754_v1, %v754_v1  ;;  %v790_v39 = vrot.slane %v758_v36, %v3513_v63  ;;  %v804_v25 = vrot.slane %v760_v4, %v3513_v63  ;;  %v811_v22 = vrot.slane %v2651_v5, %v3513_v63  ;;  %832 = vst [vmem:[%s4495_s6] sm:$0x1] %v831_v60 }
 0x17c   :  { %2854 = vmatprep.subr.bf16.mxu1 %v4516_v3  ;;  %v834_v61 = vsel %vm3521_vm9, %v776_v28, %v833_v53  ;;  %v837_v56 = vsel %vm3521_vm9, %v783_v45, %v836_v21  ;;  %v843_v23 = vsel %vm3521_vm9, %v797_v12, %v842_v62  ;;  %v2448_v21 = vsel %vm2447_vm13, 1, %v4517_v9 }
 0x17d   :  { %v818_v38 = vrot.slane %v762_v47, %v3513_v63  ;;  %835 = vst [vmem:[%s4495_s6 + $0x4] sm:$0x1] %v834_v61  ;;  %838 = vst [vmem:[%s4495_s6 + $0x8] sm:$0x1] %v837_v56  ;;  %v840_v1 = vsel %vm3521_vm9, %v790_v39, %v839_v16  ;;  %v846_v53 = vsel %vm3521_vm9, %v804_v25, %v845_v19  ;;  %1113 = vmatpush1.bf16.msra.mxu0 %v3308_v37 }
 0x17e   :  { %844 = vst [vmem:[%s4495_s6 + $0x10] sm:$0x1] %v843_v23  ;;  %v849_v47 = vsel %vm3521_vm9, %v811_v22, %v848_v8  ;;  %841 = vst [vmem:[%s4495_s6 + $0xc] sm:$0x1] %v840_v1  ;;  %2855 = vmatpush3.bf16.msra.mxu1 %v3345_v49  ;;  %1114 = vmatprep.subr.bf16.mxu0 %v3316_v40  ;;  %v1210_v25 = vsel %vm1209_vm10, 1, %v4517_v9  ;;  %v1458_v39 = vsel %vm1457_vm11, 1, %v4517_v9 }
 0x17f   :  { %847 = vst [vmem:[%s4495_s6 + $0x14] sm:$0x1] %v846_v53  ;;  %850 = vst [vmem:[%s4495_s6 + $0x18] sm:$0x1] %v849_v47  ;;  %v852_v22 = vsel %vm3521_vm9, %v818_v38, %v851_v14  ;;  %2856 = vmatprep.subr.bf16.mxu1 %v4516_v3  ;;  %1212 = vperm.xlu1 %2979, %v1210_v25   ;;  %vm1817_vm10 = vcmask 1042434  }
 0x180   :  { %853 = vst [vmem:[%s4495_s6 + $0x1c] sm:$0x1] %v852_v22  ;;  %vm1818_vm11 = vsmask.f32 2304 }
 0x181   :  { %1115 = vmatpush1.bf16.msra.mxu0 %v3323_v42  ;;  %vm4083_vm12 = vmand %vm1817_vm10, %vm1818_vm11 }
 0x182   :  { %2857 = vmatpush3.bf16.msra.mxu1 %v3358_v52  ;;  %1116 = vmatprep.subr.bf16.mxu0 %v3326_v43 }
 0x183   :  { %2858 = vmatprep.subr.bf16.mxu1 %v4516_v3  ;;  %1460 = vperm.xlu1 %2979, %v1458_v39  }
 0x185   :  { %1117 = vmatpush1.bf16.msra.mxu0 %v3337_v46 }
 0x186   :  { %2859 = vmatpush3.bf16.msra.mxu1 %v3369_v55  ;;  %1118 = vmatprep.subr.bf16.mxu0 %v3342_v48 }
 0x187   :  { %2860 = vmatprep.subr.bf16.mxu1 %v4516_v3  ;;  %1955 = vperm.xlu1 %2979, %v1953_v58  }
 0x189   :  { %1119 = vmatpush1.bf16.msra.mxu0 %v3352_v50 }
 0x18a   :  { %2861 = vmatpush3.bf16.msra.mxu1 %v3376_v57  ;;  %1120 = vmatprep.subr.bf16.mxu0 %v3355_v51 }
 0x18b   :  { %2862 = vmatprep.subr.bf16.mxu1 %v4516_v3  ;;  %2450 = vperm.xlu1 %2979, %v2448_v21   ;;  %v966_v21 = vpop.permute.xlu0 %965 }
 0x18c   :  { %vm967_vm14 = vcmp.eq.s32.totalorder %v966_v21, 1 }
 0x18d   :  { %1121 = vmatpush1.bf16.msra.mxu0 %v3364_v54 }
 0x18e   :  { %2863 = vmatpush3.bf16.msra.mxu1 %v3383_v59  ;;  %1354 = vmatprep.subr.bf16.mxu0 %v3275_v24 }
 0x18f   :  { %2868 = vmatprep.subr.bf16.mxu1 %v4516_v3 }
 0x243   :  { %v893_v62 = vpop.f32.mrb[20].mxu0  ;;  %v934_v36 = vpop.f32.mrb[12].mxu1 }
 0x244   :  { %v894_v4 = vadd.f32 %v893_v62, %v3484_v0  ;;  %v895_v5 = vpop.f32.mrb[21].mxu0  ;;  %v2846_v16 = vpop.f32.mrb[13].mxu1  ;;  %v935_v1 = vadd.f32 %v934_v36, %v3492_v2 }
 0x245   :  { %v896_v19 = vadd.f32 %v895_v5, %v3486_v17  ;;  %v897_v8 = vpop.f32.mrb[22].mxu0  ;;  %v937_v28 = vpop.f32.mrb[14].mxu1 }
 0x246   :  { %v940_v45 = vadd.f32 %v894_v4, %v3427_v7  ;;  %v898_v12 = vpop.f32.mrb[23].mxu0  ;;  %v2847_v60 = vpop.f32.mrb[15].mxu1 }
 0x247   :  { %v947_v35 = vadd.f32 %v896_v19, %v3430_v10 }
 0x248   :  { %v2652_v14 = vmul.f32 -1.442695, %v940_v45 }
 0x249   :  { %v2653_v61 = vmul.f32 -1.442695, %v947_v35 }
 0x24a   :  { %3058 = vpow2.f32 %v2652_v14 }
 0x24b   :  { %3060 = vpow2.f32 %v2653_v61 }
 0x254   :  { %v3059_v56 = vpop.eup %3058 }
 0x255   :  { %v944_v23 = vadd.f32 1.0, %v3059_v56  ;;  %v3061_v38 = vpop.eup %3060 }
 0x256   :  { %v951_v25 = vadd.f32 1.0, %v3061_v38 }
 0x257   :  { %3062 = vrcp.f32 %v944_v23 }
 0x261   :  { %v3063_v53 = vpop.eup %3062 }
 0x262   :  { %v954_v47 = vmul.f32 %v3063_v53, %v935_v1 }
 0x264   :  { %v955_v22 = vadd.f32 %v954_v47, %v3451_v31  ;;  %v1077_v47 = vld [vmem:[%s4495_s6] sm:$0x1] }
 0x266   :  { %3064 = vtanh.f32 %v955_v22 }
 0x267   :  { %3066 = vrcp.f32 %v951_v25 }
 0x270   :  { %v3065_v7 = vpop.eup %3064 }
 0x271   :  { %v957_v10 = vsub.f32 %v3499_v11, %v3065_v7  ;;  %v3067_v39 = vpop.eup %3066 }
 0x273   :  { %v958_v58 = vmul.f32 %v3067_v39, %v957_v10 }
 0x275   :  { %v959_v62 = vadd.f32 %v3065_v7, %v958_v58 }
 0x277   :  { %v968_v4 = vsel %vm967_vm14, %v959_v62, 0.0  ;;  %v3637_v5 = vsel %vm967_vm14, %v959_v62, %v3499_v11  ;;  %v1080_v62 = vld [vmem:[%s4495_s6 + $0x4] sm:$0x1]  ;;  %vm2065_vm14 = vsmask.f32 7946 }
 0x278   :  { %v969_v36 = vpack.c.bf16 %v968_v4, %v968_v4  ;;  %v1105_v16 = vpack.c.bf16 %v3637_v5, %v3637_v5  ;;  %v1083_v4 = vld [vmem:[%s4495_s6 + $0x8] sm:$0x1]  ;;  %vm4210_vm15 = vmand %vm1817_vm10, %vm2065_vm14 }
 0x27a   :  { %v977_v31 = vrot.slane %v969_v36, %v3497_v6  ;;  %1139 = vmatmul.mubr.bf16.vlgmr.msra.gmra.mrb[24].mxu0 %v1105_v16  ;;  %2865 = vmatmul.mubr.bf16.vlgmr.msra.gmra.mrb[16].mxu1 %v1105_v16 }
 0x27b   :  { %1355 = vmatpush1.bf16.msra.mxu0 %v3277_v26  ;;  %2869 = vmatpush3.bf16.msra.mxu1 %v3298_v34 }
 0x27c   :  { %v978_v19 = vcombine.high %v977_v31, %v977_v31  ;;  %v985_v8 = vrot.slane %v977_v31, %v3497_v6  ;;  %1356 = vmatprep.subr.bf16.mxu0 %v3280_v27  ;;  %2870 = vmatprep.subr.bf16.mxu1 %v4516_v3  ;;  %v1086_v31 = vld [vmem:[%s4495_s6 + $0xc] sm:$0x1] }
 0x27d   :  { %1386 = vmatprep.mubr.bf16.mxu0 %v4517_v9  ;;  %2884 = vmatprep.mubr.msk.bf16.mxu1 %vm3206_vm2, %v4516_v3 }
 0x27e   :  { %v992_v11 = vrot.slane %v978_v19, %v3497_v6  ;;  %v993_v28 = vcombine.high %v985_v8, %v985_v8  ;;  %v996_v45 = vunpack.i.h.s16 %v985_v8  ;;  %v2654_v26 = vpack.i.b16 %v985_v8, %v985_v8  ;;  %v1092_v8 = vld [vmem:[%s4495_s6 + $0x14] sm:$0x1] }
 0x27f   :  { %1357 = vmatpush1.bf16.msra.mxu0 %v3283_v29  ;;  %2871 = vmatpush3.bf16.msra.mxu1 %v3319_v41 }
 0x280   :  { %v994_v12 = vcombine.high %v992_v11, %v992_v11  ;;  %v998_v60 = vunpack.i.h.s16 %v992_v11  ;;  %v1000_v35 = vunpack.i.h.s16 %v993_v28  ;;  %v1004_v14 = vpack.i.b16 %v996_v45, %v996_v45  ;;  %1358 = vmatprep.subr.bf16.mxu0 %v3287_v30  ;;  %2872 = vmatprep.subr.bf16.mxu1 %v4516_v3 }
 0x281   :  { %v2655_v61 = vpack.i.b16 %v992_v11, %v992_v11  ;;  %v2656_v56 = vpack.i.b16 %v993_v28, %v993_v28  ;;  %v1017_v23 = vrot.slane %v2654_v26, %v3513_v63  ;;  %v1095_v11 = vld [vmem:[%s4495_s6 + $0x18] sm:$0x1] }
 0x282   :  { %v1002_v29 = vunpack.i.h.s16 %v994_v12  ;;  %v1006_v38 = vpack.i.b16 %v998_v60, %v998_v60  ;;  %v1008_v1 = vpack.i.b16 %v1000_v35, %v1000_v35  ;;  %v2657_v53 = vpack.i.b16 %v994_v12, %v994_v12  ;;  %v1098_v12 = vld [vmem:[%s4495_s6 + $0x1c] sm:$0x1] }
 0x283   :  { %v1024_v22 = vrot.slane %v1004_v14, %v3513_v63  ;;  %v1031_v25 = vrot.slane %v2655_v61, %v3513_v63  ;;  %v1045_v30 = vrot.slane %v2656_v56, %v3513_v63  ;;  %v1078_v7 = vsel %vm3654_vm0, %v1017_v23, %v1077_v47  ;;  %1359 = vmatpush1.bf16.msra.mxu0 %v3293_v32  ;;  %v1089_v32 = vld [vmem:[%s4495_s6 + $0x10] sm:$0x1] }
 0x284   :  { %v1010_v10 = vpack.i.b16 %v1002_v29, %v1002_v29  ;;  %v1038_v39 = vrot.slane %v1006_v38, %v3513_v63  ;;  %v1052_v58 = vrot.slane %v1008_v1, %v3513_v63  ;;  %v1059_v21 = vrot.slane %v2657_v53, %v3513_v63  ;;  %1079 = vst [vmem:[%s4495_s6] sm:$0x1] %v1078_v7 }
 0x285   :  { %2873 = vmatpush3.bf16.msra.mxu1 %v3330_v44  ;;  %v1081_v36 = vsel %vm3654_vm0, %v1024_v22, %v1080_v62  ;;  %v1084_v16 = vsel %vm3654_vm0, %v1031_v25, %v1083_v4  ;;  %v1090_v19 = vsel %vm3654_vm0, %v1045_v30, %v1089_v32  ;;  %1360 = vmatprep.subr.bf16.mxu0 %v3296_v33  ;;  %v1213_v25 = vpop.permute.xlu1 %1212  ;;  %v3769_v62 = vld [vmem:[#allocation6] ss:$12 sps:$4 sm:$0xff]  }
 0x286   :  { %2874 = vmatprep.subr.bf16.mxu1 %v4516_v3  ;;  %v1066_v28 = vrot.slane %v1010_v10, %v3513_v63  ;;  %1082 = vst [vmem:[%s4495_s6 + $0x4] sm:$0x1] %v1081_v36  ;;  %1085 = vst [vmem:[%s4495_s6 + $0x8] sm:$0x1] %v1084_v16  ;;  %v1087_v45 = vsel %vm3654_vm0, %v1038_v39, %v1086_v31  ;;  %v1093_v33 = vsel %vm3654_vm0, %v1052_v58, %v1092_v8  ;;  %v3774_v36 = vld [vmem:[#allocation6 + $0x1c] ss:$12 sps:$4 sm:$0xff]  }
 0x287   :  { %1091 = vst [vmem:[%s4495_s6 + $0x10] sm:$0x1] %v1090_v19  ;;  %v1096_v26 = vsel %vm3654_vm0, %v1059_v21, %v1095_v11  ;;  %1088 = vst [vmem:[%s4495_s6 + $0xc] sm:$0x1] %v1087_v45  ;;  %1361 = vmatpush1.bf16.msra.mxu0 %v3308_v37  ;;  %vm1214_vm1 = vcmp.eq.s32.totalorder %v1213_v25, 1 }
 0x288   :  { %1094 = vst [vmem:[%s4495_s6 + $0x14] sm:$0x1] %v1093_v33  ;;  %1097 = vst [vmem:[%s4495_s6 + $0x18] sm:$0x1] %v1096_v26  ;;  %v1099_v60 = vsel %vm3654_vm0, %v1066_v28, %v1098_v12  ;;  %1362 = vmatprep.subr.bf16.mxu0 %v3316_v40  ;;  %v3782_v19 = vld [vmem:[#allocation6 + $0x18] ss:$12 sps:$4 sm:$0xff]  }
 0x289   :  { %2875 = vmatpush3.bf16.msra.mxu1 %v3345_v49  ;;  %1100 = vst [vmem:[%s4495_s6 + $0x1c] sm:$0x1] %v1099_v60  ;;  %v1325_v11 = vld [vmem:[%s4495_s6] sm:$0x2]  ;;  %vm2312_vm0 = vcmask 1043459  }
 0x28a   :  { %2876 = vmatprep.subr.bf16.mxu1 %v4516_v3  ;;  %v3794_v12 = vld [vmem:[#allocation6 + $0x34] ss:$12 sps:$4 sm:$0xff]  }
 0x28b   :  { %1363 = vmatpush1.bf16.msra.mxu0 %v3323_v42 }
 0x28c   :  { %1364 = vmatprep.subr.bf16.mxu0 %v3326_v43 }
 0x28d   :  { %2877 = vmatpush3.bf16.msra.mxu1 %v3358_v52 }
 0x28e   :  { %2878 = vmatprep.subr.bf16.mxu1 %v4516_v3 }
 0x28f   :  { %1365 = vmatpush1.bf16.msra.mxu0 %v3337_v46 }
 0x290   :  { %1366 = vmatprep.subr.bf16.mxu0 %v3342_v48 }
 0x291   :  { %2879 = vmatpush3.bf16.msra.mxu1 %v3369_v55 }
 0x292   :  { %2880 = vmatprep.subr.bf16.mxu1 %v4516_v3 }
 0x293   :  { %1367 = vmatpush1.bf16.msra.mxu0 %v3352_v50 }
 0x294   :  { %1368 = vmatprep.subr.bf16.mxu0 %v3355_v51 }
 0x295   :  { %2881 = vmatpush3.bf16.msra.mxu1 %v3376_v57 }
 0x296   :  { %2882 = vmatprep.subr.bf16.mxu1 %v4516_v3 }
 0x297   :  { %1369 = vmatpush1.bf16.msra.mxu0 %v3364_v54 }
 0x298   :  { %1601 = vmatprep.subr.bf16.mxu0 %v3275_v24 }
 0x299   :  { %2883 = vmatpush3.bf16.msra.mxu1 %v3383_v59 }
 0x29a   :  { %2888 = vmatprep.subr.bf16.mxu1 %v4516_v3 }
 0x34d   :  { %v1140_v37 = vpop.f32.mrb[24].mxu0  ;;  %v1181_v40 = vpop.f32.mrb[16].mxu1 }
 0x34e   :  { %v1141_v42 = vadd.f32 %v1140_v37, %v3484_v0  ;;  %v1142_v43 = vpop.f32.mrb[25].mxu0  ;;  %v2866_v46 = vpop.f32.mrb[17].mxu1  ;;  %v1182_v29 = vadd.f32 %v1181_v40, %v3492_v2  ;;  %v1328_v40 = vld [vmem:[%s4495_s6 + $0x4] sm:$0x2] }
 0x34f   :  { %v1143_v48 = vadd.f32 %v1142_v43, %v3486_v17  ;;  %v1144_v49 = vpop.f32.mrb[26].mxu0  ;;  %v1184_v50 = vpop.f32.mrb[18].mxu1  ;;  %v1337_v43 = vld [vmem:[%s4495_s6 + $0x10] sm:$0x2] }
 0x350   :  { %v1187_v51 = vadd.f32 %v1141_v42, %v3436_v13  ;;  %v1145_v27 = vpop.f32.mrb[27].mxu0  ;;  %v2867_v54 = vpop.f32.mrb[19].mxu1  ;;  %v1331_v42 = vld [vmem:[%s4495_s6 + $0x8] sm:$0x2] }
 0x351   :  { %v1194_v35 = vadd.f32 %v1143_v48, %v3438_v15  ;;  %v1340_v27 = vld [vmem:[%s4495_s6 + $0x14] sm:$0x2]  ;;  %v1343_v54 = vld [vmem:[%s4495_s6 + $0x18] sm:$0x2] }
 0x352   :  { %v2658_v14 = vmul.f32 -1.442695, %v1187_v51  ;;  %v1334_v51 = vld [vmem:[%s4495_s6 + $0xc] sm:$0x2] }
 0x353   :  { %v2659_v24 = vmul.f32 -1.442695, %v1194_v35 }
 0x354   :  { %3068 = vpow2.f32 %v2658_v14 }
 0x355   :  { %3070 = vpow2.f32 %v2659_v24 }
 0x35e   :  { %v3069_v61 = vpop.eup %3068 }
 0x35f   :  { %v1191_v56 = vadd.f32 1.0, %v3069_v61  ;;  %v3071_v23 = vpop.eup %3070 }
 0x360   :  { %v1198_v47 = vadd.f32 1.0, %v3071_v23 }
 0x361   :  { %3072 = vrcp.f32 %v1191_v56  ;;  %v3822_v56 = vld [vmem:[#allocation6 + $0x30] ss:$12 sps:$4 sm:$0xff]  }
 0x36b   :  { %v3073_v38 = vpop.eup %3072 }
 0x36c   :  { %v1201_v1 = vmul.f32 %v3073_v38, %v1182_v29 }
 0x36e   :  { %v1202_v53 = vadd.f32 %v1201_v1, %v3443_v20 }
 0x370   :  { %3074 = vtanh.f32 %v1202_v53  ;;  %v1346_v53 = vld [vmem:[%s4495_s6 + $0x1c] sm:$0x2] }
 0x371   :  { %3076 = vrcp.f32 %v1198_v47 }
 0x37a   :  { %v3075_v13 = vpop.eup %3074 }
 0x37b   :  { %v1204_v15 = vsub.f32 %v3637_v5, %v3075_v13  ;;  %v3077_v22 = vpop.eup %3076 }
 0x37d   :  { %v1205_v30 = vmul.f32 %v3077_v22, %v1204_v15  ;;  %v3841_v22 = vld [vmem:[#allocation6 + $0x4c] ss:$12 sps:$4 sm:$0xff]  }
 0x37f   :  { %v1206_v7 = vadd.f32 %v3075_v13, %v1205_v30 }
 0x381   :  { %v1215_v10 = vsel %vm1214_vm1, %v1206_v7, 0.0  ;;  %v3764_v39 = vsel %vm1214_vm1, %v1206_v7, %v3637_v5  ;;  %vm2313_vm1 = vsmask.f32 3328 }
 0x382   :  { %v1216_v58 = vpack.c.bf16 %v1215_v10, %v1215_v10  ;;  %v1353_v21 = vpack.c.bf16 %v3764_v39, %v3764_v39  ;;  %v3870_v10 = vld [vmem:[#allocation6 + $0x48] ss:$12 sps:$4 sm:$0xff]   ;;  %vm4326_vm3 = vmand %vm2312_vm0, %vm2313_vm1 }
 0x384   :  { %v1224_v20 = vrot.slane %v1216_v58, %v3497_v6  ;;  %1387 = vmatmul.mubr.bf16.vlgmr.msra.gmra.mrb[28].mxu0 %v1353_v21  ;;  %2885 = vmatmul.mubr.bf16.vlgmr.msra.gmra.mrb[20].mxu1 %v1353_v21  ;;  %v3875_v21 = vld [vmem:[#allocation6 + $0x50] ss:$12 sps:$4 sm:$0xff]  }
 0x385   :  { %1602 = vmatpush1.bf16.msra.mxu0 %v3769_v62  ;;  %2889 = vmatpush3.bf16.msra.mxu1 %v3298_v34 }
 0x386   :  { %v1225_v4 = vcombine.high %v1224_v20, %v1224_v20  ;;  %v1232_v32 = vrot.slane %v1224_v20, %v3497_v6  ;;  %1603 = vmatprep.subr.bf16.mxu0 %v3774_v36  ;;  %2890 = vmatprep.subr.bf16.mxu1 %v4516_v3  ;;  %v3878_v20 = vld [vmem:[#allocation6 + $0x64] ss:$12 sps:$4 sm:$0xff]  }
 0x387   :  { %1633 = vmatprep.mubr.bf16.mxu0 %v4517_v9  ;;  %2904 = vmatprep.mubr.msk.bf16.mxu1 %vm3206_vm2, %v4516_v3 }
 0x388   :  { %v1239_v5 = vrot.slane %v1225_v4, %v3497_v6  ;;  %v1240_v16 = vcombine.high %v1232_v32, %v1232_v32  ;;  %v1243_v34 = vunpack.i.h.s16 %v1232_v32  ;;  %v2660_v31 = vpack.i.b16 %v1232_v32, %v1232_v32  ;;  %v3885_v4 = vld [vmem:[#allocation6 + $0x60] ss:$12 sps:$4 sm:$0xff]   ;;  %v3889_v32 = vld [vmem:[#allocation6 + $0x7c] ss:$12 sps:$4 sm:$0xff]  }
 0x389   :  { %1604 = vmatpush1.bf16.msra.mxu0 %v3782_v19  ;;  %2891 = vmatpush3.bf16.msra.mxu1 %v3319_v41 }
 0x38a   :  { %v1241_v28 = vcombine.high %v1239_v5, %v1239_v5  ;;  %v1245_v45 = vunpack.i.h.s16 %v1239_v5  ;;  %v1247_v33 = vunpack.i.h.s16 %v1240_v16  ;;  %v1251_v26 = vpack.i.b16 %v1243_v34, %v1243_v34  ;;  %1605 = vmatprep.subr.bf16.mxu0 %v3794_v12  ;;  %2892 = vmatprep.subr.bf16.mxu1 %v4516_v3  ;;  %v3901_v34 = vld [vmem:[#allocation6 + $0x90] ss:$12 sps:$4 sm:$0xff]  }
 0x38b   :  { %v2661_v41 = vpack.i.b16 %v1239_v5, %v1239_v5  ;;  %v2662_v60 = vpack.i.b16 %v1240_v16, %v1240_v16  ;;  %v1264_v37 = vrot.slane %v2660_v31, %v3513_v63  ;;  %v3893_v5 = vld [vmem:[#allocation6 + $0x78] ss:$12 sps:$4 sm:$0xff]   ;;  %v3897_v16 = vld [vmem:[#allocation6 + $0x94] ss:$12 sps:$4 sm:$0xff]  }
 0x38c   :  { %v1249_v46 = vunpack.i.h.s16 %v1241_v28  ;;  %v1253_v48 = vpack.i.b16 %v1245_v45, %v1245_v45  ;;  %v1255_v49 = vpack.i.b16 %v1247_v33, %v1247_v33  ;;  %v2663_v50 = vpack.i.b16 %v1241_v28, %v1241_v28  ;;  %v3909_v31 = vld [vmem:[#allocation6 + $0xa8] ss:$12 sps:$4 sm:$0xff]  }
 0x38d   :  { %v1271_v35 = vrot.slane %v1251_v26, %v3513_v63  ;;  %v1278_v14 = vrot.slane %v2661_v41, %v3513_v63  ;;  %v1292_v24 = vrot.slane %v2662_v60, %v3513_v63  ;;  %v1326_v61 = vsel %vm3787_vm5, %v1264_v37, %v1325_v11  ;;  %1606 = vmatpush1.bf16.msra.mxu0 %v3822_v56 }
 0x38e   :  { %v1257_v23 = vpack.i.b16 %v1249_v46, %v1249_v46  ;;  %v1285_v29 = vrot.slane %v1253_v48, %v3513_v63  ;;  %v1299_v38 = vrot.slane %v1255_v49, %v3513_v63  ;;  %v1306_v1 = vrot.slane %v2663_v50, %v3513_v63  ;;  %1327 = vst [vmem:[%s4495_s6] sm:$0x2] %v1326_v61 }
 0x38f   :  { %2893 = vmatpush3.bf16.msra.mxu1 %v3330_v44  ;;  %v1329_v47 = vsel %vm3787_vm5, %v1271_v35, %v1328_v40  ;;  %v1332_v13 = vsel %vm3787_vm5, %v1278_v14, %v1331_v42  ;;  %v1338_v15 = vsel %vm3787_vm5, %v1292_v24, %v1337_v43  ;;  %1607 = vmatprep.subr.bf16.mxu0 %v3841_v22  ;;  %v4524_v40 = vld [vmem:[#allocation10_spill] sm:$0xff]  ;;  %v4525_v35 = vld [vmem:[#allocation11_spill] sm:$0xff] }
 0x390   :  { %2894 = vmatprep.subr.bf16.mxu1 %v4516_v3  ;;  %v1313_v44 = vrot.slane %v1257_v23, %v3513_v63  ;;  %1330 = vst [vmem:[%s4495_s6 + $0x4] sm:$0x2] %v1329_v47  ;;  %1333 = vst [vmem:[%s4495_s6 + $0x8] sm:$0x2] %v1332_v13  ;;  %v1335_v25 = vsel %vm3787_vm5, %v1285_v29, %v1334_v51  ;;  %v1341_v30 = vsel %vm3787_vm5, %v1299_v38, %v1340_v27  ;;  %v1461_v38 = vpop.permute.xlu1 %1460 }
 0x391   :  { %1339 = vst [vmem:[%s4495_s6 + $0x10] sm:$0x2] %v1338_v15  ;;  %v1344_v7 = vsel %vm3787_vm5, %v1306_v1, %v1343_v54  ;;  %1336 = vst [vmem:[%s4495_s6 + $0xc] sm:$0x2] %v1335_v25  ;;  %1608 = vmatpush1.bf16.msra.mxu0 %v3870_v10  ;;  %vm1462_vm6 = vcmp.eq.s32.totalorder %v1461_v38, 1 }
 0x392   :  { %1342 = vst [vmem:[%s4495_s6 + $0x14] sm:$0x2] %v1341_v30  ;;  %1345 = vst [vmem:[%s4495_s6 + $0x18] sm:$0x2] %v1344_v7  ;;  %v1347_v58 = vsel %vm3787_vm5, %v1313_v44, %v1346_v53  ;;  %1609 = vmatprep.subr.bf16.mxu0 %v3878_v20  ;;  %v3931_v25 = vld [vmem:[#allocation6 + $0x8] ss:$12 sps:$4 sm:$0xff]  }
 0x393   :  { %2895 = vmatpush3.bf16.msra.mxu1 %v3875_v21  ;;  %1348 = vst [vmem:[%s4495_s6 + $0x1c] sm:$0x2] %v1347_v58  ;;  %vm2560_vm5 = vsmask.f32 7950 }
 0x394   :  { %2896 = vmatprep.subr.bf16.mxu1 %v4516_v3 }
 0x395   :  { %1610 = vmatpush1.bf16.msra.mxu0 %v3885_v4 }
 0x396   :  { %1611 = vmatprep.subr.bf16.mxu0 %v3889_v32 }
 0x397   :  { %2897 = vmatpush3.bf16.msra.mxu1 %v3358_v52  ;;  %v3905_v52 = vld [vmem:[#allocation6 + $0xac] ss:$12 sps:$4 sm:$0xff]  }
 0x398   :  { %2898 = vmatprep.subr.bf16.mxu1 %v4516_v3 }
 0x399   :  { %1612 = vmatpush1.bf16.msra.mxu0 %v3893_v5 }
 0x39a   :  { %1613 = vmatprep.subr.bf16.mxu0 %v3897_v16 }
 0x39b   :  { %2899 = vmatpush3.bf16.msra.mxu1 %v3369_v55  ;;  %v3913_v55 = vld [vmem:[#allocation6 + $0x4] ss:$12 sps:$4 sm:$0xff]  }
 0x39c   :  { %2900 = vmatprep.subr.bf16.mxu1 %v4516_v3 }
 0x39d   :  { %1614 = vmatpush1.bf16.msra.mxu0 %v3901_v34 }
 0x39e   :  { %1615 = vmatprep.subr.bf16.mxu0 %v3905_v52 }
 0x39f   :  { %2901 = vmatpush3.bf16.msra.mxu1 %v3376_v57 }
 0x3a0   :  { %2902 = vmatprep.subr.bf16.mxu1 %v4516_v3 }
 0x3a1   :  { %1616 = vmatpush1.bf16.msra.mxu0 %v3909_v31 }
 0x3a2   :  { %1849 = vmatprep.subr.bf16.mxu0 %v3913_v55 }
 0x3a3   :  { %2903 = vmatpush3.bf16.msra.mxu1 %v3383_v59 }
 0x3a4   :  { %2908 = vmatprep.subr.bf16.mxu1 %v4516_v3 }
 0x457   :  { %v1388_v8 = vpop.f32.mrb[28].mxu0  ;;  %v1429_v57 = vpop.f32.mrb[20].mxu1 }
 0x458   :  { %v1389_v11 = vadd.f32 %v1388_v8, %v3484_v0  ;;  %v1390_v28 = vpop.f32.mrb[29].mxu0  ;;  %v2886_v45 = vpop.f32.mrb[21].mxu1  ;;  %v1430_v51 = vadd.f32 %v1429_v57, %v3492_v2 }
 0x459   :  { %v1391_v33 = vadd.f32 %v1390_v28, %v3486_v17  ;;  %v1392_v26 = vpop.f32.mrb[30].mxu0  ;;  %v1432_v41 = vpop.f32.mrb[22].mxu1  ;;  %v4041_v28 = vld [vmem:[#allocation6 + $0x80] ss:$12 sps:$4 sm:$0xff]  }
 0x45a   :  { %v1435_v60 = vadd.f32 %v1389_v11, %v3440_v18  ;;  %v1393_v37 = vpop.f32.mrb[31].mxu0  ;;  %v2887_v59 = vpop.f32.mrb[23].mxu1  ;;  %v3942_v11 = vld [vmem:[#allocation6 + $0x20] ss:$12 sps:$4 sm:$0xff]  }
 0x45b   :  { %v1442_v42 = vadd.f32 %v1391_v33, %v4524_v40 }
 0x45c   :  { %v2664_v43 = vmul.f32 -1.442695, %v1435_v60 }
 0x45d   :  { %v2665_v46 = vmul.f32 -1.442695, %v1442_v42 }
 0x45e   :  { %3078 = vpow2.f32 %v2664_v43 }
 0x45f   :  { %3080 = vpow2.f32 %v2665_v46 }
 0x468   :  { %v3079_v48 = vpop.eup %3078 }
 0x469   :  { %v1439_v49 = vadd.f32 1.0, %v3079_v48  ;;  %v3081_v50 = vpop.eup %3080  ;;  %v1572_v48 = vld [vmem:[%s4495_s6] sm:$0x2] }
 0x46a   :  { %v1446_v24 = vadd.f32 1.0, %v3081_v50 }
 0x46b   :  { %3082 = vrcp.f32 %v1439_v49 }
 0x475   :  { %v3083_v27 = vpop.eup %3082 }
 0x476   :  { %v1449_v54 = vmul.f32 %v3083_v27, %v1430_v51 }
 0x478   :  { %v1450_v14 = vadd.f32 %v1449_v54, %v4525_v35 }
 0x47a   :  { %3084 = vtanh.f32 %v1450_v14 }
 0x47b   :  { %3086 = vrcp.f32 %v1446_v24 }
 0x484   :  { %v3085_v18 = vpop.eup %3084 }
 0x485   :  { %v1452_v61 = vsub.f32 %v3764_v39, %v3085_v18  ;;  %v3087_v23 = vpop.eup %3086 }
 0x487   :  { %v1453_v29 = vmul.f32 %v3087_v23, %v1452_v61  ;;  %v1578_v61 = vld [vmem:[%s4495_s6 + $0x8] sm:$0x2]  ;;  %v1584_v23 = vld [vmem:[%s4495_s6 + $0x10] sm:$0x2] }
 0x489   :  { %v1454_v1 = vadd.f32 %v3085_v18, %v1453_v29  ;;  %v1575_v18 = vld [vmem:[%s4495_s6 + $0x4] sm:$0x2] }
 0x48a   :  { %v3977_v29 = vld [vmem:[#allocation6 + $0x38] ss:$12 sps:$4 sm:$0xff]  }
 0x48b   :  { %v1463_v53 = vsel %vm1462_vm6, %v1454_v1, 0.0  ;;  %v3925_v47 = vsel %vm1462_vm6, %v1454_v1, %v3764_v39  ;;  %vm4413_vm6 = vmand %vm2312_vm0, %vm2560_vm5 }
 0x48c   :  { %v1464_v13 = vpack.c.bf16 %v1463_v53, %v1463_v53  ;;  %v1600_v15 = vpack.c.bf16 %v3925_v47, %v3925_v47  ;;  %v1581_v53 = vld [vmem:[%s4495_s6 + $0xc] sm:$0x2] }
 0x48e   :  { %v1472_v44 = vrot.slane %v1464_v13, %v3497_v6  ;;  %1634 = vmatmul.mubr.bf16.vlgmr.msra.gmra.mrb[32].mxu0 %v1600_v15  ;;  %2905 = vmatmul.mubr.bf16.vlgmr.msra.gmra.mrb[24].mxu1 %v1600_v15  ;;  %v1587_v15 = vld [vmem:[%s4495_s6 + $0x14] sm:$0x2] }
 0x48f   :  { %1850 = vmatpush1.bf16.msra.mxu0 %v3769_v62  ;;  %2909 = vmatpush3.bf16.msra.mxu1 %v3931_v25 }
 0x490   :  { %v1473_v30 = vcombine.high %v1472_v44, %v1472_v44  ;;  %v1480_v7 = vrot.slane %v1472_v44, %v3497_v6  ;;  %1851 = vmatprep.subr.bf16.mxu0 %v3774_v36  ;;  %2910 = vmatprep.subr.bf16.mxu1 %v4516_v3  ;;  %v1590_v44 = vld [vmem:[%s4495_s6 + $0x18] sm:$0x2] }
 0x491   :  { %1881 = vmatprep.mubr.bf16.mxu0 %v4517_v9  ;;  %2924 = vmatprep.mubr.msk.bf16.mxu1 %vm3206_vm2, %v4516_v3 }
 0x492   :  { %v1487_v39 = vrot.slane %v1473_v30, %v3497_v6  ;;  %v1488_v58 = vcombine.high %v1480_v7, %v1480_v7  ;;  %v1491_v8 = vunpack.i.h.s16 %v1480_v7  ;;  %v2666_v57 = vpack.i.b16 %v1480_v7, %v1480_v7 }
 0x493   :  { %1852 = vmatpush1.bf16.msra.mxu0 %v3782_v19  ;;  %2911 = vmatpush3.bf16.msra.mxu1 %v3942_v11 }
 0x494   :  { %v1489_v45 = vcombine.high %v1487_v39, %v1487_v39  ;;  %v1493_v33 = vunpack.i.h.s16 %v1487_v39  ;;  %v1495_v26 = vunpack.i.h.s16 %v1488_v58  ;;  %v1499_v41 = vpack.i.b16 %v1491_v8, %v1491_v8  ;;  %1853 = vmatprep.subr.bf16.mxu0 %v3794_v12  ;;  %2912 = vmatprep.subr.bf16.mxu1 %v4516_v3  ;;  %v1593_v8 = vld [vmem:[%s4495_s6 + $0x1c] sm:$0x2] }
 0x495   :  { %v2667_v60 = vpack.i.b16 %v1487_v39, %v1487_v39  ;;  %v2668_v37 = vpack.i.b16 %v1488_v58, %v1488_v58  ;;  %v1512_v59 = vrot.slane %v2666_v57, %v3513_v63 }
 0x496   :  { %v1497_v40 = vunpack.i.h.s16 %v1489_v45  ;;  %v1501_v42 = vpack.i.b16 %v1493_v33, %v1493_v33  ;;  %v1503_v43 = vpack.i.b16 %v1495_v26, %v1495_v26  ;;  %v2669_v46 = vpack.i.b16 %v1489_v45, %v1489_v45  ;;  %v4035_v45 = vld [vmem:[#allocation6 + $0x68] ss:$12 sps:$4 sm:$0xff]   ;;  %v4047_v33 = vld [vmem:[#allocation6 + $0x98] ss:$12 sps:$4 sm:$0xff]   ;;  %v4053_v26 = vld [vmem:[#allocation6 + $0xb0] ss:$12 sps:$4 sm:$0xff]  }
 0x497   :  { %v1519_v49 = vrot.slane %v1499_v41, %v3513_v63  ;;  %v1526_v50 = vrot.slane %v2667_v60, %v3513_v63  ;;  %v1540_v51 = vrot.slane %v2668_v37, %v3513_v63  ;;  %v1573_v27 = vsel %vm3946_vm8, %v1512_v59, %v1572_v48  ;;  %1854 = vmatpush1.bf16.msra.mxu0 %v3822_v56  ;;  %v4528_v48 = vld [vmem:[#allocation12_spill] sm:$0xff] }
 0x498   :  { %v1505_v54 = vpack.i.b16 %v1497_v40, %v1497_v40  ;;  %v1533_v35 = vrot.slane %v1501_v42, %v3513_v63  ;;  %v1547_v14 = vrot.slane %v1503_v43, %v3513_v63  ;;  %v1554_v24 = vrot.slane %v2669_v46, %v3513_v63  ;;  %1574 = vst [vmem:[%s4495_s6] sm:$0x2] %v1573_v27  ;;  %v4529_v27 = vld [vmem:[#allocation13_spill] sm:$0xff] }
 0x499   :  { %2913 = vmatpush3.bf16.msra.mxu1 %v3977_v29  ;;  %v1576_v38 = vsel %vm3946_vm8, %v1519_v49, %v1575_v18  ;;  %v1579_v1 = vsel %vm3946_vm8, %v1526_v50, %v1578_v61  ;;  %v1585_v13 = vsel %vm3946_vm8, %v1540_v51, %v1584_v23  ;;  %1855 = vmatprep.subr.bf16.mxu0 %v3841_v22 }
 0x49a   :  { %2914 = vmatprep.subr.bf16.mxu1 %v4516_v3  ;;  %v1561_v30 = vrot.slane %v1505_v54, %v3513_v63  ;;  %1577 = vst [vmem:[%s4495_s6 + $0x4] sm:$0x2] %v1576_v38  ;;  %1580 = vst [vmem:[%s4495_s6 + $0x8] sm:$0x2] %v1579_v1  ;;  %v1582_v7 = vsel %vm3946_vm8, %v1533_v35, %v1581_v53  ;;  %v1588_v39 = vsel %vm3946_vm8, %v1547_v14, %v1587_v15  ;;  %v4530_v53 = vld [vmem:[#allocation17_spill] sm:$0xff] }
 0x49b   :  { %1586 = vst [vmem:[%s4495_s6 + $0x10] sm:$0x2] %v1585_v13  ;;  %v1591_v58 = vsel %vm3946_vm8, %v1554_v24, %v1590_v44  ;;  %1583 = vst [vmem:[%s4495_s6 + $0xc] sm:$0x2] %v1582_v7  ;;  %1856 = vmatpush1.bf16.msra.mxu0 %v3870_v10 }
 0x49c   :  { %1589 = vst [vmem:[%s4495_s6 + $0x14] sm:$0x2] %v1588_v39  ;;  %1592 = vst [vmem:[%s4495_s6 + $0x18] sm:$0x2] %v1591_v58  ;;  %v1594_v57 = vsel %vm3946_vm8, %v1561_v30, %v1593_v8  ;;  %1857 = vmatprep.subr.bf16.mxu0 %v3878_v20  ;;  %v1708_v58 = vpop.permute.xlu0 %1707 }
 0x49d   :  { %2915 = vmatpush3.bf16.msra.mxu1 %v3875_v21  ;;  %1595 = vst [vmem:[%s4495_s6 + $0x1c] sm:$0x2] %v1594_v57  ;;  %vm1709_vm9 = vcmp.eq.s32.totalorder %v1708_v58, 1  ;;  %v1829_v58 = vld [vmem:[%s4495_s6 + $0xc] sm:$0x4] }
 0x49e   :  { %2916 = vmatprep.subr.bf16.mxu1 %v4516_v3 }
 0x49f   :  { %1858 = vmatpush1.bf16.msra.mxu0 %v3885_v4 }
 0x4a0   :  { %1859 = vmatprep.subr.bf16.mxu0 %v3889_v32 }
 0x4a1   :  { %2917 = vmatpush3.bf16.msra.mxu1 %v4035_v45 }
 0x4a2   :  { %2918 = vmatprep.subr.bf16.mxu1 %v4516_v3 }
 0x4a3   :  { %1860 = vmatpush1.bf16.msra.mxu0 %v3893_v5 }
 0x4a4   :  { %1861 = vmatprep.subr.bf16.mxu0 %v3897_v16 }
 0x4a5   :  { %2919 = vmatpush3.bf16.msra.mxu1 %v4041_v28 }
 0x4a6   :  { %2920 = vmatprep.subr.bf16.mxu1 %v4516_v3 }
 0x4a7   :  { %1862 = vmatpush1.bf16.msra.mxu0 %v3901_v34 }
 0x4a8   :  { %1863 = vmatprep.subr.bf16.mxu0 %v3905_v52 }
 0x4a9   :  { %2921 = vmatpush3.bf16.msra.mxu1 %v4047_v33 }
 0x4aa   :  { %2922 = vmatprep.subr.bf16.mxu1 %v4516_v3 }
 0x4ab   :  { %1864 = vmatpush1.bf16.msra.mxu0 %v3909_v31 }
 0x4ac   :  { %2096 = vmatprep.subr.bf16.mxu0 %v3913_v55 }
 0x4ad   :  { %2923 = vmatpush3.bf16.msra.mxu1 %v4053_v26 }
 0x4ae   :  { %2928 = vmatprep.subr.bf16.mxu1 %v4516_v3 }
 0x561   :  { %v1635_v41 = vpop.f32.mrb[32].mxu0  ;;  %v1676_v60 = vpop.f32.mrb[24].mxu1 }
 0x562   :  { %v1636_v37 = vadd.f32 %v1635_v41, %v3484_v0  ;;  %v1637_v59 = vpop.f32.mrb[33].mxu0  ;;  %v2906_v40 = vpop.f32.mrb[25].mxu1  ;;  %v1677_v23 = vadd.f32 %v1676_v60, %v3492_v2 }
 0x563   :  { %v1638_v42 = vadd.f32 %v1637_v59, %v3486_v17  ;;  %v1639_v43 = vpop.f32.mrb[34].mxu0  ;;  %v1679_v46 = vpop.f32.mrb[26].mxu1 }
 0x564   :  { %v1682_v49 = vadd.f32 %v1636_v37, %v4528_v48  ;;  %v1640_v50 = vpop.f32.mrb[35].mxu0  ;;  %v2907_v51 = vpop.f32.mrb[27].mxu1 }
 0x565   :  { %v1689_v54 = vadd.f32 %v1638_v42, %v4529_v27 }
 0x566   :  { %v2670_v35 = vmul.f32 -1.442695, %v1682_v49 }
 0x567   :  { %v2671_v14 = vmul.f32 -1.442695, %v1689_v54 }
 0x568   :  { %3088 = vpow2.f32 %v2670_v35  ;;  %v1820_v35 = vld [vmem:[%s4495_s6] sm:$0x4] }
 0x569   :  { %3090 = vpow2.f32 %v2671_v14 }
 0x572   :  { %v3089_v24 = vpop.eup %3088 }
 0x573   :  { %v1686_v18 = vadd.f32 1.0, %v3089_v24  ;;  %v3091_v61 = vpop.eup %3090 }
 0x574   :  { %v1693_v15 = vadd.f32 1.0, %v3091_v61 }
 0x575   :  { %3092 = vrcp.f32 %v1686_v18 }
 0x57f   :  { %v3093_v38 = vpop.eup %3092 }
 0x580   :  { %v1696_v1 = vmul.f32 %v3093_v38, %v1677_v23 }
 0x582   :  { %v1697_v13 = vadd.f32 %v1696_v1, %v4530_v53  ;;  %v1823_v53 = vld [vmem:[%s4495_s6 + $0x4] sm:$0x4] }
 0x584   :  { %3094 = vtanh.f32 %v1697_v13  ;;  %v1826_v13 = vld [vmem:[%s4495_s6 + $0x8] sm:$0x4] }
 0x585   :  { %3096 = vrcp.f32 %v1693_v15  ;;  %v1832_v15 = vld [vmem:[%s4495_s6 + $0x10] sm:$0x4] }
 0x58e   :  { %v3095_v44 = vpop.eup %3094 }
 0x58f   :  { %v1699_v30 = vsub.f32 %v3925_v47, %v3095_v44  ;;  %v3097_v7 = vpop.eup %3096 }
 0x591   :  { %v1700_v39 = vmul.f32 %v3097_v7, %v1699_v30 }
 0x593   :  { %v1701_v8 = vadd.f32 %v3095_v44, %v1700_v39 }
 0x595   :  { %v1710_v57 = vsel %vm1709_vm9, %v1701_v8, 0.0  ;;  %v4066_v41 = vsel %vm1709_vm9, %v1701_v8, %v3925_v47  ;;  %v1835_v8 = vld [vmem:[%s4495_s6 + $0x14] sm:$0x4] }
 0x596   :  { %v1711_v60 = vpack.c.bf16 %v1710_v57, %v1710_v57  ;;  %v1848_v37 = vpack.c.bf16 %v4066_v41, %v4066_v41  ;;  %v1838_v57 = vld [vmem:[%s4495_s6 + $0x18] sm:$0x4] }
 0x598   :  { %v1719_v59 = vrot.slane %v1711_v60, %v3497_v6  ;;  %1882 = vmatmul.mubr.bf16.vlgmr.msra.gmra.mrb[36].mxu0 %v1848_v37  ;;  %2925 = vmatmul.mubr.bf16.vlgmr.msra.gmra.mrb[28].mxu1 %v1848_v37 }
 0x599   :  { %2097 = vmatpush1.bf16.msra.mxu0 %v3769_v62  ;;  %2929 = vmatpush3.bf16.msra.mxu1 %v3931_v25 }
 0x59a   :  { %v1720_v40 = vcombine.high %v1719_v59, %v1719_v59  ;;  %v1727_v42 = vrot.slane %v1719_v59, %v3497_v6  ;;  %2098 = vmatprep.subr.bf16.mxu0 %v3774_v36  ;;  %2930 = vmatprep.subr.bf16.mxu1 %v4516_v3 }
 0x59b   :  { %2128 = vmatprep.mubr.bf16.mxu0 %v4517_v9  ;;  %2944 = vmatprep.mubr.msk.bf16.mxu1 %vm3206_vm2, %v4516_v3 }
 0x59c   :  { %v1734_v47 = vrot.slane %v1720_v40, %v3497_v6  ;;  %v1735_v43 = vcombine.high %v1727_v42, %v1727_v42  ;;  %v1738_v46 = vunpack.i.h.s16 %v1727_v42  ;;  %v2672_v48 = vpack.i.b16 %v1727_v42, %v1727_v42 }
 0x59d   :  { %2099 = vmatpush1.bf16.msra.mxu0 %v3782_v19  ;;  %2931 = vmatpush3.bf16.msra.mxu1 %v3942_v11 }
 0x59e   :  { %v1736_v49 = vcombine.high %v1734_v47, %v1734_v47  ;;  %v1740_v50 = vunpack.i.h.s16 %v1734_v47  ;;  %v1742_v51 = vunpack.i.h.s16 %v1735_v43  ;;  %v1746_v27 = vpack.i.b16 %v1738_v46, %v1738_v46  ;;  %2100 = vmatprep.subr.bf16.mxu0 %v3794_v12  ;;  %2932 = vmatprep.subr.bf16.mxu1 %v4516_v3  ;;  %v1841_v46 = vld [vmem:[%s4495_s6 + $0x1c] sm:$0x4] }
 0x59f   :  { %v2673_v14 = vpack.i.b16 %v1734_v47, %v1734_v47  ;;  %v2674_v24 = vpack.i.b16 %v1735_v43, %v1735_v43  ;;  %v1759_v18 = vrot.slane %v2672_v48, %v3513_v63 }
 0x5a0   :  { %v1744_v61 = vunpack.i.h.s16 %v1736_v49  ;;  %v1748_v23 = vpack.i.b16 %v1740_v50, %v1740_v50  ;;  %v1750_v38 = vpack.i.b16 %v1742_v51, %v1742_v51  ;;  %v2675_v1 = vpack.i.b16 %v1736_v49, %v1736_v49 }
 0x5a1   :  { %v1766_v44 = vrot.slane %v1746_v27, %v3513_v63  ;;  %v1773_v30 = vrot.slane %v2673_v14, %v3513_v63  ;;  %v1787_v7 = vrot.slane %v2674_v24, %v3513_v63  ;;  %v1821_v39 = vsel %vm4083_vm12, %v1759_v18, %v1820_v35  ;;  %2101 = vmatpush1.bf16.msra.mxu0 %v3822_v56 }
 0x5a2   :  { %v1752_v60 = vpack.i.b16 %v1744_v61, %v1744_v61  ;;  %v1780_v37 = vrot.slane %v1748_v23, %v3513_v63  ;;  %v1794_v59 = vrot.slane %v1750_v38, %v3513_v63  ;;  %v1801_v40 = vrot.slane %v2675_v1, %v3513_v63  ;;  %1822 = vst [vmem:[%s4495_s6] sm:$0x4] %v1821_v39  ;;  %v4533_v1 = vld [vmem:[#allocation14_spill] sm:$0xff] }
 0x5a3   :  { %2933 = vmatpush3.bf16.msra.mxu1 %v3977_v29  ;;  %v1824_v42 = vsel %vm4083_vm12, %v1766_v44, %v1823_v53  ;;  %v1827_v47 = vsel %vm4083_vm12, %v1773_v30, %v1826_v13  ;;  %v1833_v43 = vsel %vm4083_vm12, %v1787_v7, %v1832_v15  ;;  %2102 = vmatprep.subr.bf16.mxu0 %v3841_v22  ;;  %v4534_v44 = vld [vmem:[#allocation16_spill] sm:$0xff] }
 0x5a4   :  { %2934 = vmatprep.subr.bf16.mxu1 %v4516_v3  ;;  %v1808_v48 = vrot.slane %v1752_v60, %v3513_v63  ;;  %1825 = vst [vmem:[%s4495_s6 + $0x4] sm:$0x4] %v1824_v42  ;;  %1828 = vst [vmem:[%s4495_s6 + $0x8] sm:$0x4] %v1827_v47  ;;  %v1830_v49 = vsel %vm4083_vm12, %v1780_v37, %v1829_v58  ;;  %v1836_v50 = vsel %vm4083_vm12, %v1794_v59, %v1835_v8  ;;  %v4535_v59 = vld [vmem:[#allocation19_spill] sm:$0xff] }
 0x5a5   :  { %1834 = vst [vmem:[%s4495_s6 + $0x10] sm:$0x4] %v1833_v43  ;;  %v1839_v51 = vsel %vm4083_vm12, %v1801_v40, %v1838_v57  ;;  %1831 = vst [vmem:[%s4495_s6 + $0xc] sm:$0x4] %v1830_v49  ;;  %2103 = vmatpush1.bf16.msra.mxu0 %v3870_v10  ;;  %v1956_v49 = vpop.permute.xlu1 %1955 }
 0x5a6   :  { %1837 = vst [vmem:[%s4495_s6 + $0x14] sm:$0x4] %v1836_v50  ;;  %1840 = vst [vmem:[%s4495_s6 + $0x18] sm:$0x4] %v1839_v51  ;;  %v1842_v27 = vsel %vm4083_vm12, %v1808_v48, %v1841_v46  ;;  %2104 = vmatprep.subr.bf16.mxu0 %v3878_v20  ;;  %vm1957_vm13 = vcmp.eq.s32.totalorder %v1956_v49, 1 }
 0x5a7   :  { %2935 = vmatpush3.bf16.msra.mxu1 %v3875_v21  ;;  %1843 = vst [vmem:[%s4495_s6 + $0x1c] sm:$0x4] %v1842_v27 }
 0x5a8   :  { %2936 = vmatprep.subr.bf16.mxu1 %v4516_v3 }
 0x5a9   :  { %2105 = vmatpush1.bf16.msra.mxu0 %v3885_v4 }
 0x5aa   :  { %2106 = vmatprep.subr.bf16.mxu0 %v3889_v32 }
 0x5ab   :  { %2937 = vmatpush3.bf16.msra.mxu1 %v4035_v45 }
 0x5ac   :  { %2938 = vmatprep.subr.bf16.mxu1 %v4516_v3 }
 0x5ad   :  { %2107 = vmatpush1.bf16.msra.mxu0 %v3893_v5 }
 0x5ae   :  { %2108 = vmatprep.subr.bf16.mxu0 %v3897_v16 }
 0x5af   :  { %2939 = vmatpush3.bf16.msra.mxu1 %v4041_v28 }
 0x5b0   :  { %2940 = vmatprep.subr.bf16.mxu1 %v4516_v3 }
 0x5b1   :  { %2109 = vmatpush1.bf16.msra.mxu0 %v3901_v34 }
 0x5b2   :  { %2110 = vmatprep.subr.bf16.mxu0 %v3905_v52 }
 0x5b3   :  { %2941 = vmatpush3.bf16.msra.mxu1 %v4047_v33 }
 0x5b4   :  { %2942 = vmatprep.subr.bf16.mxu1 %v4516_v3 }
 0x5b5   :  { %2111 = vmatpush1.bf16.msra.mxu0 %v3909_v31 }
 0x5b6   :  { %2344 = vmatprep.subr.bf16.mxu0 %v3913_v55 }
 0x5b7   :  { %2943 = vmatpush3.bf16.msra.mxu1 %v4053_v26 }
 0x5b8   :  { %2948 = vmatprep.subr.bf16.mxu1 %v4516_v3 }
 0x66b   :  { %v1883_v54 = vpop.f32.mrb[36].mxu0  ;;  %v1924_v35 = vpop.f32.mrb[28].mxu1 }
 0x66c   :  { %v1884_v14 = vadd.f32 %v1883_v54, %v3484_v0  ;;  %v1885_v24 = vpop.f32.mrb[37].mxu0  ;;  %v2926_v18 = vpop.f32.mrb[29].mxu1  ;;  %v1925_v57 = vadd.f32 %v1924_v35, %v3492_v2 }
 0x66d   :  { %v1886_v61 = vadd.f32 %v1885_v24, %v3486_v17  ;;  %v1887_v23 = vpop.f32.mrb[38].mxu0  ;;  %v1927_v38 = vpop.f32.mrb[30].mxu1 }
 0x66e   :  { %v1930_v53 = vadd.f32 %v1884_v14, %v4533_v1  ;;  %v1888_v13 = vpop.f32.mrb[39].mxu0  ;;  %v2927_v15 = vpop.f32.mrb[31].mxu1 }
 0x66f   :  { %v1937_v30 = vadd.f32 %v1886_v61, %v4534_v44 }
 0x670   :  { %v2676_v7 = vmul.f32 -1.442695, %v1930_v53 }
 0x671   :  { %v2677_v55 = vmul.f32 -1.442695, %v1937_v30 }
 0x672   :  { %3098 = vpow2.f32 %v2676_v7  ;;  %v2067_v7 = vld [vmem:[%s4495_s6] sm:$0x4] }
 0x673   :  { %3100 = vpow2.f32 %v2677_v55 }
 0x67c   :  { %v3099_v39 = vpop.eup %3098 }
 0x67d   :  { %v1934_v58 = vadd.f32 1.0, %v3099_v39  ;;  %v3101_v8 = vpop.eup %3100 }
 0x67e   :  { %v1941_v42 = vadd.f32 1.0, %v3101_v8 }
 0x67f   :  { %3102 = vrcp.f32 %v1934_v58 }
 0x689   :  { %v3103_v60 = vpop.eup %3102 }
 0x68a   :  { %v1944_v37 = vmul.f32 %v3103_v60, %v1925_v57 }
 0x68c   :  { %v1945_v40 = vadd.f32 %v1944_v37, %v4535_v59  ;;  %v2070_v59 = vld [vmem:[%s4495_s6 + $0x4] sm:$0x4] }
 0x68e   :  { %3104 = vtanh.f32 %v1945_v40  ;;  %v2073_v40 = vld [vmem:[%s4495_s6 + $0x8] sm:$0x4] }
 0x68f   :  { %3106 = vrcp.f32 %v1941_v42 }
 0x698   :  { %v3105_v47 = vpop.eup %3104 }
 0x699   :  { %v1947_v43 = vsub.f32 %v4066_v41, %v3105_v47  ;;  %v3107_v46 = vpop.eup %3106 }
 0x69b   :  { %v1948_v48 = vmul.f32 %v3107_v46, %v1947_v43  ;;  %v2076_v43 = vld [vmem:[%s4495_s6 + $0xc] sm:$0x4] }
 0x69d   :  { %v1949_v50 = vadd.f32 %v3105_v47, %v1948_v48  ;;  %v2082_v48 = vld [vmem:[%s4495_s6 + $0x14] sm:$0x4] }
 0x69f   :  { %v1958_v51 = vsel %vm1957_vm13, %v1949_v50, 0.0  ;;  %v4193_v27 = vsel %vm1957_vm13, %v1949_v50, %v4066_v41 }
 0x6a0   :  { %v1959_v54 = vpack.c.bf16 %v1958_v51, %v1958_v51  ;;  %v2095_v35 = vpack.c.bf16 %v4193_v27, %v4193_v27 }
 0x6a2   :  { %v1967_v14 = vrot.slane %v1959_v54, %v3497_v6  ;;  %2129 = vmatmul.mubr.bf16.vlgmr.msra.gmra.mrb[40].mxu0 %v2095_v35  ;;  %2945 = vmatmul.mubr.bf16.vlgmr.msra.gmra.mrb[32].mxu1 %v2095_v35  ;;  %v2088_v54 = vld [vmem:[%s4495_s6 + $0x1c] sm:$0x4] }
 0x6a3   :  { %2345 = vmatpush1.bf16.msra.mxu0 %v3769_v62  ;;  %2949 = vmatpush3.bf16.msra.mxu1 %v3931_v25 }
 0x6a4   :  { %v1968_v24 = vcombine.high %v1967_v14, %v1967_v14  ;;  %v1975_v18 = vrot.slane %v1967_v14, %v3497_v6  ;;  %2346 = vmatprep.subr.bf16.mxu0 %v3774_v36  ;;  %2950 = vmatprep.subr.bf16.mxu1 %v4516_v3  ;;  %v4539_v14 = vld [vmem:[#allocation21_spill] sm:$0xff] }
 0x6a5   :  { %2376 = vmatprep.mubr.bf16.mxu0 %v4517_v9  ;;  %2964 = vmatprep.mubr.msk.bf16.mxu1 %vm3206_vm2, %v4516_v3 }
 0x6a6   :  { %v1982_v41 = vrot.slane %v1968_v24, %v3497_v6  ;;  %v1983_v61 = vcombine.high %v1975_v18, %v1975_v18  ;;  %v1986_v23 = vunpack.i.h.s16 %v1975_v18  ;;  %v2678_v62 = vpack.i.b16 %v1975_v18, %v1975_v18 }
 0x6a7   :  { %2347 = vmatpush1.bf16.msra.mxu0 %v3782_v19  ;;  %2951 = vmatpush3.bf16.msra.mxu1 %v3942_v11 }
 0x6a8   :  { %v1984_v25 = vcombine.high %v1982_v41, %v1982_v41  ;;  %v1988_v38 = vunpack.i.h.s16 %v1982_v41  ;;  %v1990_v36 = vunpack.i.h.s16 %v1983_v61  ;;  %v1994_v1 = vpack.i.b16 %v1986_v23, %v1986_v23  ;;  %2348 = vmatprep.subr.bf16.mxu0 %v3794_v12  ;;  %2952 = vmatprep.subr.bf16.mxu1 %v4516_v3 }
 0x6a9   :  { %v2679_v9 = vpack.i.b16 %v1982_v41, %v1982_v41  ;;  %v2680_v13 = vpack.i.b16 %v1983_v61, %v1983_v61  ;;  %v2007_v15 = vrot.slane %v2678_v62, %v3513_v63 }
 0x6aa   :  { %v1992_v19 = vunpack.i.h.s16 %v1984_v25  ;;  %v1996_v44 = vpack.i.b16 %v1988_v38, %v1988_v38  ;;  %v1998_v11 = vpack.i.b16 %v1990_v36, %v1990_v36  ;;  %v2681_v30 = vpack.i.b16 %v1984_v25, %v1984_v25  ;;  %v4540_v25 = vld [vmem:[#allocation15_spill] sm:$0xff] }
 0x6ab   :  { %v2014_v55 = vrot.slane %v1994_v1, %v3513_v63  ;;  %v2021_v39 = vrot.slane %v2679_v9, %v3513_v63  ;;  %v2035_v12 = vrot.slane %v2680_v13, %v3513_v63  ;;  %v2068_v58 = vsel %vm4210_vm15, %v2007_v15, %v2067_v7  ;;  %2349 = vmatpush1.bf16.msra.mxu0 %v3822_v56  ;;  %v2079_v56 = vld [vmem:[%s4495_s6 + $0x10] sm:$0x4]  ;;  %v2203_v13 = vpop.permute.xlu0 %2202 }
 0x6ac   :  { %v2000_v8 = vpack.i.b16 %v1992_v19, %v1992_v19  ;;  %v2028_v57 = vrot.slane %v1996_v44, %v3513_v63  ;;  %v2042_v60 = vrot.slane %v1998_v11, %v3513_v63  ;;  %v2049_v37 = vrot.slane %v2681_v30, %v3513_v63  ;;  %2069 = vst [vmem:[%s4495_s6] sm:$0x4] %v2068_v58 }
 0x6ad   :  { %2953 = vmatpush3.bf16.msra.mxu1 %v3977_v29  ;;  %v2071_v42 = vsel %vm4210_vm15, %v2014_v55, %v2070_v59  ;;  %v2074_v47 = vsel %vm4210_vm15, %v2021_v39, %v2073_v40  ;;  %v2080_v46 = vsel %vm4210_vm15, %v2035_v12, %v2079_v56  ;;  %v2085_v29 = vld [vmem:[%s4495_s6 + $0x18] sm:$0x4]  ;;  %2350 = vmatprep.subr.bf16.mxu0 %v3841_v22  ;;  %vm2204_vm2 = vcmp.eq.s32.totalorder %v2203_v13, 1  ;;  %v2451_v56 = vpop.permute.xlu1 %2450 }
 0x6ae   :  { %2954 = vmatprep.subr.bf16.mxu1 %v4516_v3  ;;  %v2056_v49 = vrot.slane %v2000_v8, %v3513_v63  ;;  %2072 = vst [vmem:[%s4495_s6 + $0x4] sm:$0x4] %v2071_v42  ;;  %2075 = vst [vmem:[%s4495_s6 + $0x8] sm:$0x4] %v2074_v47  ;;  %v2077_v50 = vsel %vm4210_vm15, %v2028_v57, %v2076_v43  ;;  %v2083_v22 = vsel %vm4210_vm15, %v2042_v60, %v2082_v48  ;;  %v2315_v42 = vld [vmem:[%s4495_s6] sm:$0x8] }
 0x6af   :  { %2081 = vst [vmem:[%s4495_s6 + $0x10] sm:$0x4] %v2080_v46  ;;  %v2086_v51 = vsel %vm4210_vm15, %v2049_v37, %v2085_v29  ;;  %2078 = vst [vmem:[%s4495_s6 + $0xc] sm:$0x4] %v2077_v50  ;;  %2351 = vmatpush1.bf16.msra.mxu0 %v3870_v10  ;;  %vm2452_vm4 = vcmp.eq.s32.totalorder %v2451_v56, 1 }
 0x6b0   :  { %2084 = vst [vmem:[%s4495_s6 + $0x14] sm:$0x4] %v2083_v22  ;;  %2087 = vst [vmem:[%s4495_s6 + $0x18] sm:$0x4] %v2086_v51  ;;  %v2089_v35 = vsel %vm4210_vm15, %v2056_v49, %v2088_v54  ;;  %2352 = vmatprep.subr.bf16.mxu0 %v3878_v20  ;;  %v2318_v22 = vld [vmem:[%s4495_s6 + $0x4] sm:$0x8] }
 0x6b1   :  { %2955 = vmatpush3.bf16.msra.mxu1 %v3875_v21  ;;  %2090 = vst [vmem:[%s4495_s6 + $0x1c] sm:$0x4] %v2089_v35  ;;  %v2321_v51 = vld [vmem:[%s4495_s6 + $0x8] sm:$0x8]  ;;  %v2327_v54 = vld [vmem:[%s4495_s6 + $0x10] sm:$0x8] }
 0x6b2   :  { %2956 = vmatprep.subr.bf16.mxu1 %v4516_v3 }
 0x6b3   :  { %2353 = vmatpush1.bf16.msra.mxu0 %v3885_v4 }
 0x6b4   :  { %2354 = vmatprep.subr.bf16.mxu0 %v3889_v32 }
 0x6b5   :  { %2957 = vmatpush3.bf16.msra.mxu1 %v4035_v45  ;;  %v4538_v45 = vld [vmem:[#allocation20_spill] sm:$0xff] }
 0x6b6   :  { %2958 = vmatprep.subr.bf16.mxu1 %v4516_v3 }
 0x6b7   :  { %2355 = vmatpush1.bf16.msra.mxu0 %v3893_v5 }
 0x6b8   :  { %2356 = vmatprep.subr.bf16.mxu0 %v3897_v16 }
 0x6b9   :  { %2959 = vmatpush3.bf16.msra.mxu1 %v4041_v28 }
 0x6ba   :  { %2960 = vmatprep.subr.bf16.mxu1 %v4516_v3 }
 0x6bb   :  { %2357 = vmatpush1.bf16.msra.mxu0 %v3901_v34 }
 0x6bc   :  { %2358 = vmatprep.subr.bf16.mxu0 %v3905_v52 }
 0x6bd   :  { %2961 = vmatpush3.bf16.msra.mxu1 %v4047_v33 }
 0x6be   :  { %2962 = vmatprep.subr.bf16.mxu1 %v4516_v3 }
 0x6bf   :  { %2359 = vmatpush1.bf16.msra.mxu0 %v3909_v31 }
 0x6c1   :  { %2963 = vmatpush3.bf16.msra.mxu1 %v4053_v26 }
 0x775   :  { %v2130_v10 = vpop.f32.mrb[40].mxu0  ;;  %v2171_v21 = vpop.f32.mrb[32].mxu1 }
 0x776   :  { %v2131_v20 = vadd.f32 %v2130_v10, %v3484_v0  ;;  %v2132_v4 = vpop.f32.mrb[41].mxu0  ;;  %v2946_v32 = vpop.f32.mrb[33].mxu1  ;;  %v2172_v61 = vadd.f32 %v2171_v21, %v3492_v2 }
 0x777   :  { %v2133_v5 = vadd.f32 %v2132_v4, %v3486_v17  ;;  %v2134_v16 = vpop.f32.mrb[42].mxu0  ;;  %v2174_v34 = vpop.f32.mrb[34].mxu1  ;;  %v2324_v4 = vld [vmem:[%s4495_s6 + $0xc] sm:$0x8]  ;;  %v2330_v32 = vld [vmem:[%s4495_s6 + $0x14] sm:$0x8] }
 0x778   :  { %v2177_v28 = vadd.f32 %v2131_v20, %v4538_v45  ;;  %v2135_v33 = vpop.f32.mrb[43].mxu0  ;;  %v2947_v52 = vpop.f32.mrb[35].mxu1 }
 0x779   :  { %v2184_v3 = vadd.f32 %v2133_v5, %v4539_v14  ;;  %v2333_v5 = vld [vmem:[%s4495_s6 + $0x18] sm:$0x8] }
 0x77a   :  { %v2682_v24 = vmul.f32 -1.442695, %v2177_v28 }
 0x77b   :  { %v2683_v31 = vmul.f32 -1.442695, %v2184_v3  ;;  %v2336_v3 = vld [vmem:[%s4495_s6 + $0x1c] sm:$0x8] }
 0x77c   :  { %3108 = vpow2.f32 %v2682_v24 }
 0x77d   :  { %3110 = vpow2.f32 %v2683_v31 }
 0x786   :  { %v3109_v26 = vpop.eup %3108 }
 0x787   :  { %v2181_v18 = vadd.f32 1.0, %v3109_v26  ;;  %v3111_v41 = vpop.eup %3110 }
 0x788   :  { %v2188_v36 = vadd.f32 1.0, %v3111_v41 }
 0x789   :  { %3112 = vrcp.f32 %v2181_v18 }
 0x793   :  { %v3113_v23 = vpop.eup %3112 }
 0x794   :  { %v2191_v62 = vmul.f32 %v3113_v23, %v2172_v61 }
 0x796   :  { %v2192_v38 = vadd.f32 %v2191_v62, %v4540_v25 }
 0x798   :  { %3114 = vtanh.f32 %v2192_v38 }
 0x799   :  { %3116 = vrcp.f32 %v2188_v36 }
 0x7a2   :  { %v3115_v1 = vpop.eup %3114 }
 0x7a3   :  { %v2194_v53 = vsub.f32 %v4193_v27, %v3115_v1  ;;  %v3117_v9 = vpop.eup %3116 }
 0x7a5   :  { %v2195_v15 = vmul.f32 %v3117_v9, %v2194_v53  ;;  %v4543_v9 = vld [vmem:[#allocation22_spill] sm:$0xff] }
 0x7a7   :  { %v2196_v19 = vadd.f32 %v3115_v1, %v2195_v15 }
 0x7a9   :  { %v2205_v44 = vsel %vm2204_vm2, %v2196_v19, 0.0  ;;  %v4318_v11 = vsel %vm2204_vm2, %v2196_v19, %v4193_v27 }
 0x7aa   :  { %v2206_v30 = vpack.c.bf16 %v2205_v44, %v2205_v44  ;;  %v2343_v7 = vpack.c.bf16 %v4318_v11, %v4318_v11  ;;  %v4544_v44 = vld [vmem:[#allocation23_spill] sm:$0xff] }
 0x7ac   :  { %v2214_v55 = vrot.slane %v2206_v30, %v3497_v6  ;;  %2377 = vmatmul.mubr.bf16.vlgmr.msra.gmra.mrb[44].mxu0 %v2343_v7  ;;  %2965 = vmatmul.mubr.bf16.vlgmr.msra.gmra.mrb[36].mxu1 %v2343_v7 }
 0x7ae   :  { %v2215_v39 = vcombine.high %v2214_v55, %v2214_v55  ;;  %v2222_v12 = vrot.slane %v2214_v55, %v3497_v6 }
 0x7b0   :  { %v2229_v58 = vrot.slane %v2215_v39, %v3497_v6  ;;  %v2230_v8 = vcombine.high %v2222_v12, %v2222_v12  ;;  %v2233_v57 = vunpack.i.h.s16 %v2222_v12  ;;  %v2684_v60 = vpack.i.b16 %v2222_v12, %v2222_v12 }
 0x7b2   :  { %v2231_v27 = vcombine.high %v2229_v58, %v2229_v58  ;;  %v2235_v37 = vunpack.i.h.s16 %v2229_v58  ;;  %v2237_v59 = vunpack.i.h.s16 %v2230_v8  ;;  %v2241_v40 = vpack.i.b16 %v2233_v57, %v2233_v57  ;;  %v4545_v57 = vld [vmem:[#allocation18_spill] sm:$0xff] }
 0x7b3   :  { %v2685_v47 = vpack.i.b16 %v2229_v58, %v2229_v58  ;;  %v2686_v43 = vpack.i.b16 %v2230_v8, %v2230_v8  ;;  %v2254_v46 = vrot.slane %v2684_v60, %v3513_v63 }
 0x7b4   :  { %v2239_v48 = vunpack.i.h.s16 %v2231_v27  ;;  %v2243_v29 = vpack.i.b16 %v2235_v37, %v2235_v37  ;;  %v2245_v49 = vpack.i.b16 %v2237_v59, %v2237_v59  ;;  %v2687_v50 = vpack.i.b16 %v2231_v27, %v2231_v27 }
 0x7b5   :  { %v2261_v35 = vrot.slane %v2241_v40, %v3513_v63  ;;  %v2268_v10 = vrot.slane %v2685_v47, %v3513_v63  ;;  %v2282_v21 = vrot.slane %v2686_v43, %v3513_v63  ;;  %v2316_v20 = vsel %vm4326_vm3, %v2254_v46, %v2315_v42 }
 0x7b6   :  { %v2247_v16 = vpack.i.b16 %v2239_v48, %v2239_v48  ;;  %v2275_v34 = vrot.slane %v2243_v29, %v3513_v63  ;;  %v2289_v45 = vrot.slane %v2245_v49, %v3513_v63  ;;  %v2296_v28 = vrot.slane %v2687_v50, %v3513_v63  ;;  %2317 = vst [vmem:[%s4495_s6] sm:$0x8] %v2316_v20 }
 0x7b7   :  { %v2319_v33 = vsel %vm4326_vm3, %v2261_v35, %v2318_v22  ;;  %v2322_v52 = vsel %vm4326_vm3, %v2268_v10, %v2321_v51  ;;  %v2328_v14 = vsel %vm4326_vm3, %v2282_v21, %v2327_v54 }
 0x7b8   :  { %v2303_v24 = vrot.slane %v2247_v16, %v3513_v63  ;;  %2320 = vst [vmem:[%s4495_s6 + $0x4] sm:$0x8] %v2319_v33  ;;  %2323 = vst [vmem:[%s4495_s6 + $0x8] sm:$0x8] %v2322_v52  ;;  %v2325_v31 = vsel %vm4326_vm3, %v2275_v34, %v2324_v4  ;;  %v2331_v26 = vsel %vm4326_vm3, %v2289_v45, %v2330_v32 }
 0x7b9   :  { %2329 = vst [vmem:[%s4495_s6 + $0x10] sm:$0x8] %v2328_v14  ;;  %v2334_v18 = vsel %vm4326_vm3, %v2296_v28, %v2333_v5  ;;  %2326 = vst [vmem:[%s4495_s6 + $0xc] sm:$0x8] %v2325_v31 }
 0x7ba   :  { %2332 = vst [vmem:[%s4495_s6 + $0x14] sm:$0x8] %v2331_v26  ;;  %2335 = vst [vmem:[%s4495_s6 + $0x18] sm:$0x8] %v2334_v18  ;;  %v2337_v41 = vsel %vm4326_vm3, %v2303_v24, %v2336_v3 }
 0x7bb   :  { %2338 = vst [vmem:[%s4495_s6 + $0x1c] sm:$0x8] %v2337_v41 }
 0x7bd   :  { %v2562_v45 = vld [vmem:[%s4495_s6] sm:$0x8] }
 0x7bf   :  { %v2565_v18 = vld [vmem:[%s4495_s6 + $0x4] sm:$0x8]  ;;  %v2568_v41 = vld [vmem:[%s4495_s6 + $0x8] sm:$0x8] }
 0x87f   :  { %v2378_v61 = vpop.f32.mrb[44].mxu0  ;;  %v2419_v23 = vpop.f32.mrb[36].mxu1 }
 0x880   :  { %v2379_v62 = vadd.f32 %v2378_v61, %v3484_v0  ;;  %v2380_v25 = vpop.f32.mrb[45].mxu0  ;;  %v2966_v38 = vpop.f32.mrb[37].mxu1  ;;  %v2420_v58 = vadd.f32 %v2419_v23, %v3492_v2  ;;  %v2574_v61 = vld [vmem:[%s4495_s6 + $0x10] sm:$0x8] }
 0x881   :  { %v2381_v36 = vadd.f32 %v2380_v25, %v3486_v17  ;;  %v2382_v1 = vpop.f32.mrb[46].mxu0  ;;  %v2422_v53 = vpop.f32.mrb[38].mxu1  ;;  %v2571_v25 = vld [vmem:[%s4495_s6 + $0xc] sm:$0x8] }
 0x882   :  { %v2425_v13 = vadd.f32 %v2379_v62, %v4543_v9  ;;  %v2383_v15 = vpop.f32.mrb[47].mxu0  ;;  %v2967_v19 = vpop.f32.mrb[39].mxu1  ;;  %v2580_v1 = vld [vmem:[%s4495_s6 + $0x18] sm:$0x8] }
 0x883   :  { %v2432_v30 = vadd.f32 %v2381_v36, %v4544_v44  ;;  %v2577_v36 = vld [vmem:[%s4495_s6 + $0x14] sm:$0x8]  ;;  %v2583_v15 = vld [vmem:[%s4495_s6 + $0x1c] sm:$0x8] }
 0x884   :  { %v2688_v7 = vmul.f32 -1.442695, %v2425_v13 }
 0x885   :  { %v2689_v55 = vmul.f32 -1.442695, %v2432_v30 }
 0x886   :  { %3118 = vpow2.f32 %v2688_v7 }
 0x887   :  { %3120 = vpow2.f32 %v2689_v55 }
 0x890   :  { %v3119_v39 = vpop.eup %3118 }
 0x891   :  { %v2429_v12 = vadd.f32 1.0, %v3119_v39  ;;  %v3121_v0 = vpop.eup %3120 }
 0x892   :  { %v2436_v27 = vadd.f32 1.0, %v3121_v0 }
 0x893   :  { %3122 = vrcp.f32 %v2429_v12 }
 0x89d   :  { %v3123_v8 = vpop.eup %3122 }
 0x89e   :  { %v2439_v17 = vmul.f32 %v3123_v8, %v2420_v58 }
 0x8a0   :  { %v2440_v60 = vadd.f32 %v2439_v17, %v4545_v57 }
 0x8a2   :  { %3124 = vtanh.f32 %v2440_v60 }
 0x8a3   :  { %3126 = vrcp.f32 %v2436_v27 }
 0x8ac   :  { %v3125_v37 = vpop.eup %3124 }
 0x8ad   :  { %v2442_v59 = vsub.f32 %v4318_v11, %v3125_v37  ;;  %v3127_v40 = vpop.eup %3126 }
 0x8af   :  { %v2443_v42 = vmul.f32 %v3127_v40, %v2442_v59 }
 0x8b1   :  { %v2444_v47 = vadd.f32 %v3125_v37, %v2443_v42 }
 0x8b3   :  { %v2453_v43 = vsel %vm2452_vm4, %v2444_v47, 0.0 }
 0x8b4   :  { %v2454_v46 = vpack.c.bf16 %v2453_v43, %v2453_v43 }
 0x8b6   :  { %v2462_v48 = vrot.slane %v2454_v46, %v3497_v6 }
 0x8b8   :  { %v2463_v2 = vcombine.high %v2462_v48, %v2462_v48  ;;  %v2470_v29 = vrot.slane %v2462_v48, %v3497_v6 }
 0x8ba   :  { %v2477_v49 = vrot.slane %v2463_v2, %v3497_v6  ;;  %v2478_v50 = vcombine.high %v2470_v29, %v2470_v29  ;;  %v2481_v22 = vunpack.i.h.s16 %v2470_v29  ;;  %v2690_v51 = vpack.i.b16 %v2470_v29, %v2470_v29 }
 0x8bc   :  { %v2479_v54 = vcombine.high %v2477_v49, %v2477_v49  ;;  %v2483_v35 = vunpack.i.h.s16 %v2477_v49  ;;  %v2485_v10 = vunpack.i.h.s16 %v2478_v50  ;;  %v2489_v21 = vpack.i.b16 %v2481_v22, %v2481_v22 }
 0x8bd   :  { %v2691_v20 = vpack.i.b16 %v2477_v49, %v2477_v49  ;;  %v2692_v4 = vpack.i.b16 %v2478_v50, %v2478_v50  ;;  %v2502_v32 = vrot.slane %v2690_v51, %v3513_v63 }
 0x8be   :  { %v2487_v5 = vunpack.i.h.s16 %v2479_v54  ;;  %v2491_v16 = vpack.i.b16 %v2483_v35, %v2483_v35  ;;  %v2493_v34 = vpack.i.b16 %v2485_v10, %v2485_v10  ;;  %v2693_v6 = vpack.i.b16 %v2479_v54, %v2479_v54 }
 0x8bf   :  { %v2509_v28 = vrot.slane %v2489_v21, %v3513_v63  ;;  %v2516_v33 = vrot.slane %v2691_v20, %v3513_v63  ;;  %v2530_v52 = vrot.slane %v2692_v4, %v3513_v63  ;;  %v2563_v14 = vsel %vm4413_vm6, %v2502_v32, %v2562_v45 }
 0x8c0   :  { %v2495_v3 = vpack.i.b16 %v2487_v5, %v2487_v5  ;;  %v2523_v24 = vrot.slane %v2491_v16, %v3513_v63  ;;  %v2537_v31 = vrot.slane %v2493_v34, %v3513_v63  ;;  %v2544_v26 = vrot.slane %v2693_v6, %v3513_v63  ;;  %2564 = vst [vmem:[%s4495_s6] sm:$0x8] %v2563_v14 }
 0x8c1   :  { %v2566_v23 = vsel %vm4413_vm6, %v2509_v28, %v2565_v18  ;;  %v2569_v62 = vsel %vm4413_vm6, %v2516_v33, %v2568_v41  ;;  %v2575_v38 = vsel %vm4413_vm6, %v2530_v52, %v2574_v61 }
 0x8c2   :  { %v2551_v53 = vrot.slane %v2495_v3, %v3513_v63  ;;  %2567 = vst [vmem:[%s4495_s6 + $0x4] sm:$0x8] %v2566_v23  ;;  %2570 = vst [vmem:[%s4495_s6 + $0x8] sm:$0x8] %v2569_v62  ;;  %v2572_v9 = vsel %vm4413_vm6, %v2523_v24, %v2571_v25  ;;  %v2578_v13 = vsel %vm4413_vm6, %v2537_v31, %v2577_v36 }
 0x8c3   :  { %2576 = vst [vmem:[%s4495_s6 + $0x10] sm:$0x8] %v2575_v38  ;;  %v2581_v63 = vsel %vm4413_vm6, %v2544_v26, %v2580_v1  ;;  %2573 = vst [vmem:[%s4495_s6 + $0xc] sm:$0x8] %v2572_v9 }
 0x8c4   :  { %2579 = vst [vmem:[%s4495_s6 + $0x14] sm:$0x8] %v2578_v13  ;;  %2582 = vst [vmem:[%s4495_s6 + $0x18] sm:$0x8] %v2581_v63  ;;  %v2584_v19 = vsel %vm4413_vm6, %v2551_v53, %v2583_v15 }
 0x8c5   :  { %2585 = vst [vmem:[%s4495_s6 + $0x1c] sm:$0x8] %v2584_v19 }
 0x8c6   :  { %2592 = vsyncpa [#allocation5], 1 }
 0x8c7   :  { %2593 = vsyncpa [#allocation7], 1 }

</bundles_post_ra>
